<compile_context>
chip_gen: v7x
topology: tpu7x:2x2x1
jax: 0.10.0
libtpu: 0.0.40
codegen_flags: <defaults>
</compile_context>

<pallas_src>
import functools
import math

import jax
import jax.numpy as jnp
from jax.experimental import pallas as pl
from jax.experimental.pallas import tpu as pltpu

EPS = 1e-6
_VMEM_BUDGET = 40 << 20            # working-set target; safe on v5e/v6e (128 MiB) and v7x (64 MiB)
_SINGLE_BUFFER_WEIGHTS = [True]    # flipped off at runtime if pipeline_mode is unsupported


# ------------------------- sizing helpers -------------------------


def _pad(n, m):
    return -(-n // m) * m


_SUBLANE = {4: 8, 2: 16, 1: 32}


def _block_bytes(shape, dtype):
    """Approx VMEM bytes of one (sublane, lane)-padded buffer of `shape`."""
    itemsize = jnp.dtype(dtype).itemsize
    if not shape:
        return itemsize
    dims = list(shape)
    dims[-1] = _pad(dims[-1], 128)
    if len(dims) >= 2:
        dims[-2] = _pad(dims[-2], _SUBLANE.get(itemsize, 8))
    n = 1
    for d in dims:
        n *= d
    return n * itemsize


def _row_bytes(cols, itemsize):
    return _pad(cols, 128) * itemsize


def _compiler_params(semantics, vmem_entries):
    """dimension_semantics + an explicit VMEM limit sized from the actual blocks."""
    total = sum(_block_bytes(s, d) * n for (s, d, n) in vmem_entries)
    limit = min(int(total * 1.5) + (4 << 20), 100 << 20)
    return pltpu.CompilerParams(dimension_semantics=semantics,
                                vmem_limit_bytes=limit)


def _pick_tm(M, bytes_per_row, fixed_bytes, cap=1024):
    """Largest 16-row-aligned row tile fitting the VMEM budget; if the whole slab
    fits, split once so both TensorCores (v7x) get a tile."""
    avail = max(_VMEM_BUDGET - fixed_bytes, 2 << 20)
    fit = int(avail // max(bytes_per_row, 1))
    tm = max(16, min(cap, (fit // 16) * 16))
    if tm >= M:
        half = _pad(max(M // 2, 1), 16)
        tm = half if (M >= 32 and half < M) else M
    return tm


def _pick_inner_tile(n, cap=512):
    if n <= cap:
        return n
    for t in (cap, 384, 256, 128):
        if t <= cap and n % t == 0:
            return t
    return n


def _const_spec(shape):
    """Grid-invariant operand (weights / biases / LN params): constant block index,
    single-buffered when the installed jax supports pipeline_mode."""
    nd = len(shape)
    idx = lambda *_: (0,) * nd
    if _SINGLE_BUFFER_WEIGHTS[0]:
        try:
            return pl.BlockSpec(shape, idx, pipeline_mode=pl.Buffered(1))
        except Exception:
            pass
    return pl.BlockSpec(shape, idx)


# ------------------------- shared in-kernel math -------------------------


def _layernorm(x, g, b):
    # torch LayerNorm-from-scratch: a_2 * (x - mean) / (std + eps) + b_2,
    # torch.std default is unbiased (ddof = 1).  The per-row divide goes to the
    # EUP via pl.reciprocal(approx=True) instead of a VPU divide sequence.
    d = x.shape[-1]
    mean = jnp.mean(x, axis=-1, keepdims=True)
    diff = x - mean
    var = jnp.sum(diff * diff, axis=-1, keepdims=True) * (1.0 / (d - 1))
    inv = pl.reciprocal(jnp.sqrt(var) + EPS, approx=True)
    return g * (diff * inv) + b


# ------------------------- Pallas kernels -------------------------


def _ln_proj_kernel(*refs, n_out):
    """LayerNorm(x) followed by n_out independent linear projections (bf16 out)."""
    x_ref, g_ref, b_ref = refs[0], refs[1], refs[2]
    xn = _layernorm(x_ref[...], g_ref[...], b_ref[...]).astype(jnp.bfloat16)
    for j in range(n_out):
        w_ref = refs[3 + 2 * j]
        bias_ref = refs[4 + 2 * j]
        o_ref = refs[3 + 2 * n_out + j]
        y = jnp.dot(xn, w_ref[...], preferred_element_type=jnp.float32) + bias_ref[...]
        o_ref[...] = y.astype(o_ref.dtype)


def _proj_kernel(*refs, n_out):
    """n_out plain linear projections of one row tile (memory K/V), bf16 out."""
    xb = refs[0][...].astype(jnp.bfloat16)
    for j in range(n_out):
        w_ref = refs[1 + 2 * j]
        bias_ref = refs[2 + 2 * j]
        o_ref = refs[1 + 2 * n_out + j]
        y = jnp.dot(xb, w_ref[...], preferred_element_type=jnp.float32) + bias_ref[...]
        o_ref[...] = y.astype(o_ref.dtype)


def _linear_res_kernel(x_ref, w_ref, b_ref, r_ref, o_ref):
    """Output projection fused with the SublayerConnection residual add (f32 out)."""
    xb = x_ref[...].astype(jnp.bfloat16)
    y = jnp.dot(xb, w_ref[...], preferred_element_type=jnp.float32)
    o_ref[...] = y + b_ref[...] + r_ref[...]


def _ln_ffn_res_kernel(x_ref, g_ref, b_ref, w1_ref, b1_ref, w2_ref, b2_ref, o_ref,
                       acc_ref, xn_ref):
    """x + W2(relu(W1(LN(x)))) with the Dff axis streamed over grid axis 1, so the
    weights and the hidden activation are only ever resident one Dff-tile at a time."""
    f = pl.program_id(1)

    @pl.when(f == 0)
    def _():
        x = x_ref[...]
        xn_ref[...] = _layernorm(x, g_ref[...], b_ref[...]).astype(jnp.bfloat16)
        acc_ref[...] = x + b2_ref[...]          # residual + final bias folded into init

    h = jnp.dot(xn_ref[...], w1_ref[...], preferred_element_type=jnp.float32) + b1_ref[...]
    h = jnp.maximum(h, 0.0)
    acc_ref[...] += jnp.dot(h.astype(jnp.bfloat16), w2_ref[...],
                            preferred_element_type=jnp.float32)

    @pl.when(f == pl.num_programs(1) - 1)
    def _():
        o_ref[...] = acc_ref[...]


def _attn_kernel(mask_ref, q_ref, k_ref, v_ref, o_ref, m_sc, l_sc, acc_sc,
                 *, scale, heads, dk):
    """One (batch, q-tile, head-group) cell; KV tiles stream over grid axis 3 with
    an online softmax (m/l/acc scratch) so only a (tq, tk) score tile is live."""
    kv = pl.program_id(3)

    @pl.when(kv == 0)
    def _():
        m_sc[...] = jnp.full(m_sc.shape, -jnp.inf, jnp.float32)
        l_sc[...] = jnp.zeros(l_sc.shape, jnp.float32)
        acc_sc[...] = jnp.zeros(acc_sc.shape, jnp.float32)

    # Hoisted per-cell invariants: scale q once per (tq, G*dk) slab and compare
    # the mask once (not once per head / per score matrix).
    q = q_ref[0] * scale                                   # stays bf16 (weak scalar)
    k = k_ref[0]
    v = v_ref[0]
    neg = mask_ref[0].astype(jnp.float32) <= 0.0           # ({1,tq}, tk) bool

    for h in range(heads):
        sl = slice(h * dk, (h + 1) * dk)
        # contract dk axes directly (no k.T -> no in-kernel transpose)
        s = jax.lax.dot_general(q[:, sl], k[:, sl], (((1,), (1,)), ((), ())),
                                preferred_element_type=jnp.float32)
        s = jnp.where(neg, -1e9, s)                        # masked_fill(mask == 0, -1e9)
        m_prev = m_sc[h]
        m_new = jnp.maximum(m_prev, jnp.max(s, axis=-1, keepdims=True))
        alpha = jnp.exp(m_prev - m_new)
        p = jnp.exp(s - m_new)                             # f32 exp (safe on v5e too)
        l_sc[h] = alpha * l_sc[h] + jnp.sum(p, axis=-1, keepdims=True)
        acc_sc[:, sl] = alpha * acc_sc[:, sl] + jnp.dot(
            p.astype(jnp.bfloat16), v[:, sl], preferred_element_type=jnp.float32)
        m_sc[h] = m_new

    @pl.when(kv == pl.num_programs(3) - 1)
    def _():
        parts = []
        for h in range(heads):
            sl = slice(h * dk, (h + 1) * dk)
            parts.append(acc_sc[:, sl] * pl.reciprocal(l_sc[h], approx=True))
        o_ref[0] = jnp.concatenate(parts, axis=-1).astype(o_ref.dtype)


# ------------------------- wrappers -------------------------


def _ln_proj(x2d, g, b, wbs):
    """LayerNorm + one or more projections, row-tiled over B*T; bf16 outputs."""
    M, D = x2d.shape
    n_out = len(wbs)
    fixed = _block_bytes(g.shape, jnp.float32) + _block_bytes(b.shape, jnp.float32)
    per_row = 2 * _row_bytes(D, 4) + _row_bytes(D, 2)
    for w, bias in wbs:
        fixed += _block_bytes(w.shape, w.dtype) + _block_bytes(bias.shape, bias.dtype)
        per_row += 2 * _row_bytes(w.shape[1], 2) + _row_bytes(w.shape[1], 4)
    tm = _pick_tm(M, per_row, fixed)

    in_specs = [pl.BlockSpec((tm, D), lambda i: (i, 0)),
                _const_spec(g.shape), _const_spec(b.shape)]
    args = [x2d, g, b]
    entries = [((tm, D), jnp.float32, 2), ((tm, D), jnp.bfloat16, 1),
               (g.shape, jnp.float32, 1), (b.shape, jnp.float32, 1)]
    out_shape, out_specs = [], []
    for w, bias in wbs:
        in_specs += [_const_spec(w.shape), _const_spec(bias.shape)]
        args += [w, bias]
        dout = w.shape[1]
        out_shape.append(jax.ShapeDtypeStruct((M, dout), jnp.bfloat16))
        out_specs.append(pl.BlockSpec((tm, dout), lambda i: (i, 0)))
        entries += [(w.shape, w.dtype, 1), (bias.shape, bias.dtype, 1),
                    ((tm, dout), jnp.bfloat16, 2), ((tm, dout), jnp.float32, 1)]
    return pl.pallas_call(
        functools.partial(_ln_proj_kernel, n_out=n_out),
        out_shape=tuple(out_shape),
        grid=(pl.cdiv(M, tm),),
        in_specs=in_specs,
        out_specs=tuple(out_specs),
        compiler_params=_compiler_params(("parallel",), entries),
    )(*args)


def _proj(x2d, wbs):
    """Plain projections (no LN) of the encoder memory, row-tiled; bf16 outputs."""
    M, D = x2d.shape
    n_out = len(wbs)
    fixed = 0
    per_row = 2 * _row_bytes(D, 4) + _row_bytes(D, 2)
    for w, bias in wbs:
        fixed += _block_bytes(w.shape, w.dtype) + _block_bytes(bias.shape, bias.dtype)
        per_row += 2 * _row_bytes(w.shape[1], 2) + _row_bytes(w.shape[1], 4)
    tm = _pick_tm(M, per_row, fixed)

    in_specs = [pl.BlockSpec((tm, D), lambda i: (i, 0))]
    args = [x2d]
    entries = [((tm, D), jnp.float32, 2), ((tm, D), jnp.bfloat16, 1)]
    out_shape, out_specs = [], []
    for w, bias in wbs:
        in_specs += [_const_spec(w.shape), _const_spec(bias.shape)]
        args += [w, bias]
        dout = w.shape[1]
        out_shape.append(jax.ShapeDtypeStruct((M, dout), jnp.bfloat16))
        out_specs.append(pl.BlockSpec((tm, dout), lambda i: (i, 0)))
        entries += [(w.shape, w.dtype, 1), (bias.shape, bias.dtype, 1),
                    ((tm, dout), jnp.bfloat16, 2), ((tm, dout), jnp.float32, 1)]
    return pl.pallas_call(
        functools.partial(_proj_kernel, n_out=n_out),
        out_shape=tuple(out_shape),
        grid=(pl.cdiv(M, tm),),
        in_specs=in_specs,
        out_specs=tuple(out_specs),
        compiler_params=_compiler_params(("parallel",), entries),
    )(*args)


def linear_res(x2d, w, bias, res2d):
    """out = x2d @ w + bias + res2d; residual buffer aliased to the output."""
    M, D_in = x2d.shape
    D_out = w.shape[1]
    fixed = _block_bytes(w.shape, w.dtype) + _block_bytes(bias.shape, bias.dtype)
    per_row = 2 * _row_bytes(D_in, 2) + 5 * _row_bytes(D_out, 4)
    tm = _pick_tm(M, per_row, fixed)
    entries = [((tm, D_in), jnp.bfloat16, 2),
               (w.shape, w.dtype, 1), (bias.shape, bias.dtype, 1),
               ((tm, D_out), jnp.float32, 5)]
    return pl.pallas_call(
        _linear_res_kernel,
        out_shape=jax.ShapeDtypeStruct((M, D_out), jnp.float32),
        grid=(pl.cdiv(M, tm),),
        in_specs=[pl.BlockSpec((tm, D_in), lambda i: (i, 0)),
                  _const_spec(w.shape), _const_spec(bias.shape),
                  pl.BlockSpec((tm, D_out), lambda i: (i, 0))],
        out_specs=pl.BlockSpec((tm, D_out), lambda i: (i, 0)),
        input_output_aliases={3: 0},                 # residual buffer reused for output
        compiler_params=_compiler_params(("parallel",), entries),
    )(x2d, w, bias, res2d)


def ln_ffn_res(x2d, g, b, ffn):
    """x + FFN(LN(x)); Dff streamed over an inner 'arbitrary' grid axis."""
    M, D = x2d.shape
    Dff = ffn["W1"].shape[1]
    tf = _pick_inner_tile(Dff, 512)
    nf = Dff // tf
    fixed = (2 * _block_bytes((D, tf), jnp.bfloat16)
             + 2 * _block_bytes((tf, D), jnp.bfloat16)
             + 2 * _block_bytes((1, tf), jnp.float32)
             + _block_bytes(g.shape, jnp.float32) + _block_bytes(b.shape, jnp.float32)
             + _block_bytes(ffn["b2"].shape, jnp.float32))
    per_row = (4 * _row_bytes(D, 4)                  # x stream + out stream (2 bufs each)
               + _row_bytes(D, 4) + _row_bytes(D, 2)  # acc + xn scratch
               + 3 * _row_bytes(tf, 4))               # hidden-tile temporaries
    tm = _pick_tm(M, per_row, fixed)
    entries = [((tm, D), jnp.float32, 4),
               ((D, tf), jnp.bfloat16, 2), ((tf, D), jnp.bfloat16, 2),
               ((1, tf), jnp.float32, 2),
               (g.shape, jnp.float32, 1), (b.shape, jnp.float32, 1),
               (ffn["b2"].shape, jnp.float32, 1),
               ((tm, D), jnp.float32, 1), ((tm, D), jnp.bfloat16, 1),
               ((tm, tf), jnp.float32, 3)]
    return pl.pallas_call(
        _ln_ffn_res_kernel,
        out_shape=jax.ShapeDtypeStruct((M, D), jnp.float32),
        grid=(pl.cdiv(M, tm), nf),
        in_specs=[pl.BlockSpec((tm, D), lambda i, f: (i, 0)),
                  _const_spec(g.shape), _const_spec(b.shape),
                  pl.BlockSpec((D, tf), lambda i, f: (0, f)),
                  pl.BlockSpec((1, tf), lambda i, f: (0, f)),
                  pl.BlockSpec((tf, D), lambda i, f: (f, 0)),
                  _const_spec(ffn["b2"].shape)],
        out_specs=pl.BlockSpec((tm, D), lambda i, f: (i, 0)),
        scratch_shapes=[pltpu.VMEM((tm, D), jnp.float32),
                        pltpu.VMEM((tm, D), jnp.bfloat16)],
        input_output_aliases={0: 0},                 # x buffer reused for output
        compiler_params=_compiler_params(("parallel", "arbitrary"), entries),
    )(x2d, g, b, ffn["W1"], ffn["b1"], ffn["W2"], ffn["b2"])


def attention_pallas(q, k, v, mask, num_heads):
    """q: (B, Tq, D) bf16, k/v: (B, Tk, D) bf16, mask: (Bm, {1,Tq}, Tk).
    Heads are addressed via BlockSpec column blocks (head-major when dk >= 128,
    128-lane head groups otherwise); KV tiles stream with an online softmax."""
    B, Tq, D = q.shape
    Tk = k.shape[1]
    dk = D // num_heads
    if dk >= 128:
        G = 1                                     # head-major, lane-dense dk blocks
    elif D % 128 == 0 and 128 % dk == 0 and num_heads % (128 // dk) == 0:
        G = 128 // dk                             # lane-dense 128-wide head groups
    else:
        G = num_heads                             # whole-D block (== full dim)
    HG = num_heads // G
    gdk = G * dk

    tq = _pick_inner_tile(Tq, 512)
    tk = _pick_inner_tile(Tk, 512)
    nq = Tq // tq
    nkv = Tk // tk

    mask_i8 = (mask > 0).astype(jnp.int8)         # 4x less mask DMA than f32
    Bm, Tqm, _ = mask_i8.shape
    tq_m = tq if Tqm == Tq else Tqm               # Tqm is 1 (padding) or Tq (causal)

    def mask_idx(b, qi, g, kv):
        return (b if Bm > 1 else 0, qi if Tqm > 1 else 0, kv)

    kernel = functools.partial(_attn_kernel, scale=1.0 / math.sqrt(dk),
                               heads=G, dk=dk)
    entries = [((1, tq_m, tk), jnp.int8, 2),
               ((1, tq, gdk), jnp.bfloat16, 2), ((1, tk, gdk), jnp.bfloat16, 2),
               ((1, tk, gdk), jnp.bfloat16, 2), ((1, tq, gdk), jnp.bfloat16, 2),
               ((G, tq, 1), jnp.float32, 2), ((tq, gdk), jnp.float32, 1),
               ((tq, tk), jnp.float32, 6)]
    # TODO(synk): for very long sequences, generate the causal mask in-kernel from
    # iota compares + scalar-prefetched pad lengths to drop the mask input entirely.
    return pl.pallas_call(
        kernel,
        out_shape=jax.ShapeDtypeStruct((B, Tq, D), jnp.bfloat16),
        grid=(B, nq, HG, nkv),
        in_specs=[
            pl.BlockSpec((1, tq_m, tk), mask_idx),
            pl.BlockSpec((1, tq, gdk), lambda b, qi, g, kv: (b, qi, g)),
            pl.BlockSpec((1, tk, gdk), lambda b, qi, g, kv: (b, kv, g)),
            pl.BlockSpec((1, tk, gdk), lambda b, qi, g, kv: (b, kv, g)),
        ],
        out_specs=pl.BlockSpec((1, tq, gdk), lambda b, qi, g, kv: (b, qi, g)),
        scratch_shapes=[pltpu.VMEM((G, tq, 1), jnp.float32),
                        pltpu.VMEM((G, tq, 1), jnp.float32),
                        pltpu.VMEM((tq, gdk), jnp.float32)],
        compiler_params=_compiler_params(
            ("parallel", "parallel", "parallel", "arbitrary"), entries),
    )(mask_i8, q, k, v)


# ------------------------- decoder layer -------------------------


@functools.partial(jax.jit, static_argnames=("num_heads",))
def decoder_layer(x, memory, src_mask, tgt_mask, params, num_heads):
    """DecoderLayer.forward with pre-norm SublayerConnections, dropout=0."""
    B, T, D = x.shape
    S = memory.shape[1]
    x2d = x.reshape(B * T, D)
    m2d = memory.reshape(B * S, D)

    # sublayer[0]: x + self_attn(norm(x), norm(x), norm(x), tgt_mask)
    sa = params["self_attn"]
    q2d, k2d, v2d = _ln_proj(x2d, params["ln0_g"], params["ln0_b"],
                             [(sa["Wq"], sa["bq"]), (sa["Wk"], sa["bk"]),
                              (sa["Wv"], sa["bv"])])
    attn = attention_pallas(q2d.reshape(B, T, D), k2d.reshape(B, T, D),
                            v2d.reshape(B, T, D), tgt_mask, num_heads)
    x2d = linear_res(attn.reshape(B * T, D), sa["Wo"], sa["bo"], x2d)

    # sublayer[1]: x + src_attn(norm(x), memory, memory, src_mask)
    # TODO(synk): in an autoregressive decode loop, cache k2d/v2d of the static
    # encoder memory outside the per-step call instead of recomputing them here.
    ca = params["src_attn"]
    (q2d,) = _ln_proj(x2d, params["ln1_g"], params["ln1_b"],
                      [(ca["Wq"], ca["bq"])])
    k2d, v2d = _proj(m2d, [(ca["Wk"], ca["bk"]), (ca["Wv"], ca["bv"])])
    attn = attention_pallas(q2d.reshape(B, T, D), k2d.reshape(B, S, D),
                            v2d.reshape(B, S, D), src_mask, num_heads)
    x2d = linear_res(attn.reshape(B * T, D), ca["Wo"], ca["bo"], x2d)

    # sublayer[2]: x + feed_forward(norm(x))
    x2d = ln_ffn_res(x2d, params["ln2_g"], params["ln2_b"], params["ffn"])
    return x2d.reshape(B, T, D)


# ------------------------- pure-JAX reference -------------------------


def _f32(w):
    return w.astype(jnp.float32)


def _ref_ln(x, g, b):
    mean = x.mean(-1, keepdims=True)
    std = jnp.std(x, axis=-1, keepdims=True, ddof=1)
    return g.reshape(-1) * (x - mean) / (std + EPS) + b.reshape(-1)


def _ref_mha(x_q, x_kv, mask, p, H):
    B, Tq, D = x_q.shape
    Tk = x_kv.shape[1]
    dk = D // H
    q = (x_q @ _f32(p["Wq"]) + p["bq"]).reshape(B, Tq, H, dk).transpose(0, 2, 1, 3)
    k = (x_kv @ _f32(p["Wk"]) + p["bk"]).reshape(B, Tk, H, dk).transpose(0, 2, 1, 3)
    v = (x_kv @ _f32(p["Wv"]) + p["bv"]).reshape(B, Tk, H, dk).transpose(0, 2, 1, 3)
    s = jnp.einsum("bhqd,bhkd->bhqk", q, k) / math.sqrt(dk)
    m = jnp.broadcast_to(mask, (B, Tq, Tk))[:, None]
    s = jnp.where(m > 0, s, -1e9)
    p_attn = jax.nn.softmax(s, axis=-1)
    o = jnp.einsum("bhqk,bhkd->bhqd", p_attn, v).transpose(0, 2, 1, 3).reshape(B, Tq, D)
    return o @ _f32(p["Wo"]) + p["bo"]


def _ref_decoder(x, memory, src_mask, tgt_mask, params, H):
    xn = _ref_ln(x, params["ln0_g"], params["ln0_b"])
    x = x + _ref_mha(xn, xn, tgt_mask, params["self_attn"], H)
    xn = _ref_ln(x, params["ln1_g"], params["ln1_b"])
    x = x + _ref_mha(xn, memory, src_mask, params["src_attn"], H)
    xn = _ref_ln(x, params["ln2_g"], params["ln2_b"])
    h = jnp.maximum(xn @ _f32(params["ffn"]["W1"]) + params["ffn"]["b1"], 0.0)
    return x + h @ _f32(params["ffn"]["W2"]) + params["ffn"]["b2"]


# ------------------------- setup & run -------------------------


def _init_params(key, D, Dff):
    ks = jax.random.split(key, 12)

    def u(k, shp, fan_in):
        lim = 1.0 / math.sqrt(fan_in)
        # weights stored in bf16 (halves weight DMA bytes, feeds MXU bf16 path)
        return jax.random.uniform(k, shp, jnp.float32, -lim, lim).astype(jnp.bfloat16)

    def attn_params(ks4):
        return {
            "Wq": u(ks4[0], (D, D), D), "bq": jnp.zeros((1, D), jnp.float32),
            "Wk": u(ks4[1], (D, D), D), "bk": jnp.zeros((1, D), jnp.float32),
            "Wv": u(ks4[2], (D, D), D), "bv": jnp.zeros((1, D), jnp.float32),
            "Wo": u(ks4[3], (D, D), D), "bo": jnp.zeros((1, D), jnp.float32),
        }

    return {
        "ln0_g": jnp.ones((1, D), jnp.float32), "ln0_b": jnp.zeros((1, D), jnp.float32),
        "ln1_g": jnp.ones((1, D), jnp.float32), "ln1_b": jnp.zeros((1, D), jnp.float32),
        "ln2_g": jnp.ones((1, D), jnp.float32), "ln2_b": jnp.zeros((1, D), jnp.float32),
        "self_attn": attn_params(ks[0:4]),
        "src_attn": attn_params(ks[4:8]),
        "ffn": {
            "W1": u(ks[8], (D, Dff), D), "b1": jnp.zeros((1, Dff), jnp.float32),
            "W2": u(ks[9], (Dff, D), Dff), "b2": jnp.zeros((1, D), jnp.float32),
        },
    }


if __name__ == "__main__":
    B, T, S, D, H, Dff = 2, 8, 8, 32, 4, 64
    key = jax.random.PRNGKey(0)
    kx, km, kp = jax.random.split(key, 3)

    x = jax.random.normal(kx, (B, T, D), jnp.float32)
    memory = jax.random.normal(km, (B, S, D), jnp.float32)
    # tgt_mask: causal (subsequent) mask; src_mask: padding mask (batch 1 pads 2)
    tgt_mask = jnp.tril(jnp.ones((T, T), jnp.float32))[None]                       # (1, T, T)
    src_lens = jnp.array([S, S - 2])
    src_mask = (jnp.arange(S)[None, :] < src_lens[:, None]).astype(jnp.float32)[:, None, :]  # (B, 1, S)

    params = _init_params(kp, D, Dff)

    def _run():
        o = decoder_layer(x, memory, src_mask, tgt_mask, params, num_heads=H)
        return jax.block_until_ready(o)

    try:
        out = _run()
    except Exception:
        # Fallback: disable single-buffered weight specs if this jax build rejects
        # pipeline_mode=pl.Buffered(1) on pallas_call BlockSpecs, then recompile.
        _SINGLE_BUFFER_WEIGHTS[0] = False
        if hasattr(decoder_layer, "clear_cache"):
            decoder_layer.clear_cache()
        out = _run()

    ref = _ref_decoder(x, memory, src_mask, tgt_mask, params, H)
    assert out.shape == (B, T, D)
    assert bool(jnp.all(jnp.isfinite(out)))
    # bf16 matmul operands / intermediates (f32 accumulation) + approx EUP
    # reciprocals vs the f32 reference -> slightly wider tolerance
    assert bool(jnp.allclose(out, ref, rtol=2e-2, atol=2e-2)), "mismatch vs reference"

    # TODO(synk): dropout is identity here (p=0 / eval); stochastic dropout would
    # need pltpu.prng_seed + stateful_bernoulli inside the kernels.
    print("KERNEL_OK")
</pallas_src>

<mosaic_0001>
module attributes {stable_mosaic.version = 11 : i64} {
  func.func @_ln_proj_kernel(%arg0: i32, %arg1: memref<16x32xf32, #tpu.memory_space<vmem>>, %arg2: memref<1x32xf32, #tpu.memory_space<vmem>>, %arg3: memref<1x32xf32, #tpu.memory_space<vmem>>, %arg4: memref<32x32xbf16, #tpu.memory_space<vmem>>, %arg5: memref<1x32xf32, #tpu.memory_space<vmem>>, %arg6: memref<32x32xbf16, #tpu.memory_space<vmem>>, %arg7: memref<1x32xf32, #tpu.memory_space<vmem>>, %arg8: memref<32x32xbf16, #tpu.memory_space<vmem>>, %arg9: memref<1x32xf32, #tpu.memory_space<vmem>>, %arg10: memref<16x32xbf16, #tpu.memory_space<vmem>>, %arg11: memref<16x32xbf16, #tpu.memory_space<vmem>>, %arg12: memref<16x32xbf16, #tpu.memory_space<vmem>>) attributes {dimension_semantics = [#tpu.dimension_semantics<parallel>], iteration_bounds = array<i64: 1>, scalar_prefetch = 0 : i64, scratch_operands = 0 : i64, tpu.core_type = #tpu.core_type<tc>, window_params = [{transform_indices = @transform_0, window_bounds = array<i64: 16, 32>}, {pipeline_mode = #tpu.pipeline_mode<synchronous>, transform_indices = @transform_1, window_bounds = array<i64: 1, 32>}, {pipeline_mode = #tpu.pipeline_mode<synchronous>, transform_indices = @transform_2, window_bounds = array<i64: 1, 32>}, {pipeline_mode = #tpu.pipeline_mode<synchronous>, transform_indices = @transform_3, window_bounds = array<i64: 32, 32>}, {pipeline_mode = #tpu.pipeline_mode<synchronous>, transform_indices = @transform_4, window_bounds = array<i64: 1, 32>}, {pipeline_mode = #tpu.pipeline_mode<synchronous>, transform_indices = @transform_5, window_bounds = array<i64: 32, 32>}, {pipeline_mode = #tpu.pipeline_mode<synchronous>, transform_indices = @transform_6, window_bounds = array<i64: 1, 32>}, {pipeline_mode = #tpu.pipeline_mode<synchronous>, transform_indices = @transform_7, window_bounds = array<i64: 32, 32>}, {pipeline_mode = #tpu.pipeline_mode<synchronous>, transform_indices = @transform_8, window_bounds = array<i64: 1, 32>}, {transform_indices = @transform_9, window_bounds = array<i64: 16, 32>}, {transform_indices = @transform_10, window_bounds = array<i64: 16, 32>}, {transform_indices = @transform_11, window_bounds = array<i64: 16, 32>}]} {
    %c0 = arith.constant 0 : index
    %c0_0 = arith.constant 0 : index
    %0 = vector.load %arg1[%c0, %c0_0] : memref<16x32xf32, #tpu.memory_space<vmem>>, vector<16x32xf32>
    %c0_1 = arith.constant 0 : index
    %c0_2 = arith.constant 0 : index
    %1 = vector.load %arg2[%c0_1, %c0_2] : memref<1x32xf32, #tpu.memory_space<vmem>>, vector<1x32xf32>
    %c0_3 = arith.constant 0 : index
    %c0_4 = arith.constant 0 : index
    %2 = vector.load %arg3[%c0_3, %c0_4] : memref<1x32xf32, #tpu.memory_space<vmem>>, vector<1x32xf32>
    %cst = arith.constant dense<0.000000e+00> : vector<16xf32>
    %3 = vector.multi_reduction <add>, %0, %cst [1] : vector<16x32xf32> to vector<16xf32>
    %4 = vector.shape_cast %3 : vector<16xf32> to vector<16x1xf32>
    %cst_5 = arith.constant 3.200000e+01 : f32
    %5 = vector.broadcast %cst_5 : f32 to vector<16x1xf32>
    %6 = arith.divf %4, %5 : vector<16x1xf32>
    %7 = vector.broadcast %6 : vector<16x1xf32> to vector<16x32xf32>
    %8 = arith.subf %0, %7 : vector<16x32xf32>
    %9 = arith.mulf %8, %8 : vector<16x32xf32>
    %cst_6 = arith.constant dense<0.000000e+00> : vector<16xf32>
    %10 = vector.multi_reduction <add>, %9, %cst_6 [1] : vector<16x32xf32> to vector<16xf32>
    %11 = vector.shape_cast %10 : vector<16xf32> to vector<16x1xf32>
    %cst_7 = arith.constant 0.0322580636 : f32
    %12 = vector.broadcast %cst_7 : f32 to vector<16x1xf32>
    %13 = arith.mulf %11, %12 : vector<16x1xf32>
    %14 = math.sqrt %13 : vector<16x1xf32>
    %cst_8 = arith.constant 9.99999997E-7 : f32
    %15 = vector.broadcast %cst_8 : f32 to vector<16x1xf32>
    %16 = arith.addf %14, %15 : vector<16x1xf32>
    %17 = tpu.reciprocal %16 {approx = true} : vector<16x1xf32> -> vector<16x1xf32>
    %18 = vector.broadcast %17 : vector<16x1xf32> to vector<16x32xf32>
    %19 = arith.mulf %8, %18 : vector<16x32xf32>
    %20 = vector.broadcast %1 : vector<1x32xf32> to vector<16x32xf32>
    %21 = arith.mulf %20, %19 : vector<16x32xf32>
    %22 = vector.broadcast %2 : vector<1x32xf32> to vector<16x32xf32>
    %23 = arith.addf %21, %22 : vector<16x32xf32>
    %24 = arith.truncf %23 : vector<16x32xf32> to vector<16x32xbf16>
    %c0_9 = arith.constant 0 : index
    %c0_10 = arith.constant 0 : index
    %25 = vector.load %arg4[%c0_9, %c0_10] : memref<32x32xbf16, #tpu.memory_space<vmem>>, vector<32x32xbf16>
    %cst_11 = arith.constant dense<0.000000e+00> : vector<16x32xf32>
    %26 = tpu.matmul %24, %25, %cst_11 {dimension_numbers = #tpu.dot_dimension_numbers<[1], [0], [0], [1], [0, 0, 1, 1], [], []>} : vector<16x32xbf16>, vector<32x32xbf16>, vector<16x32xf32> -> vector<16x32xf32>
    %c0_12 = arith.constant 0 : index
    %c0_13 = arith.constant 0 : index
    %27 = vector.load %arg5[%c0_12, %c0_13] : memref<1x32xf32, #tpu.memory_space<vmem>>, vector<1x32xf32>
    %28 = vector.broadcast %27 : vector<1x32xf32> to vector<16x32xf32>
    %29 = arith.addf %26, %28 : vector<16x32xf32>
    %30 = arith.truncf %29 : vector<16x32xf32> to vector<16x32xbf16>
    %c0_14 = arith.constant 0 : index
    %c0_15 = arith.constant 0 : index
    %31 = vector.load %arg10[%c0_14, %c0_15] : memref<16x32xbf16, #tpu.memory_space<vmem>>, vector<16x32xbf16>
    tpu.vector_store %arg10[%c0_14, %c0_15], %30 {strides = array<i32>} : memref<16x32xbf16, #tpu.memory_space<vmem>>, vector<16x32xbf16>,
    %c0_16 = arith.constant 0 : index
    %c0_17 = arith.constant 0 : index
    %32 = vector.load %arg6[%c0_16, %c0_17] : memref<32x32xbf16, #tpu.memory_space<vmem>>, vector<32x32xbf16>
    %cst_18 = arith.constant dense<0.000000e+00> : vector<16x32xf32>
    %33 = tpu.matmul %24, %32, %cst_18 {dimension_numbers = #tpu.dot_dimension_numbers<[1], [0], [0], [1], [0, 0, 1, 1], [], []>} : vector<16x32xbf16>, vector<32x32xbf16>, vector<16x32xf32> -> vector<16x32xf32>
    %c0_19 = arith.constant 0 : index
    %c0_20 = arith.constant 0 : index
    %34 = vector.load %arg7[%c0_19, %c0_20] : memref<1x32xf32, #tpu.memory_space<vmem>>, vector<1x32xf32>
    %35 = vector.broadcast %34 : vector<1x32xf32> to vector<16x32xf32>
    %36 = arith.addf %33, %35 : vector<16x32xf32>
    %37 = arith.truncf %36 : vector<16x32xf32> to vector<16x32xbf16>
    %c0_21 = arith.constant 0 : index
    %c0_22 = arith.constant 0 : index
    %38 = vector.load %arg11[%c0_21, %c0_22] : memref<16x32xbf16, #tpu.memory_space<vmem>>, vector<16x32xbf16>
    tpu.vector_store %arg11[%c0_21, %c0_22], %37 {strides = array<i32>} : memref<16x32xbf16, #tpu.memory_space<vmem>>, vector<16x32xbf16>,
    %c0_23 = arith.constant 0 : index
    %c0_24 = arith.constant 0 : index
    %39 = vector.load %arg8[%c0_23, %c0_24] : memref<32x32xbf16, #tpu.memory_space<vmem>>, vector<32x32xbf16>
    %cst_25 = arith.constant dense<0.000000e+00> : vector<16x32xf32>
    %40 = tpu.matmul %24, %39, %cst_25 {dimension_numbers = #tpu.dot_dimension_numbers<[1], [0], [0], [1], [0, 0, 1, 1], [], []>} : vector<16x32xbf16>, vector<32x32xbf16>, vector<16x32xf32> -> vector<16x32xf32>
    %c0_26 = arith.constant 0 : index
    %c0_27 = arith.constant 0 : index
    %41 = vector.load %arg9[%c0_26, %c0_27] : memref<1x32xf32, #tpu.memory_space<vmem>>, vector<1x32xf32>
    %42 = vector.broadcast %41 : vector<1x32xf32> to vector<16x32xf32>
    %43 = arith.addf %40, %42 : vector<16x32xf32>
    %44 = arith.truncf %43 : vector<16x32xf32> to vector<16x32xbf16>
    %c0_28 = arith.constant 0 : index
    %c0_29 = arith.constant 0 : index
    %45 = vector.load %arg12[%c0_28, %c0_29] : memref<16x32xbf16, #tpu.memory_space<vmem>>, vector<16x32xbf16>
    tpu.vector_store %arg12[%c0_28, %c0_29], %44 {strides = array<i32>} : memref<16x32xbf16, #tpu.memory_space<vmem>>, vector<16x32xbf16>,
    return
  }
  func.func @transform_0(%arg0: i32) -> (i32, i32) {
    %c0_i32 = arith.constant 0 : i32
    %c0_i32_0 = arith.constant 0 : i32
    return %arg0, %c0_i32 : i32, i32
  }
  func.func @transform_1(%arg0: i32) -> (i32, i32) {
    %c0_i32 = arith.constant 0 : i32
    %c0_i32_0 = arith.constant 0 : i32
    %c0_i32_1 = arith.constant 0 : i32
    return %c0_i32, %c0_i32_0 : i32, i32
  }
  func.func @transform_2(%arg0: i32) -> (i32, i32) {
    %c0_i32 = arith.constant 0 : i32
    %c0_i32_0 = arith.constant 0 : i32
    %c0_i32_1 = arith.constant 0 : i32
    return %c0_i32, %c0_i32_0 : i32, i32
  }
  func.func @transform_3(%arg0: i32) -> (i32, i32) {
    %c0_i32 = arith.constant 0 : i32
    %c0_i32_0 = arith.constant 0 : i32
    %c0_i32_1 = arith.constant 0 : i32
    return %c0_i32, %c0_i32_0 : i32, i32
  }
  func.func @transform_4(%arg0: i32) -> (i32, i32) {
    %c0_i32 = arith.constant 0 : i32
    %c0_i32_0 = arith.constant 0 : i32
    %c0_i32_1 = arith.constant 0 : i32
    return %c0_i32, %c0_i32_0 : i32, i32
  }
  func.func @transform_5(%arg0: i32) -> (i32, i32) {
    %c0_i32 = arith.constant 0 : i32
    %c0_i32_0 = arith.constant 0 : i32
    %c0_i32_1 = arith.constant 0 : i32
    return %c0_i32, %c0_i32_0 : i32, i32
  }
  func.func @transform_6(%arg0: i32) -> (i32, i32) {
    %c0_i32 = arith.constant 0 : i32
    %c0_i32_0 = arith.constant 0 : i32
    %c0_i32_1 = arith.constant 0 : i32
    return %c0_i32, %c0_i32_0 : i32, i32
  }
  func.func @transform_7(%arg0: i32) -> (i32, i32) {
    %c0_i32 = arith.constant 0 : i32
    %c0_i32_0 = arith.constant 0 : i32
    %c0_i32_1 = arith.constant 0 : i32
    return %c0_i32, %c0_i32_0 : i32, i32
  }
  func.func @transform_8(%arg0: i32) -> (i32, i32) {
    %c0_i32 = arith.constant 0 : i32
    %c0_i32_0 = arith.constant 0 : i32
    %c0_i32_1 = arith.constant 0 : i32
    return %c0_i32, %c0_i32_0 : i32, i32
  }
  func.func @transform_9(%arg0: i32) -> (i32, i32) {
    %c0_i32 = arith.constant 0 : i32
    %c0_i32_0 = arith.constant 0 : i32
    return %arg0, %c0_i32 : i32, i32
  }
  func.func @transform_10(%arg0: i32) -> (i32, i32) {
    %c0_i32 = arith.constant 0 : i32
    %c0_i32_0 = arith.constant 0 : i32
    return %arg0, %c0_i32 : i32, i32
  }
  func.func @transform_11(%arg0: i32) -> (i32, i32) {
    %c0_i32 = arith.constant 0 : i32
    %c0_i32_0 = arith.constant 0 : i32
    return %arg0, %c0_i32 : i32, i32
  }
}

module attributes {stable_mosaic.version = 11 : i64} {
  func.func @_attn_kernel(%arg0: i32, %arg1: i32, %arg2: i32, %arg3: i32, %arg4: memref<1x8x8xi8, #tpu.memory_space<vmem>>, %arg5: memref<1x8x32xbf16, #tpu.memory_space<vmem>>, %arg6: memref<1x8x32xbf16, #tpu.memory_space<vmem>>, %arg7: memref<1x8x32xbf16, #tpu.memory_space<vmem>>, %arg8: memref<1x8x32xbf16, #tpu.memory_space<vmem>>, %arg9: memref<4x8x1xf32, #tpu.memory_space<vmem>>, %arg10: memref<4x8x1xf32, #tpu.memory_space<vmem>>, %arg11: memref<8x32xf32, #tpu.memory_space<vmem>>) attributes {dimension_semantics = [#tpu.dimension_semantics<parallel>, #tpu.dimension_semantics<parallel>, #tpu.dimension_semantics<parallel>, #tpu.dimension_semantics<arbitrary>], iteration_bounds = array<i64: 2, 1, 1, 1>, scalar_prefetch = 0 : i64, scratch_operands = 3 : i64, tpu.core_type = #tpu.core_type<tc>, window_params = [{transform_indices = @transform_0, window_bounds = array<i64: 1, 8, 8>}, {transform_indices = @transform_1, window_bounds = array<i64: 1, 8, 32>}, {transform_indices = @transform_2, window_bounds = array<i64: 1, 8, 32>}, {transform_indices = @transform_3, window_bounds = array<i64: 1, 8, 32>}, {transform_indices = @transform_4, window_bounds = array<i64: 1, 8, 32>}]} {
    %c0_i32 = arith.constant 0 : i32
    %0 = arith.cmpi eq, %arg3, %c0_i32 : i32
    %1 = arith.extui %0 : i1 to i32
    %c0_i32_0 = arith.constant 0 : i32
    %2 = arith.cmpi ne, %1, %c0_i32_0 : i32
    scf.if %2 {
      %cst_93 = arith.constant 0xFF800000 : f32
      %159 = vector.broadcast %cst_93 : f32 to vector<4x8x1xf32>
      %c0_94 = arith.constant 0 : index
      %c0_95 = arith.constant 0 : index
      %c0_96 = arith.constant 0 : index
      %160 = vector.load %arg9[%c0_94, %c0_95, %c0_96] : memref<4x8x1xf32, #tpu.memory_space<vmem>>, vector<4x8x1xf32>
      tpu.vector_store %arg9[%c0_94, %c0_95, %c0_96], %159 {strides = array<i32>} : memref<4x8x1xf32, #tpu.memory_space<vmem>>, vector<4x8x1xf32>,
      %cst_97 = arith.constant 0.000000e+00 : f32
      %161 = vector.broadcast %cst_97 : f32 to vector<4x8x1xf32>
      %c0_98 = arith.constant 0 : index
      %c0_99 = arith.constant 0 : index
      %c0_100 = arith.constant 0 : index
      %162 = vector.load %arg10[%c0_98, %c0_99, %c0_100] : memref<4x8x1xf32, #tpu.memory_space<vmem>>, vector<4x8x1xf32>
      tpu.vector_store %arg10[%c0_98, %c0_99, %c0_100], %161 {strides = array<i32>} : memref<4x8x1xf32, #tpu.memory_space<vmem>>, vector<4x8x1xf32>,
      %cst_101 = arith.constant 0.000000e+00 : f32
      %163 = vector.broadcast %cst_101 : f32 to vector<8x32xf32>
      %c0_102 = arith.constant 0 : index
      %c0_103 = arith.constant 0 : index
      %164 = vector.load %arg11[%c0_102, %c0_103] : memref<8x32xf32, #tpu.memory_space<vmem>>, vector<8x32xf32>
      tpu.vector_store %arg11[%c0_102, %c0_103], %163 {strides = array<i32>} : memref<8x32xf32, #tpu.memory_space<vmem>>, vector<8x32xf32>,
    } else {
    }
    %c0 = arith.constant 0 : index
    %c0_1 = arith.constant 0 : index
    %c0_2 = arith.constant 0 : index
    %3 = vector.load %arg5[%c0, %c0_1, %c0_2] : memref<1x8x32xbf16, #tpu.memory_space<vmem>>, vector<1x8x32xbf16>
    %4 = vector.shape_cast %3 : vector<1x8x32xbf16> to vector<8x32xbf16>
    %cst = arith.constant 3.535160e-01 : bf16
    %5 = vector.broadcast %cst : bf16 to vector<8x32xbf16>
    %6 = arith.mulf %4, %5 : vector<8x32xbf16>
    %c0_3 = arith.constant 0 : index
    %c0_4 = arith.constant 0 : index
    %c0_5 = arith.constant 0 : index
    %7 = vector.load %arg6[%c0_3, %c0_4, %c0_5] : memref<1x8x32xbf16, #tpu.memory_space<vmem>>, vector<1x8x32xbf16>
    %8 = vector.shape_cast %7 : vector<1x8x32xbf16> to vector<8x32xbf16>
    %c0_6 = arith.constant 0 : index
    %c0_7 = arith.constant 0 : index
    %c0_8 = arith.constant 0 : index
    %9 = vector.load %arg7[%c0_6, %c0_7, %c0_8] : memref<1x8x32xbf16, #tpu.memory_space<vmem>>, vector<1x8x32xbf16>
    %10 = vector.shape_cast %9 : vector<1x8x32xbf16> to vector<8x32xbf16>
    %c0_9 = arith.constant 0 : index
    %c0_10 = arith.constant 0 : index
    %c0_11 = arith.constant 0 : index
    %11 = vector.load %arg4[%c0_9, %c0_10, %c0_11] : memref<1x8x8xi8, #tpu.memory_space<vmem>>, vector<1x8x8xi8>
    %12 = vector.shape_cast %11 : vector<1x8x8xi8> to vector<8x8xi8>
    %13 = arith.sitofp %12 : vector<8x8xi8> to vector<8x8xf32>
    %cst_12 = arith.constant 0.000000e+00 : f32
    %14 = vector.broadcast %cst_12 : f32 to vector<8x8xf32>
    %15 = arith.cmpf ole, %13, %14 : vector<8x8xf32>
    %16 = vector.extract_strided_slice %6 {offsets = [0, 0], sizes = [8, 8], strides = [1, 1]} : vector<8x32xbf16> to vector<8x8xbf16>
    %17 = vector.extract_strided_slice %8 {offsets = [0, 0], sizes = [8, 8], strides = [1, 1]} : vector<8x32xbf16> to vector<8x8xbf16>
    %cst_13 = arith.constant dense<0.000000e+00> : vector<8x8xf32>
    %18 = tpu.matmul %16, %17, %cst_13 {dimension_numbers = #tpu.dot_dimension_numbers<[1], [1], [0], [0], [0, 0, 1, 0], [], []>} : vector<8x8xbf16>, vector<8x8xbf16>, vector<8x8xf32> -> vector<8x8xf32>
    %cst_14 = arith.constant -1.000000e+09 : f32
    %19 = vector.broadcast %cst_14 : f32 to vector<8x8xf32>
    %20 = arith.select %15, %19, %18 : vector<8x8xi1>, vector<8x8xf32>
    %c0_15 = arith.constant 0 : index
    %c0_16 = arith.constant 0 : index
    %c0_17 = arith.constant 0 : index
    %21 = vector.load %arg9[%c0_15, %c0_16, %c0_17] : memref<4x8x1xf32, #tpu.memory_space<vmem>>, vector<1x8x1xf32>
    %22 = vector.shape_cast %21 : vector<1x8x1xf32> to vector<8x1xf32>
    %cst_18 = arith.constant dense<0xFF800000> : vector<8xf32>
    %23 = vector.multi_reduction <maximumf>, %20, %cst_18 [1] : vector<8x8xf32> to vector<8xf32>
    %24 = vector.shape_cast %23 : vector<8xf32> to vector<8x1xf32>
    %25 = arith.maximumf %22, %24 : vector<8x1xf32>
    %26 = arith.subf %22, %25 : vector<8x1xf32>
    %27 = math.exp %26 : vector<8x1xf32>
    %28 = vector.broadcast %25 : vector<8x1xf32> to vector<8x8xf32>
    %29 = arith.subf %20, %28 : vector<8x8xf32>
    %30 = math.exp %29 : vector<8x8xf32>
    %c0_19 = arith.constant 0 : index
    %c0_20 = arith.constant 0 : index
    %c0_21 = arith.constant 0 : index
    %31 = vector.load %arg10[%c0_19, %c0_20, %c0_21] : memref<4x8x1xf32, #tpu.memory_space<vmem>>, vector<1x8x1xf32>
    %32 = vector.shape_cast %31 : vector<1x8x1xf32> to vector<8x1xf32>
    %33 = arith.mulf %27, %32 : vector<8x1xf32>
    %cst_22 = arith.constant dense<0.000000e+00> : vector<8xf32>
    %34 = vector.multi_reduction <add>, %30, %cst_22 [1] : vector<8x8xf32> to vector<8xf32>
    %35 = vector.shape_cast %34 : vector<8xf32> to vector<8x1xf32>
    %36 = arith.addf %33, %35 : vector<8x1xf32>
    %c0_23 = arith.constant 0 : index
    %c0_24 = arith.constant 0 : index
    %c0_25 = arith.constant 0 : index
    %37 = vector.load %arg10[%c0_23, %c0_24, %c0_25] : memref<4x8x1xf32, #tpu.memory_space<vmem>>, vector<1x8x1xf32>
    %38 = vector.shape_cast %37 : vector<1x8x1xf32> to vector<8x1xf32>
    %39 = vector.shape_cast %36 : vector<8x1xf32> to vector<1x8x1xf32>
    tpu.vector_store %arg10[%c0_23, %c0_24, %c0_25], %39 {strides = array<i32>} : memref<4x8x1xf32, #tpu.memory_space<vmem>>, vector<1x8x1xf32>,
    %c0_26 = arith.constant 0 : index
    %c0_27 = arith.constant 0 : index
    %40 = vector.load %arg11[%c0_26, %c0_27] : memref<8x32xf32, #tpu.memory_space<vmem>>, vector<8x8xf32>
    %41 = vector.broadcast %27 : vector<8x1xf32> to vector<8x8xf32>
    %42 = arith.mulf %41, %40 : vector<8x8xf32>
    %43 = arith.truncf %30 : vector<8x8xf32> to vector<8x8xbf16>
    %44 = vector.extract_strided_slice %10 {offsets = [0, 0], sizes = [8, 8], strides = [1, 1]} : vector<8x32xbf16> to vector<8x8xbf16>
    %cst_28 = arith.constant dense<0.000000e+00> : vector<8x8xf32>
    %45 = tpu.matmul %43, %44, %cst_28 {dimension_numbers = #tpu.dot_dimension_numbers<[1], [0], [0], [1], [0, 0, 1, 1], [], []>} : vector<8x8xbf16>, vector<8x8xbf16>, vector<8x8xf32> -> vector<8x8xf32>
    %46 = arith.addf %42, %45 : vector<8x8xf32>
    %c0_29 = arith.constant 0 : index
    %c0_30 = arith.constant 0 : index
    %47 = vector.load %arg11[%c0_29, %c0_30] : memref<8x32xf32, #tpu.memory_space<vmem>>, vector<8x8xf32>
    tpu.vector_store %arg11[%c0_29, %c0_30], %46 {strides = array<i32>} : memref<8x32xf32, #tpu.memory_space<vmem>>, vector<8x8xf32>,
    %c0_31 = arith.constant 0 : index
    %c0_32 = arith.constant 0 : index
    %c0_33 = arith.constant 0 : index
    %48 = vector.load %arg9[%c0_31, %c0_32, %c0_33] : memref<4x8x1xf32, #tpu.memory_space<vmem>>, vector<1x8x1xf32>
    %49 = vector.shape_cast %48 : vector<1x8x1xf32> to vector<8x1xf32>
    %50 = vector.shape_cast %25 : vector<8x1xf32> to vector<1x8x1xf32>
    tpu.vector_store %arg9[%c0_31, %c0_32, %c0_33], %50 {strides = array<i32>} : memref<4x8x1xf32, #tpu.memory_space<vmem>>, vector<1x8x1xf32>,
    %51 = vector.extract_strided_slice %6 {offsets = [0, 8], sizes = [8, 8], strides = [1, 1]} : vector<8x32xbf16> to vector<8x8xbf16>
    %52 = vector.extract_strided_slice %8 {offsets = [0, 8], sizes = [8, 8], strides = [1, 1]} : vector<8x32xbf16> to vector<8x8xbf16>
    %cst_34 = arith.constant dense<0.000000e+00> : vector<8x8xf32>
    %53 = tpu.matmul %51, %52, %cst_34 {dimension_numbers = #tpu.dot_dimension_numbers<[1], [1], [0], [0], [0, 0, 1, 0], [], []>} : vector<8x8xbf16>, vector<8x8xbf16>, vector<8x8xf32> -> vector<8x8xf32>
    %cst_35 = arith.constant -1.000000e+09 : f32
    %54 = vector.broadcast %cst_35 : f32 to vector<8x8xf32>
    %55 = arith.select %15, %54, %53 : vector<8x8xi1>, vector<8x8xf32>
    %c1 = arith.constant 1 : index
    %c0_36 = arith.constant 0 : index
    %c0_37 = arith.constant 0 : index
    %56 = vector.load %arg9[%c1, %c0_36, %c0_37] : memref<4x8x1xf32, #tpu.memory_space<vmem>>, vector<1x8x1xf32>
    %57 = vector.shape_cast %56 : vector<1x8x1xf32> to vector<8x1xf32>
    %cst_38 = arith.constant dense<0xFF800000> : vector<8xf32>
    %58 = vector.multi_reduction <maximumf>, %55, %cst_38 [1] : vector<8x8xf32> to vector<8xf32>
    %59 = vector.shape_cast %58 : vector<8xf32> to vector<8x1xf32>
    %60 = arith.maximumf %57, %59 : vector<8x1xf32>
    %61 = arith.subf %57, %60 : vector<8x1xf32>
    %62 = math.exp %61 : vector<8x1xf32>
    %63 = vector.broadcast %60 : vector<8x1xf32> to vector<8x8xf32>
    %64 = arith.subf %55, %63 : vector<8x8xf32>
    %65 = math.exp %64 : vector<8x8xf32>
    %c1_39 = arith.constant 1 : index
    %c0_40 = arith.constant 0 : index
    %c0_41 = arith.constant 0 : index
    %66 = vector.load %arg10[%c1_39, %c0_40, %c0_41] : memref<4x8x1xf32, #tpu.memory_space<vmem>>, vector<1x8x1xf32>
    %67 = vector.shape_cast %66 : vector<1x8x1xf32> to vector<8x1xf32>
    %68 = arith.mulf %62, %67 : vector<8x1xf32>
    %cst_42 = arith.constant dense<0.000000e+00> : vector<8xf32>
    %69 = vector.multi_reduction <add>, %65, %cst_42 [1] : vector<8x8xf32> to vector<8xf32>
    %70 = vector.shape_cast %69 : vector<8xf32> to vector<8x1xf32>
    %71 = arith.addf %68, %70 : vector<8x1xf32>
    %c1_43 = arith.constant 1 : index
    %c0_44 = arith.constant 0 : index
    %c0_45 = arith.constant 0 : index
    %72 = vector.load %arg10[%c1_43, %c0_44, %c0_45] : memref<4x8x1xf32, #tpu.memory_space<vmem>>, vector<1x8x1xf32>
    %73 = vector.shape_cast %72 : vector<1x8x1xf32> to vector<8x1xf32>
    %74 = vector.shape_cast %71 : vector<8x1xf32> to vector<1x8x1xf32>
    tpu.vector_store %arg10[%c1_43, %c0_44, %c0_45], %74 {strides = array<i32>} : memref<4x8x1xf32, #tpu.memory_space<vmem>>, vector<1x8x1xf32>,
    %c0_46 = arith.constant 0 : index
    %c8 = arith.constant 8 : index
    %75 = vector.load %arg11[%c0_46, %c8] : memref<8x32xf32, #tpu.memory_space<vmem>>, vector<8x8xf32>
    %76 = vector.broadcast %62 : vector<8x1xf32> to vector<8x8xf32>
    %77 = arith.mulf %76, %75 : vector<8x8xf32>
    %78 = arith.truncf %65 : vector<8x8xf32> to vector<8x8xbf16>
    %79 = vector.extract_strided_slice %10 {offsets = [0, 8], sizes = [8, 8], strides = [1, 1]} : vector<8x32xbf16> to vector<8x8xbf16>
    %cst_47 = arith.constant dense<0.000000e+00> : vector<8x8xf32>
    %80 = tpu.matmul %78, %79, %cst_47 {dimension_numbers = #tpu.dot_dimension_numbers<[1], [0], [0], [1], [0, 0, 1, 1], [], []>} : vector<8x8xbf16>, vector<8x8xbf16>, vector<8x8xf32> -> vector<8x8xf32>
    %81 = arith.addf %77, %80 : vector<8x8xf32>
    %c0_48 = arith.constant 0 : index
    %c8_49 = arith.constant 8 : index
    %82 = vector.load %arg11[%c0_48, %c8_49] : memref<8x32xf32, #tpu.memory_space<vmem>>, vector<8x8xf32>
    tpu.vector_store %arg11[%c0_48, %c8_49], %81 {strides = array<i32>} : memref<8x32xf32, #tpu.memory_space<vmem>>, vector<8x8xf32>,
    %c1_50 = arith.constant 1 : index
    %c0_51 = arith.constant 0 : index
    %c0_52 = arith.constant 0 : index
    %83 = vector.load %arg9[%c1_50, %c0_51, %c0_52] : memref<4x8x1xf32, #tpu.memory_space<vmem>>, vector<1x8x1xf32>
    %84 = vector.shape_cast %83 : vector<1x8x1xf32> to vector<8x1xf32>
    %85 = vector.shape_cast %60 : vector<8x1xf32> to vector<1x8x1xf32>
    tpu.vector_store %arg9[%c1_50, %c0_51, %c0_52], %85 {strides = array<i32>} : memref<4x8x1xf32, #tpu.memory_space<vmem>>, vector<1x8x1xf32>,
    %86 = vector.extract_strided_slice %6 {offsets = [0, 16], sizes = [8, 8], strides = [1, 1]} : vector<8x32xbf16> to vector<8x8xbf16>
    %87 = vector.extract_strided_slice %8 {offsets = [0, 16], sizes = [8, 8], strides = [1, 1]} : vector<8x32xbf16> to vector<8x8xbf16>
    %cst_53 = arith.constant dense<0.000000e+00> : vector<8x8xf32>
    %88 = tpu.matmul %86, %87, %cst_53 {dimension_numbers = #tpu.dot_dimension_numbers<[1], [1], [0], [0], [0, 0, 1, 0], [], []>} : vector<8x8xbf16>, vector<8x8xbf16>, vector<8x8xf32> -> vector<8x8xf32>
    %cst_54 = arith.constant -1.000000e+09 : f32
    %89 = vector.broadcast %cst_54 : f32 to vector<8x8xf32>
    %90 = arith.select %15, %89, %88 : vector<8x8xi1>, vector<8x8xf32>
    %c2 = arith.constant 2 : index
    %c0_55 = arith.constant 0 : index
    %c0_56 = arith.constant 0 : index
    %91 = vector.load %arg9[%c2, %c0_55, %c0_56] : memref<4x8x1xf32, #tpu.memory_space<vmem>>, vector<1x8x1xf32>
    %92 = vector.shape_cast %91 : vector<1x8x1xf32> to vector<8x1xf32>
    %cst_57 = arith.constant dense<0xFF800000> : vector<8xf32>
    %93 = vector.multi_reduction <maximumf>, %90, %cst_57 [1] : vector<8x8xf32> to vector<8xf32>
    %94 = vector.shape_cast %93 : vector<8xf32> to vector<8x1xf32>
    %95 = arith.maximumf %92, %94 : vector<8x1xf32>
    %96 = arith.subf %92, %95 : vector<8x1xf32>
    %97 = math.exp %96 : vector<8x1xf32>
    %98 = vector.broadcast %95 : vector<8x1xf32> to vector<8x8xf32>
    %99 = arith.subf %90, %98 : vector<8x8xf32>
    %100 = math.exp %99 : vector<8x8xf32>
    %c2_58 = arith.constant 2 : index
    %c0_59 = arith.constant 0 : index
    %c0_60 = arith.constant 0 : index
    %101 = vector.load %arg10[%c2_58, %c0_59, %c0_60] : memref<4x8x1xf32, #tpu.memory_space<vmem>>, vector<1x8x1xf32>
    %102 = vector.shape_cast %101 : vector<1x8x1xf32> to vector<8x1xf32>
    %103 = arith.mulf %97, %102 : vector<8x1xf32>
    %cst_61 = arith.constant dense<0.000000e+00> : vector<8xf32>
    %104 = vector.multi_reduction <add>, %100, %cst_61 [1] : vector<8x8xf32> to vector<8xf32>
    %105 = vector.shape_cast %104 : vector<8xf32> to vector<8x1xf32>
    %106 = arith.addf %103, %105 : vector<8x1xf32>
    %c2_62 = arith.constant 2 : index
    %c0_63 = arith.constant 0 : index
    %c0_64 = arith.constant 0 : index
    %107 = vector.load %arg10[%c2_62, %c0_63, %c0_64] : memref<4x8x1xf32, #tpu.memory_space<vmem>>, vector<1x8x1xf32>
    %108 = vector.shape_cast %107 : vector<1x8x1xf32> to vector<8x1xf32>
    %109 = vector.shape_cast %106 : vector<8x1xf32> to vector<1x8x1xf32>
    tpu.vector_store %arg10[%c2_62, %c0_63, %c0_64], %109 {strides = array<i32>} : memref<4x8x1xf32, #tpu.memory_space<vmem>>, vector<1x8x1xf32>,
    %c0_65 = arith.constant 0 : index
    %c16 = arith.constant 16 : index
    %110 = vector.load %arg11[%c0_65, %c16] : memref<8x32xf32, #tpu.memory_space<vmem>>, vector<8x8xf32>
    %111 = vector.broadcast %97 : vector<8x1xf32> to vector<8x8xf32>
    %112 = arith.mulf %111, %110 : vector<8x8xf32>
    %113 = arith.truncf %100 : vector<8x8xf32> to vector<8x8xbf16>
    %114 = vector.extract_strided_slice %10 {offsets = [0, 16], sizes = [8, 8], strides = [1, 1]} : vector<8x32xbf16> to vector<8x8xbf16>
    %cst_66 = arith.constant dense<0.000000e+00> : vector<8x8xf32>
    %115 = tpu.matmul %113, %114, %cst_66 {dimension_numbers = #tpu.dot_dimension_numbers<[1], [0], [0], [1], [0, 0, 1, 1], [], []>} : vector<8x8xbf16>, vector<8x8xbf16>, vector<8x8xf32> -> vector<8x8xf32>
    %116 = arith.addf %112, %115 : vector<8x8xf32>
    %c0_67 = arith.constant 0 : index
    %c16_68 = arith.constant 16 : index
    %117 = vector.load %arg11[%c0_67, %c16_68] : memref<8x32xf32, #tpu.memory_space<vmem>>, vector<8x8xf32>
    tpu.vector_store %arg11[%c0_67, %c16_68], %116 {strides = array<i32>} : memref<8x32xf32, #tpu.memory_space<vmem>>, vector<8x8xf32>,
    %c2_69 = arith.constant 2 : index
    %c0_70 = arith.constant 0 : index
    %c0_71 = arith.constant 0 : index
    %118 = vector.load %arg9[%c2_69, %c0_70, %c0_71] : memref<4x8x1xf32, #tpu.memory_space<vmem>>, vector<1x8x1xf32>
    %119 = vector.shape_cast %118 : vector<1x8x1xf32> to vector<8x1xf32>
    %120 = vector.shape_cast %95 : vector<8x1xf32> to vector<1x8x1xf32>
    tpu.vector_store %arg9[%c2_69, %c0_70, %c0_71], %120 {strides = array<i32>} : memref<4x8x1xf32, #tpu.memory_space<vmem>>, vector<1x8x1xf32>,
    %121 = vector.extract_strided_slice %6 {offsets = [0, 24], sizes = [8, 8], strides = [1, 1]} : vector<8x32xbf16> to vector<8x8xbf16>
    %122 = vector.extract_strided_slice %8 {offsets = [0, 24], sizes = [8, 8], strides = [1, 1]} : vector<8x32xbf16> to vector<8x8xbf16>
    %cst_72 = arith.constant dense<0.000000e+00> : vector<8x8xf32>
    %123 = tpu.matmul %121, %122, %cst_72 {dimension_numbers = #tpu.dot_dimension_numbers<[1], [1], [0], [0], [0, 0, 1, 0], [], []>} : vector<8x8xbf16>, vector<8x8xbf16>, vector<8x8xf32> -> vector<8x8xf32>
    %cst_73 = arith.constant -1.000000e+09 : f32
    %124 = vector.broadcast %cst_73 : f32 to vector<8x8xf32>
    %125 = arith.select %15, %124, %123 : vector<8x8xi1>, vector<8x8xf32>
    %c3 = arith.constant 3 : index
    %c0_74 = arith.constant 0 : index
    %c0_75 = arith.constant 0 : index
    %126 = vector.load %arg9[%c3, %c0_74, %c0_75] : memref<4x8x1xf32, #tpu.memory_space<vmem>>, vector<1x8x1xf32>
    %127 = vector.shape_cast %126 : vector<1x8x1xf32> to vector<8x1xf32>
    %cst_76 = arith.constant dense<0xFF800000> : vector<8xf32>
    %128 = vector.multi_reduction <maximumf>, %125, %cst_76 [1] : vector<8x8xf32> to vector<8xf32>
    %129 = vector.shape_cast %128 : vector<8xf32> to vector<8x1xf32>
    %130 = arith.maximumf %127, %129 : vector<8x1xf32>
    %131 = arith.subf %127, %130 : vector<8x1xf32>
    %132 = math.exp %131 : vector<8x1xf32>
    %133 = vector.broadcast %130 : vector<8x1xf32> to vector<8x8xf32>
    %134 = arith.subf %125, %133 : vector<8x8xf32>
    %135 = math.exp %134 : vector<8x8xf32>
    %c3_77 = arith.constant 3 : index
    %c0_78 = arith.constant 0 : index
    %c0_79 = arith.constant 0 : index
    %136 = vector.load %arg10[%c3_77, %c0_78, %c0_79] : memref<4x8x1xf32, #tpu.memory_space<vmem>>, vector<1x8x1xf32>
    %137 = vector.shape_cast %136 : vector<1x8x1xf32> to vector<8x1xf32>
    %138 = arith.mulf %132, %137 : vector<8x1xf32>
    %cst_80 = arith.constant dense<0.000000e+00> : vector<8xf32>
    %139 = vector.multi_reduction <add>, %135, %cst_80 [1] : vector<8x8xf32> to vector<8xf32>
    %140 = vector.shape_cast %139 : vector<8xf32> to vector<8x1xf32>
    %141 = arith.addf %138, %140 : vector<8x1xf32>
    %c3_81 = arith.constant 3 : index
    %c0_82 = arith.constant 0 : index
    %c0_83 = arith.constant 0 : index
    %142 = vector.load %arg10[%c3_81, %c0_82, %c0_83] : memref<4x8x1xf32, #tpu.memory_space<vmem>>, vector<1x8x1xf32>
    %143 = vector.shape_cast %142 : vector<1x8x1xf32> to vector<8x1xf32>
    %144 = vector.shape_cast %141 : vector<8x1xf32> to vector<1x8x1xf32>
    tpu.vector_store %arg10[%c3_81, %c0_82, %c0_83], %144 {strides = array<i32>} : memref<4x8x1xf32, #tpu.memory_space<vmem>>, vector<1x8x1xf32>,
    %c0_84 = arith.constant 0 : index
    %c24 = arith.constant 24 : index
    %145 = vector.load %arg11[%c0_84, %c24] : memref<8x32xf32, #tpu.memory_space<vmem>>, vector<8x8xf32>
    %146 = vector.broadcast %132 : vector<8x1xf32> to vector<8x8xf32>
    %147 = arith.mulf %146, %145 : vector<8x8xf32>
    %148 = arith.truncf %135 : vector<8x8xf32> to vector<8x8xbf16>
    %149 = vector.extract_strided_slice %10 {offsets = [0, 24], sizes = [8, 8], strides = [1, 1]} : vector<8x32xbf16> to vector<8x8xbf16>
    %cst_85 = arith.constant dense<0.000000e+00> : vector<8x8xf32>
    %150 = tpu.matmul %148, %149, %cst_85 {dimension_numbers = #tpu.dot_dimension_numbers<[1], [0], [0], [1], [0, 0, 1, 1], [], []>} : vector<8x8xbf16>, vector<8x8xbf16>, vector<8x8xf32> -> vector<8x8xf32>
    %151 = arith.addf %147, %150 : vector<8x8xf32>
    %c0_86 = arith.constant 0 : index
    %c24_87 = arith.constant 24 : index
    %152 = vector.load %arg11[%c0_86, %c24_87] : memref<8x32xf32, #tpu.memory_space<vmem>>, vector<8x8xf32>
    tpu.vector_store %arg11[%c0_86, %c24_87], %151 {strides = array<i32>} : memref<8x32xf32, #tpu.memory_space<vmem>>, vector<8x8xf32>,
    %c3_88 = arith.constant 3 : index
    %c0_89 = arith.constant 0 : index
    %c0_90 = arith.constant 0 : index
    %153 = vector.load %arg9[%c3_88, %c0_89, %c0_90] : memref<4x8x1xf32, #tpu.memory_space<vmem>>, vector<1x8x1xf32>
    %154 = vector.shape_cast %153 : vector<1x8x1xf32> to vector<8x1xf32>
    %155 = vector.shape_cast %130 : vector<8x1xf32> to vector<1x8x1xf32>
    tpu.vector_store %arg9[%c3_88, %c0_89, %c0_90], %155 {strides = array<i32>} : memref<4x8x1xf32, #tpu.memory_space<vmem>>, vector<1x8x1xf32>,
    %c0_i32_91 = arith.constant 0 : i32
    %156 = arith.cmpi eq, %arg3, %c0_i32_91 : i32
    %157 = arith.extui %156 : i1 to i32
    %c0_i32_92 = arith.constant 0 : i32
    %158 = arith.cmpi ne, %157, %c0_i32_92 : i32
    scf.if %158 {
      %c0_93 = arith.constant 0 : index
      %c0_94 = arith.constant 0 : index
      %159 = vector.load %arg11[%c0_93, %c0_94] : memref<8x32xf32, #tpu.memory_space<vmem>>, vector<8x8xf32>
      %c0_95 = arith.constant 0 : index
      %c0_96 = arith.constant 0 : index
      %c0_97 = arith.constant 0 : index
      %160 = vector.load %arg10[%c0_95, %c0_96, %c0_97] : memref<4x8x1xf32, #tpu.memory_space<vmem>>, vector<1x8x1xf32>
      %161 = vector.shape_cast %160 : vector<1x8x1xf32> to vector<8x1xf32>
      %162 = tpu.reciprocal %161 {approx = true} : vector<8x1xf32> -> vector<8x1xf32>
      %163 = vector.broadcast %162 : vector<8x1xf32> to vector<8x8xf32>
      %164 = arith.mulf %159, %163 : vector<8x8xf32>
      %c0_98 = arith.constant 0 : index
      %c8_99 = arith.constant 8 : index
      %165 = vector.load %arg11[%c0_98, %c8_99] : memref<8x32xf32, #tpu.memory_space<vmem>>, vector<8x8xf32>
      %c1_100 = arith.constant 1 : index
      %c0_101 = arith.constant 0 : index
      %c0_102 = arith.constant 0 : index
      %166 = vector.load %arg10[%c1_100, %c0_101, %c0_102] : memref<4x8x1xf32, #tpu.memory_space<vmem>>, vector<1x8x1xf32>
      %167 = vector.shape_cast %166 : vector<1x8x1xf32> to vector<8x1xf32>
      %168 = tpu.reciprocal %167 {approx = true} : vector<8x1xf32> -> vector<8x1xf32>
      %169 = vector.broadcast %168 : vector<8x1xf32> to vector<8x8xf32>
      %170 = arith.mulf %165, %169 : vector<8x8xf32>
      %c0_103 = arith.constant 0 : index
      %c16_104 = arith.constant 16 : index
      %171 = vector.load %arg11[%c0_103, %c16_104] : memref<8x32xf32, #tpu.memory_space<vmem>>, vector<8x8xf32>
      %c2_105 = arith.constant 2 : index
      %c0_106 = arith.constant 0 : index
      %c0_107 = arith.constant 0 : index
      %172 = vector.load %arg10[%c2_105, %c0_106, %c0_107] : memref<4x8x1xf32, #tpu.memory_space<vmem>>, vector<1x8x1xf32>
      %173 = vector.shape_cast %172 : vector<1x8x1xf32> to vector<8x1xf32>
      %174 = tpu.reciprocal %173 {approx = true} : vector<8x1xf32> -> vector<8x1xf32>
      %175 = vector.broadcast %174 : vector<8x1xf32> to vector<8x8xf32>
      %176 = arith.mulf %171, %175 : vector<8x8xf32>
      %c0_108 = arith.constant 0 : index
      %c24_109 = arith.constant 24 : index
      %177 = vector.load %arg11[%c0_108, %c24_109] : memref<8x32xf32, #tpu.memory_space<vmem>>, vector<8x8xf32>
      %c3_110 = arith.constant 3 : index
      %c0_111 = arith.constant 0 : index
      %c0_112 = arith.constant 0 : index
      %178 = vector.load %arg10[%c3_110, %c0_111, %c0_112] : memref<4x8x1xf32, #tpu.memory_space<vmem>>, vector<1x8x1xf32>
      %179 = vector.shape_cast %178 : vector<1x8x1xf32> to vector<8x1xf32>
      %180 = tpu.reciprocal %179 {approx = true} : vector<8x1xf32> -> vector<8x1xf32>
      %181 = vector.broadcast %180 : vector<8x1xf32> to vector<8x8xf32>
      %182 = arith.mulf %177, %181 : vector<8x8xf32>
      %183 = tpu.concatenate %164, %170, %176, %182 in 1 : vector<8x8xf32>, vector<8x8xf32>, vector<8x8xf32>, vector<8x8xf32> -> vector<8x32xf32>
      %184 = arith.truncf %183 : vector<8x32xf32> to vector<8x32xbf16>
      %c0_113 = arith.constant 0 : index
      %c0_114 = arith.constant 0 : index
      %c0_115 = arith.constant 0 : index
      %185 = vector.load %arg8[%c0_113, %c0_114, %c0_115] : memref<1x8x32xbf16, #tpu.memory_space<vmem>>, vector<1x8x32xbf16>
      %186 = vector.shape_cast %185 : vector<1x8x32xbf16> to vector<8x32xbf16>
      %187 = vector.shape_cast %184 : vector<8x32xbf16> to vector<1x8x32xbf16>
      tpu.vector_store %arg8[%c0_113, %c0_114, %c0_115], %187 {strides = array<i32>} : memref<1x8x32xbf16, #tpu.memory_space<vmem>>, vector<1x8x32xbf16>,
    } else {
    }
    return
  }
  func.func @transform_0(%arg0: i32, %arg1: i32, %arg2: i32, %arg3: i32) -> (i32, i32, i32) {
    %c0_i32 = arith.constant 0 : i32
    %c0_i32_0 = arith.constant 0 : i32
    return %c0_i32, %arg1, %arg3 : i32, i32, i32
  }
  func.func @transform_1(%arg0: i32, %arg1: i32, %arg2: i32, %arg3: i32) -> (i32, i32, i32) {
    %c0_i32 = arith.constant 0 : i32
    return %arg0, %arg1, %arg2 : i32, i32, i32
  }
  func.func @transform_2(%arg0: i32, %arg1: i32, %arg2: i32, %arg3: i32) -> (i32, i32, i32) {
    %c0_i32 = arith.constant 0 : i32
    return %arg0, %arg3, %arg2 : i32, i32, i32
  }
  func.func @transform_3(%arg0: i32, %arg1: i32, %arg2: i32, %arg3: i32) -> (i32, i32, i32) {
    %c0_i32 = arith.constant 0 : i32
    return %arg0, %arg3, %arg2 : i32, i32, i32
  }
  func.func @transform_4(%arg0: i32, %arg1: i32, %arg2: i32, %arg3: i32) -> (i32, i32, i32) {
    %c0_i32 = arith.constant 0 : i32
    return %arg0, %arg1, %arg2 : i32, i32, i32
  }
}

module attributes {stable_mosaic.version = 11 : i64} {
  func.func @_linear_res_kernel(%arg0: i32, %arg1: memref<16x32xbf16, #tpu.memory_space<vmem>>, %arg2: memref<32x32xbf16, #tpu.memory_space<vmem>>, %arg3: memref<1x32xf32, #tpu.memory_space<vmem>>, %arg4: memref<16x32xf32, #tpu.memory_space<vmem>>, %arg5: memref<16x32xf32, #tpu.memory_space<vmem>>) attributes {dimension_semantics = [#tpu.dimension_semantics<parallel>], iteration_bounds = array<i64: 1>, scalar_prefetch = 0 : i64, scratch_operands = 0 : i64, tpu.core_type = #tpu.core_type<tc>, window_params = [{transform_indices = @transform_0, window_bounds = array<i64: 16, 32>}, {pipeline_mode = #tpu.pipeline_mode<synchronous>, transform_indices = @transform_1, window_bounds = array<i64: 32, 32>}, {pipeline_mode = #tpu.pipeline_mode<synchronous>, transform_indices = @transform_2, window_bounds = array<i64: 1, 32>}, {transform_indices = @transform_3, window_bounds = array<i64: 16, 32>}, {transform_indices = @transform_4, window_bounds = array<i64: 16, 32>}]} {
    %c0 = arith.constant 0 : index
    %c0_0 = arith.constant 0 : index
    %0 = vector.load %arg1[%c0, %c0_0] : memref<16x32xbf16, #tpu.memory_space<vmem>>, vector<16x32xbf16>
    %c0_1 = arith.constant 0 : index
    %c0_2 = arith.constant 0 : index
    %1 = vector.load %arg2[%c0_1, %c0_2] : memref<32x32xbf16, #tpu.memory_space<vmem>>, vector<32x32xbf16>
    %cst = arith.constant dense<0.000000e+00> : vector<16x32xf32>
    %2 = tpu.matmul %0, %1, %cst {dimension_numbers = #tpu.dot_dimension_numbers<[1], [0], [0], [1], [0, 0, 1, 1], [], []>} : vector<16x32xbf16>, vector<32x32xbf16>, vector<16x32xf32> -> vector<16x32xf32>
    %c0_3 = arith.constant 0 : index
    %c0_4 = arith.constant 0 : index
    %3 = vector.load %arg3[%c0_3, %c0_4] : memref<1x32xf32, #tpu.memory_space<vmem>>, vector<1x32xf32>
    %4 = vector.broadcast %3 : vector<1x32xf32> to vector<16x32xf32>
    %5 = arith.addf %2, %4 : vector<16x32xf32>
    %c0_5 = arith.constant 0 : index
    %c0_6 = arith.constant 0 : index
    %6 = vector.load %arg4[%c0_5, %c0_6] : memref<16x32xf32, #tpu.memory_space<vmem>>, vector<16x32xf32>
    %7 = arith.addf %5, %6 : vector<16x32xf32>
    %c0_7 = arith.constant 0 : index
    %c0_8 = arith.constant 0 : index
    %8 = vector.load %arg5[%c0_7, %c0_8] : memref<16x32xf32, #tpu.memory_space<vmem>>, vector<16x32xf32>
    tpu.vector_store %arg5[%c0_7, %c0_8], %7 {strides = array<i32>} : memref<16x32xf32, #tpu.memory_space<vmem>>, vector<16x32xf32>,
    return
  }
  func.func @transform_0(%arg0: i32) -> (i32, i32) {
    %c0_i32 = arith.constant 0 : i32
    %c0_i32_0 = arith.constant 0 : i32
    return %arg0, %c0_i32 : i32, i32
  }
  func.func @transform_1(%arg0: i32) -> (i32, i32) {
    %c0_i32 = arith.constant 0 : i32
    %c0_i32_0 = arith.constant 0 : i32
    %c0_i32_1 = arith.constant 0 : i32
    return %c0_i32, %c0_i32_0 : i32, i32
  }
  func.func @transform_2(%arg0: i32) -> (i32, i32) {
    %c0_i32 = arith.constant 0 : i32
    %c0_i32_0 = arith.constant 0 : i32
    %c0_i32_1 = arith.constant 0 : i32
    return %c0_i32, %c0_i32_0 : i32, i32
  }
  func.func @transform_3(%arg0: i32) -> (i32, i32) {
    %c0_i32 = arith.constant 0 : i32
    %c0_i32_0 = arith.constant 0 : i32
    return %arg0, %c0_i32 : i32, i32
  }
  func.func @transform_4(%arg0: i32) -> (i32, i32) {
    %c0_i32 = arith.constant 0 : i32
    %c0_i32_0 = arith.constant 0 : i32
    return %arg0, %c0_i32 : i32, i32
  }
}

module attributes {stable_mosaic.version = 11 : i64} {
  func.func @_ln_proj_kernel(%arg0: i32, %arg1: memref<16x32xf32, #tpu.memory_space<vmem>>, %arg2: memref<1x32xf32, #tpu.memory_space<vmem>>, %arg3: memref<1x32xf32, #tpu.memory_space<vmem>>, %arg4: memref<32x32xbf16, #tpu.memory_space<vmem>>, %arg5: memref<1x32xf32, #tpu.memory_space<vmem>>, %arg6: memref<16x32xbf16, #tpu.memory_space<vmem>>) attributes {dimension_semantics = [#tpu.dimension_semantics<parallel>], iteration_bounds = array<i64: 1>, scalar_prefetch = 0 : i64, scratch_operands = 0 : i64, tpu.core_type = #tpu.core_type<tc>, window_params = [{transform_indices = @transform_0, window_bounds = array<i64: 16, 32>}, {pipeline_mode = #tpu.pipeline_mode<synchronous>, transform_indices = @transform_1, window_bounds = array<i64: 1, 32>}, {pipeline_mode = #tpu.pipeline_mode<synchronous>, transform_indices = @transform_2, window_bounds = array<i64: 1, 32>}, {pipeline_mode = #tpu.pipeline_mode<synchronous>, transform_indices = @transform_3, window_bounds = array<i64: 32, 32>}, {pipeline_mode = #tpu.pipeline_mode<synchronous>, transform_indices = @transform_4, window_bounds = array<i64: 1, 32>}, {transform_indices = @transform_5, window_bounds = array<i64: 16, 32>}]} {
    %c0 = arith.constant 0 : index
    %c0_0 = arith.constant 0 : index
    %0 = vector.load %arg1[%c0, %c0_0] : memref<16x32xf32, #tpu.memory_space<vmem>>, vector<16x32xf32>
    %c0_1 = arith.constant 0 : index
    %c0_2 = arith.constant 0 : index
    %1 = vector.load %arg2[%c0_1, %c0_2] : memref<1x32xf32, #tpu.memory_space<vmem>>, vector<1x32xf32>
    %c0_3 = arith.constant 0 : index
    %c0_4 = arith.constant 0 : index
    %2 = vector.load %arg3[%c0_3, %c0_4] : memref<1x32xf32, #tpu.memory_space<vmem>>, vector<1x32xf32>
    %cst = arith.constant dense<0.000000e+00> : vector<16xf32>
    %3 = vector.multi_reduction <add>, %0, %cst [1] : vector<16x32xf32> to vector<16xf32>
    %4 = vector.shape_cast %3 : vector<16xf32> to vector<16x1xf32>
    %cst_5 = arith.constant 3.200000e+01 : f32
    %5 = vector.broadcast %cst_5 : f32 to vector<16x1xf32>
    %6 = arith.divf %4, %5 : vector<16x1xf32>
    %7 = vector.broadcast %6 : vector<16x1xf32> to vector<16x32xf32>
    %8 = arith.subf %0, %7 : vector<16x32xf32>
    %9 = arith.mulf %8, %8 : vector<16x32xf32>
    %cst_6 = arith.constant dense<0.000000e+00> : vector<16xf32>
    %10 = vector.multi_reduction <add>, %9, %cst_6 [1] : vector<16x32xf32> to vector<16xf32>
    %11 = vector.shape_cast %10 : vector<16xf32> to vector<16x1xf32>
    %cst_7 = arith.constant 0.0322580636 : f32
    %12 = vector.broadcast %cst_7 : f32 to vector<16x1xf32>
    %13 = arith.mulf %11, %12 : vector<16x1xf32>
    %14 = math.sqrt %13 : vector<16x1xf32>
    %cst_8 = arith.constant 9.99999997E-7 : f32
    %15 = vector.broadcast %cst_8 : f32 to vector<16x1xf32>
    %16 = arith.addf %14, %15 : vector<16x1xf32>
    %17 = tpu.reciprocal %16 {approx = true} : vector<16x1xf32> -> vector<16x1xf32>
    %18 = vector.broadcast %17 : vector<16x1xf32> to vector<16x32xf32>
    %19 = arith.mulf %8, %18 : vector<16x32xf32>
    %20 = vector.broadcast %1 : vector<1x32xf32> to vector<16x32xf32>
    %21 = arith.mulf %20, %19 : vector<16x32xf32>
    %22 = vector.broadcast %2 : vector<1x32xf32> to vector<16x32xf32>
    %23 = arith.addf %21, %22 : vector<16x32xf32>
    %24 = arith.truncf %23 : vector<16x32xf32> to vector<16x32xbf16>
    %c0_9 = arith.constant 0 : index
    %c0_10 = arith.constant 0 : index
    %25 = vector.load %arg4[%c0_9, %c0_10] : memref<32x32xbf16, #tpu.memory_space<vmem>>, vector<32x32xbf16>
    %cst_11 = arith.constant dense<0.000000e+00> : vector<16x32xf32>
    %26 = tpu.matmul %24, %25, %cst_11 {dimension_numbers = #tpu.dot_dimension_numbers<[1], [0], [0], [1], [0, 0, 1, 1], [], []>} : vector<16x32xbf16>, vector<32x32xbf16>, vector<16x32xf32> -> vector<16x32xf32>
    %c0_12 = arith.constant 0 : index
    %c0_13 = arith.constant 0 : index
    %27 = vector.load %arg5[%c0_12, %c0_13] : memref<1x32xf32, #tpu.memory_space<vmem>>, vector<1x32xf32>
    %28 = vector.broadcast %27 : vector<1x32xf32> to vector<16x32xf32>
    %29 = arith.addf %26, %28 : vector<16x32xf32>
    %30 = arith.truncf %29 : vector<16x32xf32> to vector<16x32xbf16>
    %c0_14 = arith.constant 0 : index
    %c0_15 = arith.constant 0 : index
    %31 = vector.load %arg6[%c0_14, %c0_15] : memref<16x32xbf16, #tpu.memory_space<vmem>>, vector<16x32xbf16>
    tpu.vector_store %arg6[%c0_14, %c0_15], %30 {strides = array<i32>} : memref<16x32xbf16, #tpu.memory_space<vmem>>, vector<16x32xbf16>,
    return
  }
  func.func @transform_0(%arg0: i32) -> (i32, i32) {
    %c0_i32 = arith.constant 0 : i32
    %c0_i32_0 = arith.constant 0 : i32
    return %arg0, %c0_i32 : i32, i32
  }
  func.func @transform_1(%arg0: i32) -> (i32, i32) {
    %c0_i32 = arith.constant 0 : i32
    %c0_i32_0 = arith.constant 0 : i32
    %c0_i32_1 = arith.constant 0 : i32
    return %c0_i32, %c0_i32_0 : i32, i32
  }
  func.func @transform_2(%arg0: i32) -> (i32, i32) {
    %c0_i32 = arith.constant 0 : i32
    %c0_i32_0 = arith.constant 0 : i32
    %c0_i32_1 = arith.constant 0 : i32
    return %c0_i32, %c0_i32_0 : i32, i32
  }
  func.func @transform_3(%arg0: i32) -> (i32, i32) {
    %c0_i32 = arith.constant 0 : i32
    %c0_i32_0 = arith.constant 0 : i32
    %c0_i32_1 = arith.constant 0 : i32
    return %c0_i32, %c0_i32_0 : i32, i32
  }
  func.func @transform_4(%arg0: i32) -> (i32, i32) {
    %c0_i32 = arith.constant 0 : i32
    %c0_i32_0 = arith.constant 0 : i32
    %c0_i32_1 = arith.constant 0 : i32
    return %c0_i32, %c0_i32_0 : i32, i32
  }
  func.func @transform_5(%arg0: i32) -> (i32, i32) {
    %c0_i32 = arith.constant 0 : i32
    %c0_i32_0 = arith.constant 0 : i32
    return %arg0, %c0_i32 : i32, i32
  }
}

module attributes {stable_mosaic.version = 11 : i64} {
  func.func @_proj_kernel(%arg0: i32, %arg1: memref<16x32xf32, #tpu.memory_space<vmem>>, %arg2: memref<32x32xbf16, #tpu.memory_space<vmem>>, %arg3: memref<1x32xf32, #tpu.memory_space<vmem>>, %arg4: memref<32x32xbf16, #tpu.memory_space<vmem>>, %arg5: memref<1x32xf32, #tpu.memory_space<vmem>>, %arg6: memref<16x32xbf16, #tpu.memory_space<vmem>>, %arg7: memref<16x32xbf16, #tpu.memory_space<vmem>>) attributes {dimension_semantics = [#tpu.dimension_semantics<parallel>], iteration_bounds = array<i64: 1>, scalar_prefetch = 0 : i64, scratch_operands = 0 : i64, tpu.core_type = #tpu.core_type<tc>, window_params = [{transform_indices = @transform_0, window_bounds = array<i64: 16, 32>}, {pipeline_mode = #tpu.pipeline_mode<synchronous>, transform_indices = @transform_1, window_bounds = array<i64: 32, 32>}, {pipeline_mode = #tpu.pipeline_mode<synchronous>, transform_indices = @transform_2, window_bounds = array<i64: 1, 32>}, {pipeline_mode = #tpu.pipeline_mode<synchronous>, transform_indices = @transform_3, window_bounds = array<i64: 32, 32>}, {pipeline_mode = #tpu.pipeline_mode<synchronous>, transform_indices = @transform_4, window_bounds = array<i64: 1, 32>}, {transform_indices = @transform_5, window_bounds = array<i64: 16, 32>}, {transform_indices = @transform_6, window_bounds = array<i64: 16, 32>}]} {
    %c0 = arith.constant 0 : index
    %c0_0 = arith.constant 0 : index
    %0 = vector.load %arg1[%c0, %c0_0] : memref<16x32xf32, #tpu.memory_space<vmem>>, vector<16x32xf32>
    %1 = arith.truncf %0 : vector<16x32xf32> to vector<16x32xbf16>
    %c0_1 = arith.constant 0 : index
    %c0_2 = arith.constant 0 : index
    %2 = vector.load %arg2[%c0_1, %c0_2] : memref<32x32xbf16, #tpu.memory_space<vmem>>, vector<32x32xbf16>
    %cst = arith.constant dense<0.000000e+00> : vector<16x32xf32>
    %3 = tpu.matmul %1, %2, %cst {dimension_numbers = #tpu.dot_dimension_numbers<[1], [0], [0], [1], [0, 0, 1, 1], [], []>} : vector<16x32xbf16>, vector<32x32xbf16>, vector<16x32xf32> -> vector<16x32xf32>
    %c0_3 = arith.constant 0 : index
    %c0_4 = arith.constant 0 : index
    %4 = vector.load %arg3[%c0_3, %c0_4] : memref<1x32xf32, #tpu.memory_space<vmem>>, vector<1x32xf32>
    %5 = vector.broadcast %4 : vector<1x32xf32> to vector<16x32xf32>
    %6 = arith.addf %3, %5 : vector<16x32xf32>
    %7 = arith.truncf %6 : vector<16x32xf32> to vector<16x32xbf16>
    %c0_5 = arith.constant 0 : index
    %c0_6 = arith.constant 0 : index
    %8 = vector.load %arg6[%c0_5, %c0_6] : memref<16x32xbf16, #tpu.memory_space<vmem>>, vector<16x32xbf16>
    tpu.vector_store %arg6[%c0_5, %c0_6], %7 {strides = array<i32>} : memref<16x32xbf16, #tpu.memory_space<vmem>>, vector<16x32xbf16>,
    %c0_7 = arith.constant 0 : index
    %c0_8 = arith.constant 0 : index
    %9 = vector.load %arg4[%c0_7, %c0_8] : memref<32x32xbf16, #tpu.memory_space<vmem>>, vector<32x32xbf16>
    %cst_9 = arith.constant dense<0.000000e+00> : vector<16x32xf32>
    %10 = tpu.matmul %1, %9, %cst_9 {dimension_numbers = #tpu.dot_dimension_numbers<[1], [0], [0], [1], [0, 0, 1, 1], [], []>} : vector<16x32xbf16>, vector<32x32xbf16>, vector<16x32xf32> -> vector<16x32xf32>
    %c0_10 = arith.constant 0 : index
    %c0_11 = arith.constant 0 : index
    %11 = vector.load %arg5[%c0_10, %c0_11] : memref<1x32xf32, #tpu.memory_space<vmem>>, vector<1x32xf32>
    %12 = vector.broadcast %11 : vector<1x32xf32> to vector<16x32xf32>
    %13 = arith.addf %10, %12 : vector<16x32xf32>
    %14 = arith.truncf %13 : vector<16x32xf32> to vector<16x32xbf16>
    %c0_12 = arith.constant 0 : index
    %c0_13 = arith.constant 0 : index
    %15 = vector.load %arg7[%c0_12, %c0_13] : memref<16x32xbf16, #tpu.memory_space<vmem>>, vector<16x32xbf16>
    tpu.vector_store %arg7[%c0_12, %c0_13], %14 {strides = array<i32>} : memref<16x32xbf16, #tpu.memory_space<vmem>>, vector<16x32xbf16>,
    return
  }
  func.func @transform_0(%arg0: i32) -> (i32, i32) {
    %c0_i32 = arith.constant 0 : i32
    %c0_i32_0 = arith.constant 0 : i32
    return %arg0, %c0_i32 : i32, i32
  }
  func.func @transform_1(%arg0: i32) -> (i32, i32) {
    %c0_i32 = arith.constant 0 : i32
    %c0_i32_0 = arith.constant 0 : i32
    %c0_i32_1 = arith.constant 0 : i32
    return %c0_i32, %c0_i32_0 : i32, i32
  }
  func.func @transform_2(%arg0: i32) -> (i32, i32) {
    %c0_i32 = arith.constant 0 : i32
    %c0_i32_0 = arith.constant 0 : i32
    %c0_i32_1 = arith.constant 0 : i32
    return %c0_i32, %c0_i32_0 : i32, i32
  }
  func.func @transform_3(%arg0: i32) -> (i32, i32) {
    %c0_i32 = arith.constant 0 : i32
    %c0_i32_0 = arith.constant 0 : i32
    %c0_i32_1 = arith.constant 0 : i32
    return %c0_i32, %c0_i32_0 : i32, i32
  }
  func.func @transform_4(%arg0: i32) -> (i32, i32) {
    %c0_i32 = arith.constant 0 : i32
    %c0_i32_0 = arith.constant 0 : i32
    %c0_i32_1 = arith.constant 0 : i32
    return %c0_i32, %c0_i32_0 : i32, i32
  }
  func.func @transform_5(%arg0: i32) -> (i32, i32) {
    %c0_i32 = arith.constant 0 : i32
    %c0_i32_0 = arith.constant 0 : i32
    return %arg0, %c0_i32 : i32, i32
  }
  func.func @transform_6(%arg0: i32) -> (i32, i32) {
    %c0_i32 = arith.constant 0 : i32
    %c0_i32_0 = arith.constant 0 : i32
    return %arg0, %c0_i32 : i32, i32
  }
}

module attributes {stable_mosaic.version = 11 : i64} {
  func.func @_attn_kernel(%arg0: i32, %arg1: i32, %arg2: i32, %arg3: i32, %arg4: memref<1x1x8xi8, #tpu.memory_space<vmem>>, %arg5: memref<1x8x32xbf16, #tpu.memory_space<vmem>>, %arg6: memref<1x8x32xbf16, #tpu.memory_space<vmem>>, %arg7: memref<1x8x32xbf16, #tpu.memory_space<vmem>>, %arg8: memref<1x8x32xbf16, #tpu.memory_space<vmem>>, %arg9: memref<4x8x1xf32, #tpu.memory_space<vmem>>, %arg10: memref<4x8x1xf32, #tpu.memory_space<vmem>>, %arg11: memref<8x32xf32, #tpu.memory_space<vmem>>) attributes {dimension_semantics = [#tpu.dimension_semantics<parallel>, #tpu.dimension_semantics<parallel>, #tpu.dimension_semantics<parallel>, #tpu.dimension_semantics<arbitrary>], iteration_bounds = array<i64: 2, 1, 1, 1>, scalar_prefetch = 0 : i64, scratch_operands = 3 : i64, tpu.core_type = #tpu.core_type<tc>, window_params = [{transform_indices = @transform_0, window_bounds = array<i64: 1, 1, 8>}, {transform_indices = @transform_1, window_bounds = array<i64: 1, 8, 32>}, {transform_indices = @transform_2, window_bounds = array<i64: 1, 8, 32>}, {transform_indices = @transform_3, window_bounds = array<i64: 1, 8, 32>}, {transform_indices = @transform_4, window_bounds = array<i64: 1, 8, 32>}]} {
    %c0_i32 = arith.constant 0 : i32
    %0 = arith.cmpi eq, %arg3, %c0_i32 : i32
    %1 = arith.extui %0 : i1 to i32
    %c0_i32_0 = arith.constant 0 : i32
    %2 = arith.cmpi ne, %1, %c0_i32_0 : i32
    scf.if %2 {
      %cst_93 = arith.constant 0xFF800000 : f32
      %167 = vector.broadcast %cst_93 : f32 to vector<4x8x1xf32>
      %c0_94 = arith.constant 0 : index
      %c0_95 = arith.constant 0 : index
      %c0_96 = arith.constant 0 : index
      %168 = vector.load %arg9[%c0_94, %c0_95, %c0_96] : memref<4x8x1xf32, #tpu.memory_space<vmem>>, vector<4x8x1xf32>
      tpu.vector_store %arg9[%c0_94, %c0_95, %c0_96], %167 {strides = array<i32>} : memref<4x8x1xf32, #tpu.memory_space<vmem>>, vector<4x8x1xf32>,
      %cst_97 = arith.constant 0.000000e+00 : f32
      %169 = vector.broadcast %cst_97 : f32 to vector<4x8x1xf32>
      %c0_98 = arith.constant 0 : index
      %c0_99 = arith.constant 0 : index
      %c0_100 = arith.constant 0 : index
      %170 = vector.load %arg10[%c0_98, %c0_99, %c0_100] : memref<4x8x1xf32, #tpu.memory_space<vmem>>, vector<4x8x1xf32>
      tpu.vector_store %arg10[%c0_98, %c0_99, %c0_100], %169 {strides = array<i32>} : memref<4x8x1xf32, #tpu.memory_space<vmem>>, vector<4x8x1xf32>,
      %cst_101 = arith.constant 0.000000e+00 : f32
      %171 = vector.broadcast %cst_101 : f32 to vector<8x32xf32>
      %c0_102 = arith.constant 0 : index
      %c0_103 = arith.constant 0 : index
      %172 = vector.load %arg11[%c0_102, %c0_103] : memref<8x32xf32, #tpu.memory_space<vmem>>, vector<8x32xf32>
      tpu.vector_store %arg11[%c0_102, %c0_103], %171 {strides = array<i32>} : memref<8x32xf32, #tpu.memory_space<vmem>>, vector<8x32xf32>,
    } else {
    }
    %c0 = arith.constant 0 : index
    %c0_1 = arith.constant 0 : index
    %c0_2 = arith.constant 0 : index
    %3 = vector.load %arg5[%c0, %c0_1, %c0_2] : memref<1x8x32xbf16, #tpu.memory_space<vmem>>, vector<1x8x32xbf16>
    %4 = vector.shape_cast %3 : vector<1x8x32xbf16> to vector<8x32xbf16>
    %cst = arith.constant 3.535160e-01 : bf16
    %5 = vector.broadcast %cst : bf16 to vector<8x32xbf16>
    %6 = arith.mulf %4, %5 : vector<8x32xbf16>
    %c0_3 = arith.constant 0 : index
    %c0_4 = arith.constant 0 : index
    %c0_5 = arith.constant 0 : index
    %7 = vector.load %arg6[%c0_3, %c0_4, %c0_5] : memref<1x8x32xbf16, #tpu.memory_space<vmem>>, vector<1x8x32xbf16>
    %8 = vector.shape_cast %7 : vector<1x8x32xbf16> to vector<8x32xbf16>
    %c0_6 = arith.constant 0 : index
    %c0_7 = arith.constant 0 : index
    %c0_8 = arith.constant 0 : index
    %9 = vector.load %arg7[%c0_6, %c0_7, %c0_8] : memref<1x8x32xbf16, #tpu.memory_space<vmem>>, vector<1x8x32xbf16>
    %10 = vector.shape_cast %9 : vector<1x8x32xbf16> to vector<8x32xbf16>
    %c0_9 = arith.constant 0 : index
    %c0_10 = arith.constant 0 : index
    %c0_11 = arith.constant 0 : index
    %11 = vector.load %arg4[%c0_9, %c0_10, %c0_11] : memref<1x1x8xi8, #tpu.memory_space<vmem>>, vector<1x1x8xi8>
    %12 = vector.shape_cast %11 : vector<1x1x8xi8> to vector<1x8xi8>
    %13 = arith.sitofp %12 : vector<1x8xi8> to vector<1x8xf32>
    %cst_12 = arith.constant 0.000000e+00 : f32
    %14 = vector.broadcast %cst_12 : f32 to vector<1x8xf32>
    %15 = arith.cmpf ole, %13, %14 : vector<1x8xf32>
    %16 = vector.extract_strided_slice %6 {offsets = [0, 0], sizes = [8, 8], strides = [1, 1]} : vector<8x32xbf16> to vector<8x8xbf16>
    %17 = vector.extract_strided_slice %8 {offsets = [0, 0], sizes = [8, 8], strides = [1, 1]} : vector<8x32xbf16> to vector<8x8xbf16>
    %cst_13 = arith.constant dense<0.000000e+00> : vector<8x8xf32>
    %18 = tpu.matmul %16, %17, %cst_13 {dimension_numbers = #tpu.dot_dimension_numbers<[1], [1], [0], [0], [0, 0, 1, 0], [], []>} : vector<8x8xbf16>, vector<8x8xbf16>, vector<8x8xf32> -> vector<8x8xf32>
    %cst_14 = arith.constant -1.000000e+09 : f32
    %19 = vector.shape_cast %15 : vector<1x8xi1> to vector<1x8xi1>
    %20 = vector.broadcast %19 : vector<1x8xi1> to vector<8x8xi1>
    %21 = vector.broadcast %cst_14 : f32 to vector<8x8xf32>
    %22 = arith.select %20, %21, %18 : vector<8x8xi1>, vector<8x8xf32>
    %c0_15 = arith.constant 0 : index
    %c0_16 = arith.constant 0 : index
    %c0_17 = arith.constant 0 : index
    %23 = vector.load %arg9[%c0_15, %c0_16, %c0_17] : memref<4x8x1xf32, #tpu.memory_space<vmem>>, vector<1x8x1xf32>
    %24 = vector.shape_cast %23 : vector<1x8x1xf32> to vector<8x1xf32>
    %cst_18 = arith.constant dense<0xFF800000> : vector<8xf32>
    %25 = vector.multi_reduction <maximumf>, %22, %cst_18 [1] : vector<8x8xf32> to vector<8xf32>
    %26 = vector.shape_cast %25 : vector<8xf32> to vector<8x1xf32>
    %27 = arith.maximumf %24, %26 : vector<8x1xf32>
    %28 = arith.subf %24, %27 : vector<8x1xf32>
    %29 = math.exp %28 : vector<8x1xf32>
    %30 = vector.broadcast %27 : vector<8x1xf32> to vector<8x8xf32>
    %31 = arith.subf %22, %30 : vector<8x8xf32>
    %32 = math.exp %31 : vector<8x8xf32>
    %c0_19 = arith.constant 0 : index
    %c0_20 = arith.constant 0 : index
    %c0_21 = arith.constant 0 : index
    %33 = vector.load %arg10[%c0_19, %c0_20, %c0_21] : memref<4x8x1xf32, #tpu.memory_space<vmem>>, vector<1x8x1xf32>
    %34 = vector.shape_cast %33 : vector<1x8x1xf32> to vector<8x1xf32>
    %35 = arith.mulf %29, %34 : vector<8x1xf32>
    %cst_22 = arith.constant dense<0.000000e+00> : vector<8xf32>
    %36 = vector.multi_reduction <add>, %32, %cst_22 [1] : vector<8x8xf32> to vector<8xf32>
    %37 = vector.shape_cast %36 : vector<8xf32> to vector<8x1xf32>
    %38 = arith.addf %35, %37 : vector<8x1xf32>
    %c0_23 = arith.constant 0 : index
    %c0_24 = arith.constant 0 : index
    %c0_25 = arith.constant 0 : index
    %39 = vector.load %arg10[%c0_23, %c0_24, %c0_25] : memref<4x8x1xf32, #tpu.memory_space<vmem>>, vector<1x8x1xf32>
    %40 = vector.shape_cast %39 : vector<1x8x1xf32> to vector<8x1xf32>
    %41 = vector.shape_cast %38 : vector<8x1xf32> to vector<1x8x1xf32>
    tpu.vector_store %arg10[%c0_23, %c0_24, %c0_25], %41 {strides = array<i32>} : memref<4x8x1xf32, #tpu.memory_space<vmem>>, vector<1x8x1xf32>,
    %c0_26 = arith.constant 0 : index
    %c0_27 = arith.constant 0 : index
    %42 = vector.load %arg11[%c0_26, %c0_27] : memref<8x32xf32, #tpu.memory_space<vmem>>, vector<8x8xf32>
    %43 = vector.broadcast %29 : vector<8x1xf32> to vector<8x8xf32>
    %44 = arith.mulf %43, %42 : vector<8x8xf32>
    %45 = arith.truncf %32 : vector<8x8xf32> to vector<8x8xbf16>
    %46 = vector.extract_strided_slice %10 {offsets = [0, 0], sizes = [8, 8], strides = [1, 1]} : vector<8x32xbf16> to vector<8x8xbf16>
    %cst_28 = arith.constant dense<0.000000e+00> : vector<8x8xf32>
    %47 = tpu.matmul %45, %46, %cst_28 {dimension_numbers = #tpu.dot_dimension_numbers<[1], [0], [0], [1], [0, 0, 1, 1], [], []>} : vector<8x8xbf16>, vector<8x8xbf16>, vector<8x8xf32> -> vector<8x8xf32>
    %48 = arith.addf %44, %47 : vector<8x8xf32>
    %c0_29 = arith.constant 0 : index
    %c0_30 = arith.constant 0 : index
    %49 = vector.load %arg11[%c0_29, %c0_30] : memref<8x32xf32, #tpu.memory_space<vmem>>, vector<8x8xf32>
    tpu.vector_store %arg11[%c0_29, %c0_30], %48 {strides = array<i32>} : memref<8x32xf32, #tpu.memory_space<vmem>>, vector<8x8xf32>,
    %c0_31 = arith.constant 0 : index
    %c0_32 = arith.constant 0 : index
    %c0_33 = arith.constant 0 : index
    %50 = vector.load %arg9[%c0_31, %c0_32, %c0_33] : memref<4x8x1xf32, #tpu.memory_space<vmem>>, vector<1x8x1xf32>
    %51 = vector.shape_cast %50 : vector<1x8x1xf32> to vector<8x1xf32>
    %52 = vector.shape_cast %27 : vector<8x1xf32> to vector<1x8x1xf32>
    tpu.vector_store %arg9[%c0_31, %c0_32, %c0_33], %52 {strides = array<i32>} : memref<4x8x1xf32, #tpu.memory_space<vmem>>, vector<1x8x1xf32>,
    %53 = vector.extract_strided_slice %6 {offsets = [0, 8], sizes = [8, 8], strides = [1, 1]} : vector<8x32xbf16> to vector<8x8xbf16>
    %54 = vector.extract_strided_slice %8 {offsets = [0, 8], sizes = [8, 8], strides = [1, 1]} : vector<8x32xbf16> to vector<8x8xbf16>
    %cst_34 = arith.constant dense<0.000000e+00> : vector<8x8xf32>
    %55 = tpu.matmul %53, %54, %cst_34 {dimension_numbers = #tpu.dot_dimension_numbers<[1], [1], [0], [0], [0, 0, 1, 0], [], []>} : vector<8x8xbf16>, vector<8x8xbf16>, vector<8x8xf32> -> vector<8x8xf32>
    %cst_35 = arith.constant -1.000000e+09 : f32
    %56 = vector.shape_cast %15 : vector<1x8xi1> to vector<1x8xi1>
    %57 = vector.broadcast %56 : vector<1x8xi1> to vector<8x8xi1>
    %58 = vector.broadcast %cst_35 : f32 to vector<8x8xf32>
    %59 = arith.select %57, %58, %55 : vector<8x8xi1>, vector<8x8xf32>
    %c1 = arith.constant 1 : index
    %c0_36 = arith.constant 0 : index
    %c0_37 = arith.constant 0 : index
    %60 = vector.load %arg9[%c1, %c0_36, %c0_37] : memref<4x8x1xf32, #tpu.memory_space<vmem>>, vector<1x8x1xf32>
    %61 = vector.shape_cast %60 : vector<1x8x1xf32> to vector<8x1xf32>
    %cst_38 = arith.constant dense<0xFF800000> : vector<8xf32>
    %62 = vector.multi_reduction <maximumf>, %59, %cst_38 [1] : vector<8x8xf32> to vector<8xf32>
    %63 = vector.shape_cast %62 : vector<8xf32> to vector<8x1xf32>
    %64 = arith.maximumf %61, %63 : vector<8x1xf32>
    %65 = arith.subf %61, %64 : vector<8x1xf32>
    %66 = math.exp %65 : vector<8x1xf32>
    %67 = vector.broadcast %64 : vector<8x1xf32> to vector<8x8xf32>
    %68 = arith.subf %59, %67 : vector<8x8xf32>
    %69 = math.exp %68 : vector<8x8xf32>
    %c1_39 = arith.constant 1 : index
    %c0_40 = arith.constant 0 : index
    %c0_41 = arith.constant 0 : index
    %70 = vector.load %arg10[%c1_39, %c0_40, %c0_41] : memref<4x8x1xf32, #tpu.memory_space<vmem>>, vector<1x8x1xf32>
    %71 = vector.shape_cast %70 : vector<1x8x1xf32> to vector<8x1xf32>
    %72 = arith.mulf %66, %71 : vector<8x1xf32>
    %cst_42 = arith.constant dense<0.000000e+00> : vector<8xf32>
    %73 = vector.multi_reduction <add>, %69, %cst_42 [1] : vector<8x8xf32> to vector<8xf32>
    %74 = vector.shape_cast %73 : vector<8xf32> to vector<8x1xf32>
    %75 = arith.addf %72, %74 : vector<8x1xf32>
    %c1_43 = arith.constant 1 : index
    %c0_44 = arith.constant 0 : index
    %c0_45 = arith.constant 0 : index
    %76 = vector.load %arg10[%c1_43, %c0_44, %c0_45] : memref<4x8x1xf32, #tpu.memory_space<vmem>>, vector<1x8x1xf32>
    %77 = vector.shape_cast %76 : vector<1x8x1xf32> to vector<8x1xf32>
    %78 = vector.shape_cast %75 : vector<8x1xf32> to vector<1x8x1xf32>
    tpu.vector_store %arg10[%c1_43, %c0_44, %c0_45], %78 {strides = array<i32>} : memref<4x8x1xf32, #tpu.memory_space<vmem>>, vector<1x8x1xf32>,
    %c0_46 = arith.constant 0 : index
    %c8 = arith.constant 8 : index
    %79 = vector.load %arg11[%c0_46, %c8] : memref<8x32xf32, #tpu.memory_space<vmem>>, vector<8x8xf32>
    %80 = vector.broadcast %66 : vector<8x1xf32> to vector<8x8xf32>
    %81 = arith.mulf %80, %79 : vector<8x8xf32>
    %82 = arith.truncf %69 : vector<8x8xf32> to vector<8x8xbf16>
    %83 = vector.extract_strided_slice %10 {offsets = [0, 8], sizes = [8, 8], strides = [1, 1]} : vector<8x32xbf16> to vector<8x8xbf16>
    %cst_47 = arith.constant dense<0.000000e+00> : vector<8x8xf32>
    %84 = tpu.matmul %82, %83, %cst_47 {dimension_numbers = #tpu.dot_dimension_numbers<[1], [0], [0], [1], [0, 0, 1, 1], [], []>} : vector<8x8xbf16>, vector<8x8xbf16>, vector<8x8xf32> -> vector<8x8xf32>
    %85 = arith.addf %81, %84 : vector<8x8xf32>
    %c0_48 = arith.constant 0 : index
    %c8_49 = arith.constant 8 : index
    %86 = vector.load %arg11[%c0_48, %c8_49] : memref<8x32xf32, #tpu.memory_space<vmem>>, vector<8x8xf32>
    tpu.vector_store %arg11[%c0_48, %c8_49], %85 {strides = array<i32>} : memref<8x32xf32, #tpu.memory_space<vmem>>, vector<8x8xf32>,
    %c1_50 = arith.constant 1 : index
    %c0_51 = arith.constant 0 : index
    %c0_52 = arith.constant 0 : index
    %87 = vector.load %arg9[%c1_50, %c0_51, %c0_52] : memref<4x8x1xf32, #tpu.memory_space<vmem>>, vector<1x8x1xf32>
    %88 = vector.shape_cast %87 : vector<1x8x1xf32> to vector<8x1xf32>
    %89 = vector.shape_cast %64 : vector<8x1xf32> to vector<1x8x1xf32>
    tpu.vector_store %arg9[%c1_50, %c0_51, %c0_52], %89 {strides = array<i32>} : memref<4x8x1xf32, #tpu.memory_space<vmem>>, vector<1x8x1xf32>,
    %90 = vector.extract_strided_slice %6 {offsets = [0, 16], sizes = [8, 8], strides = [1, 1]} : vector<8x32xbf16> to vector<8x8xbf16>
    %91 = vector.extract_strided_slice %8 {offsets = [0, 16], sizes = [8, 8], strides = [1, 1]} : vector<8x32xbf16> to vector<8x8xbf16>
    %cst_53 = arith.constant dense<0.000000e+00> : vector<8x8xf32>
    %92 = tpu.matmul %90, %91, %cst_53 {dimension_numbers = #tpu.dot_dimension_numbers<[1], [1], [0], [0], [0, 0, 1, 0], [], []>} : vector<8x8xbf16>, vector<8x8xbf16>, vector<8x8xf32> -> vector<8x8xf32>
    %cst_54 = arith.constant -1.000000e+09 : f32
    %93 = vector.shape_cast %15 : vector<1x8xi1> to vector<1x8xi1>
    %94 = vector.broadcast %93 : vector<1x8xi1> to vector<8x8xi1>
    %95 = vector.broadcast %cst_54 : f32 to vector<8x8xf32>
    %96 = arith.select %94, %95, %92 : vector<8x8xi1>, vector<8x8xf32>
    %c2 = arith.constant 2 : index
    %c0_55 = arith.constant 0 : index
    %c0_56 = arith.constant 0 : index
    %97 = vector.load %arg9[%c2, %c0_55, %c0_56] : memref<4x8x1xf32, #tpu.memory_space<vmem>>, vector<1x8x1xf32>
    %98 = vector.shape_cast %97 : vector<1x8x1xf32> to vector<8x1xf32>
    %cst_57 = arith.constant dense<0xFF800000> : vector<8xf32>
    %99 = vector.multi_reduction <maximumf>, %96, %cst_57 [1] : vector<8x8xf32> to vector<8xf32>
    %100 = vector.shape_cast %99 : vector<8xf32> to vector<8x1xf32>
    %101 = arith.maximumf %98, %100 : vector<8x1xf32>
    %102 = arith.subf %98, %101 : vector<8x1xf32>
    %103 = math.exp %102 : vector<8x1xf32>
    %104 = vector.broadcast %101 : vector<8x1xf32> to vector<8x8xf32>
    %105 = arith.subf %96, %104 : vector<8x8xf32>
    %106 = math.exp %105 : vector<8x8xf32>
    %c2_58 = arith.constant 2 : index
    %c0_59 = arith.constant 0 : index
    %c0_60 = arith.constant 0 : index
    %107 = vector.load %arg10[%c2_58, %c0_59, %c0_60] : memref<4x8x1xf32, #tpu.memory_space<vmem>>, vector<1x8x1xf32>
    %108 = vector.shape_cast %107 : vector<1x8x1xf32> to vector<8x1xf32>
    %109 = arith.mulf %103, %108 : vector<8x1xf32>
    %cst_61 = arith.constant dense<0.000000e+00> : vector<8xf32>
    %110 = vector.multi_reduction <add>, %106, %cst_61 [1] : vector<8x8xf32> to vector<8xf32>
    %111 = vector.shape_cast %110 : vector<8xf32> to vector<8x1xf32>
    %112 = arith.addf %109, %111 : vector<8x1xf32>
    %c2_62 = arith.constant 2 : index
    %c0_63 = arith.constant 0 : index
    %c0_64 = arith.constant 0 : index
    %113 = vector.load %arg10[%c2_62, %c0_63, %c0_64] : memref<4x8x1xf32, #tpu.memory_space<vmem>>, vector<1x8x1xf32>
    %114 = vector.shape_cast %113 : vector<1x8x1xf32> to vector<8x1xf32>
    %115 = vector.shape_cast %112 : vector<8x1xf32> to vector<1x8x1xf32>
    tpu.vector_store %arg10[%c2_62, %c0_63, %c0_64], %115 {strides = array<i32>} : memref<4x8x1xf32, #tpu.memory_space<vmem>>, vector<1x8x1xf32>,
    %c0_65 = arith.constant 0 : index
    %c16 = arith.constant 16 : index
    %116 = vector.load %arg11[%c0_65, %c16] : memref<8x32xf32, #tpu.memory_space<vmem>>, vector<8x8xf32>
    %117 = vector.broadcast %103 : vector<8x1xf32> to vector<8x8xf32>
    %118 = arith.mulf %117, %116 : vector<8x8xf32>
    %119 = arith.truncf %106 : vector<8x8xf32> to vector<8x8xbf16>
    %120 = vector.extract_strided_slice %10 {offsets = [0, 16], sizes = [8, 8], strides = [1, 1]} : vector<8x32xbf16> to vector<8x8xbf16>
    %cst_66 = arith.constant dense<0.000000e+00> : vector<8x8xf32>
    %121 = tpu.matmul %119, %120, %cst_66 {dimension_numbers = #tpu.dot_dimension_numbers<[1], [0], [0], [1], [0, 0, 1, 1], [], []>} : vector<8x8xbf16>, vector<8x8xbf16>, vector<8x8xf32> -> vector<8x8xf32>
    %122 = arith.addf %118, %121 : vector<8x8xf32>
    %c0_67 = arith.constant 0 : index
    %c16_68 = arith.constant 16 : index
    %123 = vector.load %arg11[%c0_67, %c16_68] : memref<8x32xf32, #tpu.memory_space<vmem>>, vector<8x8xf32>
    tpu.vector_store %arg11[%c0_67, %c16_68], %122 {strides = array<i32>} : memref<8x32xf32, #tpu.memory_space<vmem>>, vector<8x8xf32>,
    %c2_69 = arith.constant 2 : index
    %c0_70 = arith.constant 0 : index
    %c0_71 = arith.constant 0 : index
    %124 = vector.load %arg9[%c2_69, %c0_70, %c0_71] : memref<4x8x1xf32, #tpu.memory_space<vmem>>, vector<1x8x1xf32>
    %125 = vector.shape_cast %124 : vector<1x8x1xf32> to vector<8x1xf32>
    %126 = vector.shape_cast %101 : vector<8x1xf32> to vector<1x8x1xf32>
    tpu.vector_store %arg9[%c2_69, %c0_70, %c0_71], %126 {strides = array<i32>} : memref<4x8x1xf32, #tpu.memory_space<vmem>>, vector<1x8x1xf32>,
    %127 = vector.extract_strided_slice %6 {offsets = [0, 24], sizes = [8, 8], strides = [1, 1]} : vector<8x32xbf16> to vector<8x8xbf16>
    %128 = vector.extract_strided_slice %8 {offsets = [0, 24], sizes = [8, 8], strides = [1, 1]} : vector<8x32xbf16> to vector<8x8xbf16>
    %cst_72 = arith.constant dense<0.000000e+00> : vector<8x8xf32>
    %129 = tpu.matmul %127, %128, %cst_72 {dimension_numbers = #tpu.dot_dimension_numbers<[1], [1], [0], [0], [0, 0, 1, 0], [], []>} : vector<8x8xbf16>, vector<8x8xbf16>, vector<8x8xf32> -> vector<8x8xf32>
    %cst_73 = arith.constant -1.000000e+09 : f32
    %130 = vector.shape_cast %15 : vector<1x8xi1> to vector<1x8xi1>
    %131 = vector.broadcast %130 : vector<1x8xi1> to vector<8x8xi1>
    %132 = vector.broadcast %cst_73 : f32 to vector<8x8xf32>
    %133 = arith.select %131, %132, %129 : vector<8x8xi1>, vector<8x8xf32>
    %c3 = arith.constant 3 : index
    %c0_74 = arith.constant 0 : index
    %c0_75 = arith.constant 0 : index
    %134 = vector.load %arg9[%c3, %c0_74, %c0_75] : memref<4x8x1xf32, #tpu.memory_space<vmem>>, vector<1x8x1xf32>
    %135 = vector.shape_cast %134 : vector<1x8x1xf32> to vector<8x1xf32>
    %cst_76 = arith.constant dense<0xFF800000> : vector<8xf32>
    %136 = vector.multi_reduction <maximumf>, %133, %cst_76 [1] : vector<8x8xf32> to vector<8xf32>
    %137 = vector.shape_cast %136 : vector<8xf32> to vector<8x1xf32>
    %138 = arith.maximumf %135, %137 : vector<8x1xf32>
    %139 = arith.subf %135, %138 : vector<8x1xf32>
    %140 = math.exp %139 : vector<8x1xf32>
    %141 = vector.broadcast %138 : vector<8x1xf32> to vector<8x8xf32>
    %142 = arith.subf %133, %141 : vector<8x8xf32>
    %143 = math.exp %142 : vector<8x8xf32>
    %c3_77 = arith.constant 3 : index
    %c0_78 = arith.constant 0 : index
    %c0_79 = arith.constant 0 : index
    %144 = vector.load %arg10[%c3_77, %c0_78, %c0_79] : memref<4x8x1xf32, #tpu.memory_space<vmem>>, vector<1x8x1xf32>
    %145 = vector.shape_cast %144 : vector<1x8x1xf32> to vector<8x1xf32>
    %146 = arith.mulf %140, %145 : vector<8x1xf32>
    %cst_80 = arith.constant dense<0.000000e+00> : vector<8xf32>
    %147 = vector.multi_reduction <add>, %143, %cst_80 [1] : vector<8x8xf32> to vector<8xf32>
    %148 = vector.shape_cast %147 : vector<8xf32> to vector<8x1xf32>
    %149 = arith.addf %146, %148 : vector<8x1xf32>
    %c3_81 = arith.constant 3 : index
    %c0_82 = arith.constant 0 : index
    %c0_83 = arith.constant 0 : index
    %150 = vector.load %arg10[%c3_81, %c0_82, %c0_83] : memref<4x8x1xf32, #tpu.memory_space<vmem>>, vector<1x8x1xf32>
    %151 = vector.shape_cast %150 : vector<1x8x1xf32> to vector<8x1xf32>
    %152 = vector.shape_cast %149 : vector<8x1xf32> to vector<1x8x1xf32>
    tpu.vector_store %arg10[%c3_81, %c0_82, %c0_83], %152 {strides = array<i32>} : memref<4x8x1xf32, #tpu.memory_space<vmem>>, vector<1x8x1xf32>,
    %c0_84 = arith.constant 0 : index
    %c24 = arith.constant 24 : index
    %153 = vector.load %arg11[%c0_84, %c24] : memref<8x32xf32, #tpu.memory_space<vmem>>, vector<8x8xf32>
    %154 = vector.broadcast %140 : vector<8x1xf32> to vector<8x8xf32>
    %155 = arith.mulf %154, %153 : vector<8x8xf32>
    %156 = arith.truncf %143 : vector<8x8xf32> to vector<8x8xbf16>
    %157 = vector.extract_strided_slice %10 {offsets = [0, 24], sizes = [8, 8], strides = [1, 1]} : vector<8x32xbf16> to vector<8x8xbf16>
    %cst_85 = arith.constant dense<0.000000e+00> : vector<8x8xf32>
    %158 = tpu.matmul %156, %157, %cst_85 {dimension_numbers = #tpu.dot_dimension_numbers<[1], [0], [0], [1], [0, 0, 1, 1], [], []>} : vector<8x8xbf16>, vector<8x8xbf16>, vector<8x8xf32> -> vector<8x8xf32>
    %159 = arith.addf %155, %158 : vector<8x8xf32>
    %c0_86 = arith.constant 0 : index
    %c24_87 = arith.constant 24 : index
    %160 = vector.load %arg11[%c0_86, %c24_87] : memref<8x32xf32, #tpu.memory_space<vmem>>, vector<8x8xf32>
    tpu.vector_store %arg11[%c0_86, %c24_87], %159 {strides = array<i32>} : memref<8x32xf32, #tpu.memory_space<vmem>>, vector<8x8xf32>,
    %c3_88 = arith.constant 3 : index
    %c0_89 = arith.constant 0 : index
    %c0_90 = arith.constant 0 : index
    %161 = vector.load %arg9[%c3_88, %c0_89, %c0_90] : memref<4x8x1xf32, #tpu.memory_space<vmem>>, vector<1x8x1xf32>
    %162 = vector.shape_cast %161 : vector<1x8x1xf32> to vector<8x1xf32>
    %163 = vector.shape_cast %138 : vector<8x1xf32> to vector<1x8x1xf32>
    tpu.vector_store %arg9[%c3_88, %c0_89, %c0_90], %163 {strides = array<i32>} : memref<4x8x1xf32, #tpu.memory_space<vmem>>, vector<1x8x1xf32>,
    %c0_i32_91 = arith.constant 0 : i32
    %164 = arith.cmpi eq, %arg3, %c0_i32_91 : i32
    %165 = arith.extui %164 : i1 to i32
    %c0_i32_92 = arith.constant 0 : i32
    %166 = arith.cmpi ne, %165, %c0_i32_92 : i32
    scf.if %166 {
      %c0_93 = arith.constant 0 : index
      %c0_94 = arith.constant 0 : index
      %167 = vector.load %arg11[%c0_93, %c0_94] : memref<8x32xf32, #tpu.memory_space<vmem>>, vector<8x8xf32>
      %c0_95 = arith.constant 0 : index
      %c0_96 = arith.constant 0 : index
      %c0_97 = arith.constant 0 : index
      %168 = vector.load %arg10[%c0_95, %c0_96, %c0_97] : memref<4x8x1xf32, #tpu.memory_space<vmem>>, vector<1x8x1xf32>
      %169 = vector.shape_cast %168 : vector<1x8x1xf32> to vector<8x1xf32>
      %170 = tpu.reciprocal %169 {approx = true} : vector<8x1xf32> -> vector<8x1xf32>
      %171 = vector.broadcast %170 : vector<8x1xf32> to vector<8x8xf32>
      %172 = arith.mulf %167, %171 : vector<8x8xf32>
      %c0_98 = arith.constant 0 : index
      %c8_99 = arith.constant 8 : index
      %173 = vector.load %arg11[%c0_98, %c8_99] : memref<8x32xf32, #tpu.memory_space<vmem>>, vector<8x8xf32>
      %c1_100 = arith.constant 1 : index
      %c0_101 = arith.constant 0 : index
      %c0_102 = arith.constant 0 : index
      %174 = vector.load %arg10[%c1_100, %c0_101, %c0_102] : memref<4x8x1xf32, #tpu.memory_space<vmem>>, vector<1x8x1xf32>
      %175 = vector.shape_cast %174 : vector<1x8x1xf32> to vector<8x1xf32>
      %176 = tpu.reciprocal %175 {approx = true} : vector<8x1xf32> -> vector<8x1xf32>
      %177 = vector.broadcast %176 : vector<8x1xf32> to vector<8x8xf32>
      %178 = arith.mulf %173, %177 : vector<8x8xf32>
      %c0_103 = arith.constant 0 : index
      %c16_104 = arith.constant 16 : index
      %179 = vector.load %arg11[%c0_103, %c16_104] : memref<8x32xf32, #tpu.memory_space<vmem>>, vector<8x8xf32>
      %c2_105 = arith.constant 2 : index
      %c0_106 = arith.constant 0 : index
      %c0_107 = arith.constant 0 : index
      %180 = vector.load %arg10[%c2_105, %c0_106, %c0_107] : memref<4x8x1xf32, #tpu.memory_space<vmem>>, vector<1x8x1xf32>
      %181 = vector.shape_cast %180 : vector<1x8x1xf32> to vector<8x1xf32>
      %182 = tpu.reciprocal %181 {approx = true} : vector<8x1xf32> -> vector<8x1xf32>
      %183 = vector.broadcast %182 : vector<8x1xf32> to vector<8x8xf32>
      %184 = arith.mulf %179, %183 : vector<8x8xf32>
      %c0_108 = arith.constant 0 : index
      %c24_109 = arith.constant 24 : index
      %185 = vector.load %arg11[%c0_108, %c24_109] : memref<8x32xf32, #tpu.memory_space<vmem>>, vector<8x8xf32>
      %c3_110 = arith.constant 3 : index
      %c0_111 = arith.constant 0 : index
      %c0_112 = arith.constant 0 : index
      %186 = vector.load %arg10[%c3_110, %c0_111, %c0_112] : memref<4x8x1xf32, #tpu.memory_space<vmem>>, vector<1x8x1xf32>
      %187 = vector.shape_cast %186 : vector<1x8x1xf32> to vector<8x1xf32>
      %188 = tpu.reciprocal %187 {approx = true} : vector<8x1xf32> -> vector<8x1xf32>
      %189 = vector.broadcast %188 : vector<8x1xf32> to vector<8x8xf32>
      %190 = arith.mulf %185, %189 : vector<8x8xf32>
      %191 = tpu.concatenate %172, %178, %184, %190 in 1 : vector<8x8xf32>, vector<8x8xf32>, vector<8x8xf32>, vector<8x8xf32> -> vector<8x32xf32>
      %192 = arith.truncf %191 : vector<8x32xf32> to vector<8x32xbf16>
      %c0_113 = arith.constant 0 : index
      %c0_114 = arith.constant 0 : index
      %c0_115 = arith.constant 0 : index
      %193 = vector.load %arg8[%c0_113, %c0_114, %c0_115] : memref<1x8x32xbf16, #tpu.memory_space<vmem>>, vector<1x8x32xbf16>
      %194 = vector.shape_cast %193 : vector<1x8x32xbf16> to vector<8x32xbf16>
      %195 = vector.shape_cast %192 : vector<8x32xbf16> to vector<1x8x32xbf16>
      tpu.vector_store %arg8[%c0_113, %c0_114, %c0_115], %195 {strides = array<i32>} : memref<1x8x32xbf16, #tpu.memory_space<vmem>>, vector<1x8x32xbf16>,
    } else {
    }
    return
  }
  func.func @transform_0(%arg0: i32, %arg1: i32, %arg2: i32, %arg3: i32) -> (i32, i32, i32) {
    %c0_i32 = arith.constant 0 : i32
    %c0_i32_0 = arith.constant 0 : i32
    return %arg0, %c0_i32, %arg3 : i32, i32, i32
  }
  func.func @transform_1(%arg0: i32, %arg1: i32, %arg2: i32, %arg3: i32) -> (i32, i32, i32) {
    %c0_i32 = arith.constant 0 : i32
    return %arg0, %arg1, %arg2 : i32, i32, i32
  }
  func.func @transform_2(%arg0: i32, %arg1: i32, %arg2: i32, %arg3: i32) -> (i32, i32, i32) {
    %c0_i32 = arith.constant 0 : i32
    return %arg0, %arg3, %arg2 : i32, i32, i32
  }
  func.func @transform_3(%arg0: i32, %arg1: i32, %arg2: i32, %arg3: i32) -> (i32, i32, i32) {
    %c0_i32 = arith.constant 0 : i32
    return %arg0, %arg3, %arg2 : i32, i32, i32
  }
  func.func @transform_4(%arg0: i32, %arg1: i32, %arg2: i32, %arg3: i32) -> (i32, i32, i32) {
    %c0_i32 = arith.constant 0 : i32
    return %arg0, %arg1, %arg2 : i32, i32, i32
  }
}

module attributes {stable_mosaic.version = 11 : i64} {
  func.func @_ln_ffn_res_kernel(%arg0: i32, %arg1: i32, %arg2: memref<16x32xf32, #tpu.memory_space<vmem>>, %arg3: memref<1x32xf32, #tpu.memory_space<vmem>>, %arg4: memref<1x32xf32, #tpu.memory_space<vmem>>, %arg5: memref<32x64xbf16, #tpu.memory_space<vmem>>, %arg6: memref<1x64xf32, #tpu.memory_space<vmem>>, %arg7: memref<64x32xbf16, #tpu.memory_space<vmem>>, %arg8: memref<1x32xf32, #tpu.memory_space<vmem>>, %arg9: memref<16x32xf32, #tpu.memory_space<vmem>>, %arg10: memref<16x32xf32, #tpu.memory_space<vmem>>, %arg11: memref<16x32xbf16, #tpu.memory_space<vmem>>) attributes {dimension_semantics = [#tpu.dimension_semantics<parallel>, #tpu.dimension_semantics<arbitrary>], iteration_bounds = array<i64: 1, 1>, scalar_prefetch = 0 : i64, scratch_operands = 2 : i64, tpu.core_type = #tpu.core_type<tc>, window_params = [{transform_indices = @transform_0, window_bounds = array<i64: 16, 32>}, {pipeline_mode = #tpu.pipeline_mode<synchronous>, transform_indices = @transform_1, window_bounds = array<i64: 1, 32>}, {pipeline_mode = #tpu.pipeline_mode<synchronous>, transform_indices = @transform_2, window_bounds = array<i64: 1, 32>}, {transform_indices = @transform_3, window_bounds = array<i64: 32, 64>}, {transform_indices = @transform_4, window_bounds = array<i64: 1, 64>}, {transform_indices = @transform_5, window_bounds = array<i64: 64, 32>}, {pipeline_mode = #tpu.pipeline_mode<synchronous>, transform_indices = @transform_6, window_bounds = array<i64: 1, 32>}, {transform_indices = @transform_7, window_bounds = array<i64: 16, 32>}]} {
    %c0_i32 = arith.constant 0 : i32
    %0 = arith.cmpi eq, %arg1, %c0_i32 : i32
    %1 = arith.extui %0 : i1 to i32
    %c0_i32_0 = arith.constant 0 : i32
    %2 = arith.cmpi ne, %1, %c0_i32_0 : i32
    scf.if %2 {
      %c0_16 = arith.constant 0 : index
      %c0_17 = arith.constant 0 : index
      %20 = vector.load %arg2[%c0_16, %c0_17] : memref<16x32xf32, #tpu.memory_space<vmem>>, vector<16x32xf32>
      %c0_18 = arith.constant 0 : index
      %c0_19 = arith.constant 0 : index
      %21 = vector.load %arg3[%c0_18, %c0_19] : memref<1x32xf32, #tpu.memory_space<vmem>>, vector<1x32xf32>
      %c0_20 = arith.constant 0 : index
      %c0_21 = arith.constant 0 : index
      %22 = vector.load %arg4[%c0_20, %c0_21] : memref<1x32xf32, #tpu.memory_space<vmem>>, vector<1x32xf32>
      %cst_22 = arith.constant dense<0.000000e+00> : vector<16xf32>
      %23 = vector.multi_reduction <add>, %20, %cst_22 [1] : vector<16x32xf32> to vector<16xf32>
      %24 = vector.shape_cast %23 : vector<16xf32> to vector<16x1xf32>
      %cst_23 = arith.constant 3.200000e+01 : f32
      %25 = vector.broadcast %cst_23 : f32 to vector<16x1xf32>
      %26 = arith.divf %24, %25 : vector<16x1xf32>
      %27 = vector.broadcast %26 : vector<16x1xf32> to vector<16x32xf32>
      %28 = arith.subf %20, %27 : vector<16x32xf32>
      %29 = arith.mulf %28, %28 : vector<16x32xf32>
      %cst_24 = arith.constant dense<0.000000e+00> : vector<16xf32>
      %30 = vector.multi_reduction <add>, %29, %cst_24 [1] : vector<16x32xf32> to vector<16xf32>
      %31 = vector.shape_cast %30 : vector<16xf32> to vector<16x1xf32>
      %cst_25 = arith.constant 0.0322580636 : f32
      %32 = vector.broadcast %cst_25 : f32 to vector<16x1xf32>
      %33 = arith.mulf %31, %32 : vector<16x1xf32>
      %34 = math.sqrt %33 : vector<16x1xf32>
      %cst_26 = arith.constant 9.99999997E-7 : f32
      %35 = vector.broadcast %cst_26 : f32 to vector<16x1xf32>
      %36 = arith.addf %34, %35 : vector<16x1xf32>
      %37 = tpu.reciprocal %36 {approx = true} : vector<16x1xf32> -> vector<16x1xf32>
      %38 = vector.broadcast %37 : vector<16x1xf32> to vector<16x32xf32>
      %39 = arith.mulf %28, %38 : vector<16x32xf32>
      %40 = vector.broadcast %21 : vector<1x32xf32> to vector<16x32xf32>
      %41 = arith.mulf %40, %39 : vector<16x32xf32>
      %42 = vector.broadcast %22 : vector<1x32xf32> to vector<16x32xf32>
      %43 = arith.addf %41, %42 : vector<16x32xf32>
      %44 = arith.truncf %43 : vector<16x32xf32> to vector<16x32xbf16>
      %c0_27 = arith.constant 0 : index
      %c0_28 = arith.constant 0 : index
      %45 = vector.load %arg11[%c0_27, %c0_28] : memref<16x32xbf16, #tpu.memory_space<vmem>>, vector<16x32xbf16>
      tpu.vector_store %arg11[%c0_27, %c0_28], %44 {strides = array<i32>} : memref<16x32xbf16, #tpu.memory_space<vmem>>, vector<16x32xbf16>,
      %c0_29 = arith.constant 0 : index
      %c0_30 = arith.constant 0 : index
      %46 = vector.load %arg8[%c0_29, %c0_30] : memref<1x32xf32, #tpu.memory_space<vmem>>, vector<1x32xf32>
      %47 = vector.broadcast %46 : vector<1x32xf32> to vector<16x32xf32>
      %48 = arith.addf %20, %47 : vector<16x32xf32>
      %c0_31 = arith.constant 0 : index
      %c0_32 = arith.constant 0 : index
      %49 = vector.load %arg10[%c0_31, %c0_32] : memref<16x32xf32, #tpu.memory_space<vmem>>, vector<16x32xf32>
      tpu.vector_store %arg10[%c0_31, %c0_32], %48 {strides = array<i32>} : memref<16x32xf32, #tpu.memory_space<vmem>>, vector<16x32xf32>,
    } else {
    }
    %c0 = arith.constant 0 : index
    %c0_1 = arith.constant 0 : index
    %3 = vector.load %arg11[%c0, %c0_1] : memref<16x32xbf16, #tpu.memory_space<vmem>>, vector<16x32xbf16>
    %c0_2 = arith.constant 0 : index
    %c0_3 = arith.constant 0 : index
    %4 = vector.load %arg5[%c0_2, %c0_3] : memref<32x64xbf16, #tpu.memory_space<vmem>>, vector<32x64xbf16>
    %cst = arith.constant dense<0.000000e+00> : vector<16x64xf32>
    %5 = tpu.matmul %3, %4, %cst {dimension_numbers = #tpu.dot_dimension_numbers<[1], [0], [0], [1], [0, 0, 1, 1], [], []>} : vector<16x32xbf16>, vector<32x64xbf16>, vector<16x64xf32> -> vector<16x64xf32>
    %c0_4 = arith.constant 0 : index
    %c0_5 = arith.constant 0 : index
    %6 = vector.load %arg6[%c0_4, %c0_5] : memref<1x64xf32, #tpu.memory_space<vmem>>, vector<1x64xf32>
    %7 = vector.broadcast %6 : vector<1x64xf32> to vector<16x64xf32>
    %8 = arith.addf %5, %7 : vector<16x64xf32>
    %cst_6 = arith.constant 0.000000e+00 : f32
    %9 = vector.broadcast %cst_6 : f32 to vector<16x64xf32>
    %10 = arith.maximumf %8, %9 : vector<16x64xf32>
    %c0_7 = arith.constant 0 : index
    %c0_8 = arith.constant 0 : index
    %11 = vector.load %arg10[%c0_7, %c0_8] : memref<16x32xf32, #tpu.memory_space<vmem>>, vector<16x32xf32>
    %12 = arith.truncf %10 : vector<16x64xf32> to vector<16x64xbf16>
    %c0_9 = arith.constant 0 : index
    %c0_10 = arith.constant 0 : index
    %13 = vector.load %arg7[%c0_9, %c0_10] : memref<64x32xbf16, #tpu.memory_space<vmem>>, vector<64x32xbf16>
    %cst_11 = arith.constant dense<0.000000e+00> : vector<16x32xf32>
    %14 = tpu.matmul %12, %13, %cst_11 {dimension_numbers = #tpu.dot_dimension_numbers<[1], [0], [0], [1], [0, 0, 1, 1], [], []>} : vector<16x64xbf16>, vector<64x32xbf16>, vector<16x32xf32> -> vector<16x32xf32>
    %15 = arith.addf %11, %14 : vector<16x32xf32>
    %c0_12 = arith.constant 0 : index
    %c0_13 = arith.constant 0 : index
    %16 = vector.load %arg10[%c0_12, %c0_13] : memref<16x32xf32, #tpu.memory_space<vmem>>, vector<16x32xf32>
    tpu.vector_store %arg10[%c0_12, %c0_13], %15 {strides = array<i32>} : memref<16x32xf32, #tpu.memory_space<vmem>>, vector<16x32xf32>,
    %c0_i32_14 = arith.constant 0 : i32
    %17 = arith.cmpi eq, %arg1, %c0_i32_14 : i32
    %18 = arith.extui %17 : i1 to i32
    %c0_i32_15 = arith.constant 0 : i32
    %19 = arith.cmpi ne, %18, %c0_i32_15 : i32
    scf.if %19 {
      %c0_16 = arith.constant 0 : index
      %c0_17 = arith.constant 0 : index
      %20 = vector.load %arg10[%c0_16, %c0_17] : memref<16x32xf32, #tpu.memory_space<vmem>>, vector<16x32xf32>
      %c0_18 = arith.constant 0 : index
      %c0_19 = arith.constant 0 : index
      %21 = vector.load %arg9[%c0_18, %c0_19] : memref<16x32xf32, #tpu.memory_space<vmem>>, vector<16x32xf32>
      tpu.vector_store %arg9[%c0_18, %c0_19], %20 {strides = array<i32>} : memref<16x32xf32, #tpu.memory_space<vmem>>, vector<16x32xf32>,
    } else {
    }
    return
  }
  func.func @transform_0(%arg0: i32, %arg1: i32) -> (i32, i32) {
    %c0_i32 = arith.constant 0 : i32
    %c0_i32_0 = arith.constant 0 : i32
    return %arg0, %c0_i32 : i32, i32
  }
  func.func @transform_1(%arg0: i32, %arg1: i32) -> (i32, i32) {
    %c0_i32 = arith.constant 0 : i32
    %c0_i32_0 = arith.constant 0 : i32
    %c0_i32_1 = arith.constant 0 : i32
    return %c0_i32, %c0_i32_0 : i32, i32
  }
  func.func @transform_2(%arg0: i32, %arg1: i32) -> (i32, i32) {
    %c0_i32 = arith.constant 0 : i32
    %c0_i32_0 = arith.constant 0 : i32
    %c0_i32_1 = arith.constant 0 : i32
    return %c0_i32, %c0_i32_0 : i32, i32
  }
  func.func @transform_3(%arg0: i32, %arg1: i32) -> (i32, i32) {
    %c0_i32 = arith.constant 0 : i32
    %c0_i32_0 = arith.constant 0 : i32
    return %c0_i32, %arg1 : i32, i32
  }
  func.func @transform_4(%arg0: i32, %arg1: i32) -> (i32, i32) {
    %c0_i32 = arith.constant 0 : i32
    %c0_i32_0 = arith.constant 0 : i32
    return %c0_i32, %arg1 : i32, i32
  }
  func.func @transform_5(%arg0: i32, %arg1: i32) -> (i32, i32) {
    %c0_i32 = arith.constant 0 : i32
    %c0_i32_0 = arith.constant 0 : i32
    return %arg1, %c0_i32 : i32, i32
  }
  func.func @transform_6(%arg0: i32, %arg1: i32) -> (i32, i32) {
    %c0_i32 = arith.constant 0 : i32
    %c0_i32_0 = arith.constant 0 : i32
    %c0_i32_1 = arith.constant 0 : i32
    return %c0_i32, %c0_i32_0 : i32, i32
  }
  func.func @transform_7(%arg0: i32, %arg1: i32) -> (i32, i32) {
    %c0_i32 = arith.constant 0 : i32
    %c0_i32_0 = arith.constant 0 : i32
    return %arg0, %c0_i32 : i32, i32
  }
}

</mosaic_0001>

<bundles_post_ra>
// kernel: decoder_layer.10
= control target key start
LH: loop header
LB: loop body
LE: loop exit
PB: predicated region body
PF: predicated region fallthrough
CT: control target
= control target key end

     0   :  { %v124_v0 = vmov 0.0   ;;  %vm125_vm0 = vmmov 0   ;;  %vm48_vm1 = vcmask 261120   ;;  %s178_s1 = inlined_call_operand.vmem [shape: bf16[32,32], index: 1, kind: input, shape index: {}]   ;;  %s179_s0 = inlined_call_operand.vmem [shape: bf16[16,32], index: 0, kind: input, shape index: {}]   ;;  %s180_s2 = inlined_call_operand.vmem [shape: f32[1,32], index: 2, kind: input, shape index: {}]   ;;  %s181_s3 = inlined_call_operand.vmem [shape: f32[16,32], index: 3, kind: input, shape index: {}, may-alias: {3,4}]   ;;  %s182_s4 = inlined_call_operand.vmem [shape: f32[16,32], index: 4, kind: output, shape index: {}, may-alias: {3,4}]  }
   0x1   :  { %111 = vmatprep.subr.bf16.mxu0 %v124_v0  ;;  %v121_v1 = vld [vmem:[%s178_s1] sm:$0xff]   ;;  %115 = vmatprep.mubr.msk.bf16.mxu0 %vm125_vm0, %v124_v0  ;;  %v122_v2 = vld [vmem:[%s178_s1 + $0x8] sm:$0xff]  }
   0x2   :  { %112 = vmatpush3.bf16.msra.mxu0 %v121_v1  ;;  %v123_v3 = vld [vmem:[%s179_s0] sm:$0xff]   ;;  %v94_v10 = vld [vmem:[%s181_s3 + $0x8] sm:$0xff] }
   0x3   :  { %113 = vmatprep.subr.bf16.mxu0 %v124_v0  ;;  %v103_v4 = vld [vmem:[%s180_s2] ss:$0 sm:$0xff] }
   0x4   :  { %v93_v6 = vld [vmem:[%s181_s3] sm:$0xff] }
   0x6   :  { %114 = vmatpush3.bf16.msra.mxu0 %v122_v2 }
   0x9   :  { %116 = vmatmul.mubr.msk.bf16.vlgmr.msra.gmra.mrb[0].mxu0 %vm48_vm1, %v123_v3 }
  0xdc   :  { %v86_v5 = vpop.f32.mrb[0].mxu0 }
  0xdd   :  { %v87_v7 = vadd.f32 %v103_v4, %v86_v5  ;;  %v117_v8 = vpop.f32.mrb[1].mxu0 }
  0xde   :  { %v89_v9 = vpop.f32.mrb[2].mxu0 }
  0xdf   :  { %v95_v11 = vadd.f32 %v93_v6, %v87_v7  ;;  %v90_v12 = vadd.f32 %v103_v4, %v89_v9  ;;  %v118_v13 = vpop.f32.mrb[3].mxu0 }
  0xe1   :  { %97 = vst.msk [vmem:[%s182_s4] sm:$0xff] %vm48_vm1, %v95_v11  ;;  %v96_v14 = vadd.f32 %v94_v10, %v90_v12 }
  0xe3   :  { %98 = vst.msk [vmem:[%s182_s4 + $0x8] sm:$0xff] %vm48_vm1, %v96_v14 }

// kernel: decoder_layer.8
= control target key start
LH: loop header
LB: loop body
LE: loop exit
PB: predicated region body
PF: predicated region fallthrough
CT: control target
= control target key end

     0   :  { %17 = vsyncpa [#allocation3], 0  ;;  %s450_s17 = smov [#allocation2]   ;;  %s595_s0 = inlined_call_operand.vmem [shape: f32[16,32], index: 0, kind: input, shape index: {}]   ;;  %s596_s1 = inlined_call_operand.vmem [shape: f32[1,32], index: 1, kind: input, shape index: {}]   ;;  %s597_s2 = inlined_call_operand.vmem [shape: f32[1,32], index: 2, kind: input, shape index: {}]   ;;  %s598_s3 = inlined_call_operand.vmem [shape: bf16[32,32], index: 3, kind: input, shape index: {}]   ;;  %s599_s4 = inlined_call_operand.vmem [shape: f32[1,32], index: 4, kind: input, shape index: {}]   ;;  %s600_s5 = inlined_call_operand.vmem [shape: bf16[32,32], index: 5, kind: input, shape index: {}]   ;;  %s601_s6 = inlined_call_operand.vmem [shape: f32[1,32], index: 6, kind: input, shape index: {}]   ;;  %s602_s7 = inlined_call_operand.vmem [shape: bf16[32,32], index: 7, kind: input, shape index: {}]   ;;  %s603_s8 = inlined_call_operand.hbm [shape: f32[1,32], index: 8, kind: input, shape index: {}]   ;;  %s604_s9 = inlined_call_operand.vmem [shape: bf16[16,32], index: 9, kind: output, shape index: {0}]   ;;  %s605_s10 = inlined_call_operand.vmem [shape: bf16[16,32], index: 10, kind: output, shape index: {1}]   ;;  %s606_s11 = inlined_call_operand.vmem [shape: bf16[16,32], index: 11, kind: output, shape index: {2}]  }
   0x1   :  { %s40_s18 = sshll.u32 %s450_s17, 4  ;;  %s426_s21 = scalar_lea.hbm %s603_s8, 16  ;;  %s41_s18 = int_to_ptr.vmem [resolvable:$true] %s40_s18 }
   0x2   :  { %p427_p0 = scmp.ne.s32.totalorder %s603_s8, %s426_s21  ;;  %p430_p1 = scmp.lt.u32.totalorder %s426_s21, %s603_s8 }
   0x4   :  { %p432_p2 = pnand %p430_p1, %p427_p0 }
   0x6   :  { %435 = shalt.err (!%p432_p2)
}
   0x7   :  { %s436_s26 = scalar_lea.vmem %s41_s18, 16  ;;  %s440_s27 = scalar_lea.vmem %s41_s18, 32 }
   0x8   :  { %p437_p3 = scmp.ne.s32.totalorder %s41_s18, %s436_s26  ;;  %p441_p4 = scmp.lt.s32.totalorder %s41_s18, %s41_s18 }
   0x9   :  { %p442_p5 = scmp.lt.s32.totalorder %s440_s27, %s436_s26 }
   0xb   :  { %p443_p6 = por %p442_p5, %p441_p4 }
   0xd   :  { %p444_p7 = pnand %p443_p6, %p437_p3 }
   0xf   :  { %447 = shalt.err (!%p444_p7)
}
  0x10   :  { %43 = dma.hbm_to_vmem [thread:$0]  %s603_s8, 16, %s41_s18, [#allocation3]  }
  0x11   :  { %448 = dma.done.wait [#allocation3], 16  }
  0x12   :  { %449 = vsyncadd [#allocation3], 4294967280  ;;  %vm52_vm0 = vcmask 261120   ;;  %v48_v0 = vld [vmem:[%s595_s0] sm:$0xff]  ;;  %v49_v1 = vld [vmem:[%s595_s0 + $0x8] sm:$0xff]  ;;  %v451_v16 = vmov 0.0  }
  0x13   :  { %v53_v2 = vsel %vm52_vm0, %v48_v0, 0.0  ;;  %v56_v3 = vsel %vm52_vm0, %v49_v1, 0.0  ;;  %v412_v14 = vld [vmem:[%s598_s3] sm:$0xff]   ;;  %385 = vmatprep.subr.bf16.mxu0 %v451_v16  ;;  %393 = vmatprep.subr.bf16.mxu1 %v451_v16  ;;  %v414_v17 = vld [vmem:[%s598_s3 + $0x8] sm:$0xff]   ;;  %vm452_vm1 = vmmov 0   ;;  %vm186_vm6 = vcmask 257024  }
  0x14   :  { %54 = vadd.xlane.f32.xlu0 %v53_v2  ;;  %v413_v15 = vld [vmem:[%s600_s5] sm:$0xff]   ;;  %386 = vmatpush3.bf16.msra.mxu0 %v412_v14  ;;  %v415_v18 = vld [vmem:[%s600_s5 + $0x8] sm:$0xff]  }
  0x15   :  { %394 = vmatpush3.bf16.msra.mxu1 %v413_v15  ;;  %387 = vmatprep.subr.bf16.mxu0 %v451_v16  ;;  %v350_v37 = vld [vmem:[%s596_s1] ss:$0 sm:$0xff]  ;;  %v417_v47 = vld [vmem:[%s602_s7 + $0x8] sm:$0xff]  }
  0x16   :  { %395 = vmatprep.subr.bf16.mxu1 %v451_v16  ;;  %389 = vmatprep.mubr.msk.bf16.mxu0 %vm452_vm1, %v451_v16  ;;  %v351_v41 = vld [vmem:[%s597_s2] ss:$0 sm:$0xff] }
  0x17   :  { %397 = vmatprep.mubr.msk.bf16.mxu1 %vm452_vm1, %v451_v16  ;;  %v416_v45 = vld [vmem:[%s602_s7] sm:$0xff]  }
  0x18   :  { %57 = vadd.xlane.f32.xlu0 %v56_v3  ;;  %388 = vmatpush3.bf16.msra.mxu0 %v414_v17  ;;  %v352_v48 = vld [vmem:[%s599_s4] ss:$0 sm:$0xff] }
  0x19   :  { %396 = vmatpush3.bf16.msra.mxu1 %v415_v18  ;;  %401 = vmatprep.subr.bf16.mxu0 %v451_v16  ;;  %v358_v49 = vld [vmem:[%s601_s6] ss:$0 sm:$0xff] }
  0x1a   :  { %v364_v2 = vld [vmem:[#allocation2] ss:$0 sm:$0xff] }
  0xa1   :  { %v55_v4 = vpop.xlane.xlu0 %54 }
  0xa2   :  { %v60_v5 = vmul.f32 0.03125, %v55_v4 }
  0xa4   :  { %v62_v6 = vsub.f32 %v48_v0, %v60_v5 }
  0xa5   :  { %v58_v7 = vpop.xlane.xlu0 %57 }
  0xa6   :  { %v61_v8 = vmul.f32 0.03125, %v58_v7  ;;  %v64_v9 = vmul.f32 %v62_v6, %v62_v6 }
  0xa8   :  { %v63_v10 = vsub.f32 %v49_v1, %v61_v8  ;;  %v66_v11 = vsel %vm52_vm0, %v64_v9, 0.0 }
  0xa9   :  { %67 = vadd.xlane.f32.xlu1 %v66_v11 }
  0xaa   :  { %v65_v12 = vmul.f32 %v63_v10, %v63_v10 }
  0xac   :  { %v69_v13 = vsel %vm52_vm0, %v65_v12, 0.0 }
  0xad   :  { %70 = vadd.xlane.f32.xlu1 %v69_v13 }
 0x136   :  { %v68_v19 = vpop.xlane.xlu1 %67 }
 0x137   :  { %v72_v20 = vmul.f32 0.032258064, %v68_v19 }
 0x139   :  { %418 = vrsqrt.f32 %v72_v20  ;;  %vm76_vm2 = vcmp.eq.f32.partialorder %v72_v20, inf  ;;  %v79_v25 = vand.u32 2147483648, %v72_v20  ;;  %vm78_vm3 = vcmp.eq.f32.partialorder %v72_v20, 0.0 }
 0x13a   :  { %v71_v21 = vpop.xlane.xlu1 %70 }
 0x13b   :  { %v73_v22 = vmul.f32 0.032258064, %v71_v21 }
 0x13d   :  { %420 = vrsqrt.f32 %v73_v22  ;;  %vm83_vm4 = vcmp.eq.f32.partialorder %v73_v22, inf  ;;  %v86_v31 = vand.u32 2147483648, %v73_v22  ;;  %vm85_vm5 = vcmp.eq.f32.partialorder %v73_v22, 0.0 }
 0x143   :  { %v419_v23 = vpop.eup %418 }
 0x144   :  { %v75_v24 = vmul.f32 %v419_v23, %v72_v20 }
 0x146   :  { %v77_v26 = vsel %vm76_vm2, %v72_v20, %v75_v24 }
 0x147   :  { %v421_v27 = vpop.eup %420  ;;  %v80_v28 = vsel %vm78_vm3, %v79_v25, %v77_v26 }
 0x148   :  { %v88_v29 = vadd.f32 1e-06, %v80_v28  ;;  %v82_v30 = vmul.f32 %v421_v27, %v73_v22 }
 0x14a   :  { %422 = vrcp.f32 %v88_v29  ;;  %v84_v32 = vsel %vm83_vm4, %v73_v22, %v82_v30 }
 0x14b   :  { %v87_v33 = vsel %vm85_vm5, %v86_v31, %v84_v32 }
 0x14c   :  { %v89_v34 = vadd.f32 1e-06, %v87_v33 }
 0x14e   :  { %424 = vrcp.f32 %v89_v34 }
 0x154   :  { %v423_v35 = vpop.eup %422 }
 0x155   :  { %v92_v36 = vmul.f32 %v423_v35, %v62_v6 }
 0x157   :  { %v100_v40 = vmul.f32 %v350_v37, %v92_v36 }
 0x158   :  { %v425_v38 = vpop.eup %424 }
 0x159   :  { %v93_v39 = vmul.f32 %v425_v38, %v63_v10  ;;  %v108_v43 = vadd.f32 %v351_v41, %v100_v40 }
 0x15b   :  { %v101_v42 = vmul.f32 %v350_v37, %v93_v39 }
 0x15d   :  { %v109_v44 = vadd.f32 %v351_v41, %v101_v42 }
 0x15f   :  { %v110_v46 = vpack.c.bf16 %v109_v44, %v108_v43 }
 0x161   :  { %390 = vmatmul.mubr.msk.bf16.vlgmr.msra.gmra.mrb[0].mxu0 %vm52_vm0, %v110_v46  ;;  %398 = vmatmul.mubr.msk.bf16.vlgmr.msra.gmra.mrb[0].mxu1 %vm52_vm0, %v110_v46 }
 0x162   :  { %402 = vmatpush3.bf16.msra.mxu0 %v416_v45  ;;  %405 = vmatprep.mubr.msk.bf16.mxu0 %vm452_vm1, %v451_v16 }
 0x163   :  { %403 = vmatprep.subr.bf16.mxu0 %v451_v16 }
 0x166   :  { %404 = vmatpush3.bf16.msra.mxu0 %v417_v47 }
 0x169   :  { %406 = vmatmul.mubr.msk.bf16.vlgmr.msra.gmra.mrb[4].mxu0 %vm52_vm0, %v110_v46 }
 0x234   :  { %v171_v50 = vpop.f32.mrb[0].mxu0  ;;  %v246_v51 = vpop.f32.mrb[0].mxu1 }
 0x235   :  { %v172_v52 = vadd.f32 %v352_v48, %v171_v50  ;;  %v247_v53 = vadd.f32 %v358_v49, %v246_v51  ;;  %v391_v54 = vpop.f32.mrb[1].mxu0  ;;  %v399_v55 = vpop.f32.mrb[1].mxu1 }
 0x236   :  { %v174_v56 = vpop.f32.mrb[2].mxu0  ;;  %v249_v57 = vpop.f32.mrb[2].mxu1 }
 0x237   :  { %v370_v58 = vpack.c.bf16 %v172_v52, %v172_v52  ;;  %v372_v59 = vpack.c.bf16 %v247_v53, %v247_v53  ;;  %v175_v60 = vadd.f32 %v352_v48, %v174_v56  ;;  %v250_v61 = vadd.f32 %v358_v49, %v249_v57  ;;  %v392_v62 = vpop.f32.mrb[3].mxu0  ;;  %v400_v63 = vpop.f32.mrb[3].mxu1 }
 0x239   :  { %187 = vst.msk [vmem:[%s604_s9] sm:$0xf] %vm186_vm6, %v370_v58  ;;  %261 = vst.msk [vmem:[%s605_s10] sm:$0xf] %vm186_vm6, %v372_v59  ;;  %v371_v0 = vpack.c.bf16 %v175_v60, %v175_v60  ;;  %v373_v1 = vpack.c.bf16 %v250_v61, %v250_v61 }
 0x23b   :  { %188 = vst.msk [vmem:[%s604_s9 + $0x4] sm:$0xf] %vm186_vm6, %v371_v0  ;;  %262 = vst.msk [vmem:[%s605_s10 + $0x4] sm:$0xf] %vm186_vm6, %v373_v1 }
 0x23c   :  { %v320_v3 = vpop.f32.mrb[4].mxu0 }
 0x23d   :  { %v321_v4 = vadd.f32 %v364_v2, %v320_v3  ;;  %v407_v5 = vpop.f32.mrb[5].mxu0 }
 0x23e   :  { %v323_v6 = vpop.f32.mrb[6].mxu0 }
 0x23f   :  { %v374_v7 = vpack.c.bf16 %v321_v4, %v321_v4  ;;  %v324_v8 = vadd.f32 %v364_v2, %v323_v6  ;;  %v408_v9 = vpop.f32.mrb[7].mxu0 }
 0x241   :  { %335 = vst.msk [vmem:[%s606_s11] sm:$0xf] %vm186_vm6, %v374_v7  ;;  %v375_v10 = vpack.c.bf16 %v324_v8, %v324_v8 }
 0x243   :  { %336 = vst.msk [vmem:[%s606_s11 + $0x4] sm:$0xf] %vm186_vm6, %v375_v10 }
 0x244   :  { %349 = vsyncpa [#allocation3], 1 }

// kernel: decoder_layer.11
= control target key start
LH: loop header
LB: loop body
LE: loop exit
PB: predicated region body
PF: predicated region fallthrough
CT: control target
= control target key end

     0   :  { %vm25_vm0 = vcmask 261120   ;;  %v199_v14 = vmov 0.0   ;;  %vm200_vm1 = vmmov 0   ;;  %vm159_vm6 = vcmask 257024   ;;  %s263_s0 = inlined_call_operand.vmem [shape: f32[16,32], index: 0, kind: input, shape index: {}]   ;;  %s264_s3 = inlined_call_operand.vmem [shape: bf16[32,32], index: 3, kind: input, shape index: {}]   ;;  %s265_s1 = inlined_call_operand.vmem [shape: f32[1,32], index: 1, kind: input, shape index: {}]   ;;  %s266_s2 = inlined_call_operand.vmem [shape: f32[1,32], index: 2, kind: input, shape index: {}]   ;;  %s267_s4 = inlined_call_operand.vmem [shape: f32[1,32], index: 4, kind: input, shape index: {}]   ;;  %s268_s5 = inlined_call_operand.vmem [shape: bf16[16,32], index: 5, kind: output, shape index: {}]  }
   0x1   :  { %v21_v0 = vld [vmem:[%s263_s0] sm:$0xff]  ;;  %v22_v1 = vld [vmem:[%s263_s0 + $0x8] sm:$0xff]  ;;  %179 = vmatprep.subr.bf16.mxu0 %v199_v14  ;;  %183 = vmatprep.mubr.msk.bf16.mxu0 %vm200_vm1, %v199_v14 }
   0x2   :  { %v26_v2 = vsel %vm25_vm0, %v21_v0, 0.0  ;;  %v29_v3 = vsel %vm25_vm0, %v22_v1, 0.0  ;;  %v189_v15 = vld [vmem:[%s264_s3] sm:$0xff]   ;;  %v190_v16 = vld [vmem:[%s264_s3 + $0x8] sm:$0xff]  }
   0x3   :  { %27 = vadd.xlane.f32.xlu0 %v26_v2  ;;  %180 = vmatpush3.bf16.msra.mxu0 %v189_v15  ;;  %v166_v35 = vld [vmem:[%s265_s1] ss:$0 sm:$0xff] }
   0x4   :  { %181 = vmatprep.subr.bf16.mxu0 %v199_v14  ;;  %v167_v39 = vld [vmem:[%s266_s2] ss:$0 sm:$0xff] }
   0x5   :  { %v168_v44 = vld [vmem:[%s267_s4] ss:$0 sm:$0xff] }
   0x7   :  { %30 = vadd.xlane.f32.xlu0 %v29_v3  ;;  %182 = vmatpush3.bf16.msra.mxu0 %v190_v16 }
  0x90   :  { %v28_v4 = vpop.xlane.xlu0 %27 }
  0x91   :  { %v33_v5 = vmul.f32 0.03125, %v28_v4 }
  0x93   :  { %v35_v6 = vsub.f32 %v21_v0, %v33_v5 }
  0x94   :  { %v31_v7 = vpop.xlane.xlu0 %30 }
  0x95   :  { %v34_v8 = vmul.f32 0.03125, %v31_v7  ;;  %v37_v9 = vmul.f32 %v35_v6, %v35_v6 }
  0x97   :  { %v36_v10 = vsub.f32 %v22_v1, %v34_v8  ;;  %v39_v11 = vsel %vm25_vm0, %v37_v9, 0.0 }
  0x98   :  { %40 = vadd.xlane.f32.xlu1 %v39_v11 }
  0x99   :  { %v38_v12 = vmul.f32 %v36_v10, %v36_v10 }
  0x9b   :  { %v42_v13 = vsel %vm25_vm0, %v38_v12, 0.0 }
  0x9c   :  { %43 = vadd.xlane.f32.xlu1 %v42_v13 }
 0x125   :  { %v41_v17 = vpop.xlane.xlu1 %40 }
 0x126   :  { %v45_v18 = vmul.f32 0.032258064, %v41_v17 }
 0x128   :  { %191 = vrsqrt.f32 %v45_v18  ;;  %vm49_vm2 = vcmp.eq.f32.partialorder %v45_v18, inf  ;;  %v52_v23 = vand.u32 2147483648, %v45_v18  ;;  %vm51_vm3 = vcmp.eq.f32.partialorder %v45_v18, 0.0 }
 0x129   :  { %v44_v19 = vpop.xlane.xlu1 %43 }
 0x12a   :  { %v46_v20 = vmul.f32 0.032258064, %v44_v19 }
 0x12c   :  { %193 = vrsqrt.f32 %v46_v20  ;;  %vm56_vm4 = vcmp.eq.f32.partialorder %v46_v20, inf  ;;  %v59_v29 = vand.u32 2147483648, %v46_v20  ;;  %vm58_vm5 = vcmp.eq.f32.partialorder %v46_v20, 0.0 }
 0x132   :  { %v192_v21 = vpop.eup %191 }
 0x133   :  { %v48_v22 = vmul.f32 %v192_v21, %v45_v18 }
 0x135   :  { %v50_v24 = vsel %vm49_vm2, %v45_v18, %v48_v22 }
 0x136   :  { %v194_v25 = vpop.eup %193  ;;  %v53_v26 = vsel %vm51_vm3, %v52_v23, %v50_v24 }
 0x137   :  { %v61_v27 = vadd.f32 1e-06, %v53_v26  ;;  %v55_v28 = vmul.f32 %v194_v25, %v46_v20 }
 0x139   :  { %195 = vrcp.f32 %v61_v27  ;;  %v57_v30 = vsel %vm56_vm4, %v46_v20, %v55_v28 }
 0x13a   :  { %v60_v31 = vsel %vm58_vm5, %v59_v29, %v57_v30 }
 0x13b   :  { %v62_v32 = vadd.f32 1e-06, %v60_v31 }
 0x13d   :  { %197 = vrcp.f32 %v62_v32 }
 0x143   :  { %v196_v33 = vpop.eup %195 }
 0x144   :  { %v65_v34 = vmul.f32 %v196_v33, %v35_v6 }
 0x146   :  { %v73_v38 = vmul.f32 %v166_v35, %v65_v34 }
 0x147   :  { %v198_v36 = vpop.eup %197 }
 0x148   :  { %v66_v37 = vmul.f32 %v198_v36, %v36_v10  ;;  %v81_v41 = vadd.f32 %v167_v39, %v73_v38 }
 0x14a   :  { %v74_v40 = vmul.f32 %v166_v35, %v66_v37 }
 0x14c   :  { %v82_v42 = vadd.f32 %v167_v39, %v74_v40 }
 0x14e   :  { %v83_v43 = vpack.c.bf16 %v82_v42, %v81_v41 }
 0x150   :  { %184 = vmatmul.mubr.msk.bf16.vlgmr.msra.gmra.mrb[0].mxu0 %vm25_vm0, %v83_v43 }
 0x223   :  { %v144_v45 = vpop.f32.mrb[0].mxu0 }
 0x224   :  { %v145_v46 = vadd.f32 %v168_v44, %v144_v45  ;;  %v185_v47 = vpop.f32.mrb[1].mxu0 }
 0x225   :  { %v147_v48 = vpop.f32.mrb[2].mxu0 }
 0x226   :  { %v174_v49 = vpack.c.bf16 %v145_v46, %v145_v46  ;;  %v148_v50 = vadd.f32 %v168_v44, %v147_v48  ;;  %v186_v51 = vpop.f32.mrb[3].mxu0 }
 0x228   :  { %160 = vst.msk [vmem:[%s268_s5] sm:$0xf] %vm159_vm6, %v174_v49  ;;  %v175_v52 = vpack.c.bf16 %v148_v50, %v148_v50 }
 0x22a   :  { %161 = vst.msk [vmem:[%s268_s5 + $0x4] sm:$0xf] %vm159_vm6, %v175_v52 }

// kernel: decoder_layer.9
= control target key start
LH: loop header
LB: loop body
LE: loop exit
PB: predicated region body
PF: predicated region fallthrough
CT: control target
= control target key end

     0   :  { %s1347_s15 = smov 0   ;;  %s1349_s16 = smov 0   ;;  %s1523_s0 = inlined_call_operand.vmem [shape: s8[1,8,8], index: 0, kind: input, shape index: {}]   ;;  %s1524_s1 = inlined_call_operand.vmem [shape: bf16[2,8,32], index: 1, kind: input, shape index: {}]   ;;  %s1525_s2 = inlined_call_operand.vmem [shape: bf16[2,8,32], index: 2, kind: input, shape index: {}]   ;;  %s1526_s3 = inlined_call_operand.vmem [shape: bf16[2,8,32], index: 3, kind: input, shape index: {}]   ;;  %s1527_s4 = inlined_call_operand.vmem [shape: bf16[2,8,32], index: 4, kind: output, shape index: {}]  }
   0x1   :  { %s1351_s17 = smov 0  }
   0x2 LB: > { %s40_s18 = sadd.s32 1, %s1306_s16  ;;  %p1144_p0 = scmp.ge.s32.totalorder %s1310_s17, 1  ;;  %s1310_s17 = sphi %s1351_s17, %s14_s17   ;;  %s1306_s16 = sphi %s1349_s16, %s1529_s16   ;;  %s1302_s15 = sphi %s1347_s15, %s1528_s15  }
   0x3   : > { %p42_p1 = scmp.ge.s32.totalorder %s40_s18, 2  ;;  %p253_p2 = scmp.lt.s32.totalorder %s1310_s17, 3 }
   0x5   : > { %s1531_s18 = smov (%p42_p1, %s40_s18), 0  ;;  %p254_p3 = pnand %p1144_p0, %p253_p2 }
   0x6   : > { %p323_p4 = scmp.lt.s32.totalorder (!%p254_p3), %s1302_s15, 1  ;;  %v1312_v0 = vmov (!%p254_p3), 0.0   ;;  %vm1313_vm0 = vmmov (!%p254_p3), 0   ;;  %vm388_vm1 = vcmask (!%p254_p3), 64512   ;;  %vm369_vm2 = vcmask (!%p254_p3), 7168   ;;  %s1316_s28 = smov (!%p254_p3), 120  }
   0x7   : > { %257 = sbr.rel (%p254_p3) target bundleno = 1414 (0x586), region = 36  ;;  %1178 = vmatprep.subr.bf16.mxu0 (!%p254_p3), %v1312_v0  ;;  %1180 = vmatprep.mubr.msk.bf16.mxu0 (!%p254_p3), %vm1313_vm0, %v1312_v0  ;;  %v1314_v5 = vmov (!%p254_p3), -inf   ;;  %374 = vst.msk [vmem:[#allocation3] sm:$0xff] (!%p254_p3), %vm369_vm2, %v1312_v0  ;;  %375 = vst.msk [vmem:[#allocation3 + $0x8] sm:$0xff] (!%p254_p3), %vm369_vm2, %v1312_v0  ;;  %v384_v6 = vld [vmem:[%s1523_s0] sm:$0x3] (!%p254_p3) }
   0x8   : > { %1184 = vmatprep.subr.bf16.mxu1 (!%p254_p3), %v1312_v0  ;;  %1186 = vmatprep.mubr.msk.bf16.mxu1 (!%p254_p3), %vm1313_vm0, %v1312_v0  ;;  %370 = vst.msk [vmem:[#allocation2] sm:$0xff] (!%p254_p3), %vm369_vm2, %v1314_v5  ;;  %371 = vst.msk [vmem:[#allocation2 + $0x8] sm:$0xff] (!%p254_p3), %vm369_vm2, %v1314_v5  ;;  %v385_v7 = vunpack.c.0.s8 (!%p254_p3), %v384_v6  ;;  %v1315_v15 = vmov (!%p254_p3), 0   ;;  %s1317_s29 = smov (!%p254_p3), 112   ;;  %s1318_s30 = smov (!%p254_p3), 104   ;;  %vm471_vm4 = vcmask (!%p254_p3), 1043456  }
   0x9   : > { %372 = vst.msk [vmem:[#allocation2 + $0x10] sm:$0xff] (!%p254_p3), %vm369_vm2, %v1314_v5  ;;  %373 = vst.msk [vmem:[#allocation2 + $0x18] sm:$0xff] (!%p254_p3), %vm369_vm2, %v1314_v5  ;;  %1260 = vset.pattern.permute.xlu0 (!%p254_p3), %v1315_v15  ;;  %1261 = vset.pattern.permute.xlu1 (!%p254_p3), %v1315_v15  ;;  %vm378_vm5 = vcmask (!%p254_p3), 261120   ;;  %s1319_s8 = smov (!%p254_p3), 8   ;;  %s1320_s9 = smov (!%p254_p3), 16   ;;  %vm664_vm6 = vcmask (!%p254_p3), 130112  }
   0xa   : > { %376 = vst.msk [vmem:[#allocation3 + $0x10] sm:$0xff] (!%p254_p3), %vm369_vm2, %v1312_v0  ;;  %377 = vst.msk [vmem:[#allocation3 + $0x18] sm:$0xff] (!%p254_p3), %vm369_vm2, %v1312_v0  ;;  %v1401_v8 = vcvt.s32.f32 (!%p254_p3), %v385_v7  ;;  %s1321_s10 = smov (!%p254_p3), 24   ;;  %vm804_vm7 = vcmask (!%p254_p3), 195712   ;;  %vm944_vm8 = vcmask (!%p254_p3), 261312   ;;  %vm984_vm9 = vcmask (!%p254_p3), 130048  }
   0xb   : > { %379 = vst.msk [vmem:[#allocation4] sm:$0xff] (!%p254_p3), %vm378_vm5, %v1312_v0  ;;  %vm986_vm10 = vcmask (!%p254_p3), 195584   ;;  %vm989_vm11 = vcmask (!%p254_p3), 257024  }
   0xc   : > { %vm387_vm3 = vcmp.le.f32.partialorder (!%p254_p3), %v1401_v8, 0.0 }
   0xe   : > { %s1533_s15 = smov (!%p323_p4, %s1302_s15), 1 }
   0xf   : > { %s1371_s19 = sshll.u32 %s1533_s15, 2  ;;  %v1413_v18 = vld [vmem:[#allocation2] sm:$0xff]  ;;  %v576_v60 = vld [vmem:[#allocation2 + $0x8] sm:$0xff] }
  0x10   : > { %s342_s22 = scalar_lea.vmem %s1525_s2, %s1371_s19  ;;  %s332_s25 = scalar_lea.vmem %s1524_s1, %s1371_s19  ;;  %v1468_v6 = vld [vmem:[#allocation2 + $0x18] sm:$0xff] }
  0x11   : > { %v382_v1 = vld [vmem:[%s342_s22] sm:$0xf]  ;;  %s352_s7 = scalar_lea.vmem %s1526_s3, %s1371_s19  ;;  %s362_s13 = scalar_lea.vmem %s1527_s4, %s1371_s19 }
  0x12   : > { %v393_v2 = vsel %vm388_vm1, %v382_v1, 0  ;;  %v380_v3 = vld [vmem:[%s332_s25] sm:$0xf]  ;;  %v1152_v16 = vcombine.low %v382_v1, %v382_v1 }
  0x13   : > { %1179 = vmatpush3.bf16.xpose.msra.mxu0 %v393_v2  ;;  %v381_v4 = vmul.bf16 1052065461, %v380_v3  ;;  %v383_v22 = vld [vmem:[%s352_s7] sm:$0xf]  ;;  %v719_v2 = vld [vmem:[#allocation2 + $0x10] sm:$0xff] }
  0x14   : > { %1196 = vmatprep.subr.bf16.mxu0 %v1312_v0  ;;  %526 = vrot.lane.b32.xlu1 %v1152_v16, %s1316_s28  ;;  %v473_v23 = vsel %vm471_vm4, %v383_v22, 0  ;;  %v1154_v1 = vcombine.low %v383_v22, %v383_v22 }
  0x15   : > { %v1151_v17 = vcombine.low %v381_v4, %v381_v4  ;;  %1185 = vmatpush3.bf16.msra.mxu1 %v473_v23 }
  0x16   : > { %1190 = vmatprep.subr.bf16.mxu1 %v1312_v0 }
  0x18   : > { %521 = vrot.lane.b32.xlu1 %v1151_v17, %s1316_s28 }
  0x1a   : > { %1181 = vmatmul.mubr.msk.bf16.vlgmr.msra.gmra.mrb[0].mxu0 %vm388_vm1, %v381_v4 }
  0x1b   : > { %1198 = vmatprep.mubr.msk.bf16.mxu0 %vm1313_vm0, %v1312_v0 }
  0x1c   : > { %669 = vrot.lane.b32.xlu1 %v1152_v16, %s1317_s29 }
  0x20   : > { %667 = vrot.lane.b32.xlu1 %v1151_v17, %s1317_s29 }
  0x24   : > { %809 = vrot.lane.b32.xlu1 %v1152_v16, %s1318_s30 }
  0x28   : > { %807 = vrot.lane.b32.xlu1 %v1151_v17, %s1318_s30 }
  0x86   : > { %v527_v27 = vpop.permute.xlu1 %526 }
  0x87   : > { %v532_v30 = vsel %vm388_vm1, %v527_v27, 0 }
  0x8a   : > { %v522_v28 = vpop.permute.xlu1 %521 }
  0x8e   : > { %v670_v32 = vpop.permute.xlu1 %669 }
  0x8f   : > { %v675_v34 = vsel %vm388_vm1, %v670_v32, 0 }
  0x92   : > { %v668_v33 = vpop.permute.xlu1 %667 }
  0x96   : > { %v810_v35 = vpop.permute.xlu1 %809 }
  0x97   : > { %v815_v36 = vsel %vm388_vm1, %v810_v35, 0 }
  0x9a   : > { %v808_v37 = vpop.permute.xlu1 %807 }
  0xed   : > { %v429_v9 = vpop.f32.mrb[0].mxu0 }
  0xee   : > { %v435_v10 = vsel %vm387_vm3, -1e+09, %v429_v9  ;;  %v1182_v11 = vpop.f32.mrb[1].mxu0 }
  0xef   : > { %v432_v12 = vpop.f32.mrb[2].mxu0  ;;  %v437_v13 = vsel %vm388_vm1, %v435_v10, -inf }
  0xf0   : > { %438 = vmax.xlane.f32.xlu0 %v437_v13  ;;  %v1183_v14 = vpop.f32.mrb[3].mxu0 }
 0x17d   : > { %v439_v19 = vpop.xlane.xlu0 %438 }
 0x17e   : > { %v1416_v20 = vmax.f32 %v1413_v18, %v439_v19 }
 0x180   : > { %v441_v21 = vsub.f32 %v1413_v18, %v1416_v20  ;;  %517 = vst.msk [vmem:[#allocation2] sm:$0xff] %vm369_vm2, %v1416_v20  ;;  %446 = vperm.xlu0 %1260, %v1416_v20  }
 0x182   : > { %v442_v61 = vmul.f32 1.442695, %v441_v21 }
 0x1ff   : > { %v447_v24 = vpop.permute.xlu0 %446 }
 0x200   : > { %v449_v25 = vsub.f32 %v435_v10, %v447_v24  ;;  %v460_v24 = vld [vmem:[#allocation4] sm:$0xff] }
 0x202   : > { %v450_v26 = vmul.f32 1.442695, %v449_v25 }
 0x204   : > { %1264 = vpow2.f32 %v450_v26 }
 0x205   : > { %1266 = vpow2.f32 %v442_v61 }
 0x20e   : > { %v1429_v29 = vpop.eup %1264 }
 0x20f   : > { %v467_v31 = vpack.c.bf16 %v1429_v29, %v1429_v29  ;;  %v1466_v5 = vpop.eup %1266  ;;  %v454_v11 = vsel %vm388_vm1, %v1429_v29, 0.0 }
 0x211   : > { %1187 = vmatmul.mubr.msk.bf16.vlgmr.msra.gmra.mrb[0].mxu1 %vm388_vm1, %v467_v31 }
 0x212   : > { %1191 = vmatpush3.bf16.xpose.msra.mxu1 %v532_v30  ;;  %1192 = vmatprep.mubr.msk.bf16.mxu1 %vm1313_vm0, %v1312_v0 }
 0x213   : > { %1202 = vmatprep.subr.bf16.mxu1 %v1312_v0 }
 0x219   : > { %1193 = vmatmul.mubr.msk.bf16.vlgmr.msra.gmra.mrb[4].mxu1 %vm388_vm1, %v522_v28 }
 0x21a   : > { %1203 = vmatpush3.bf16.xpose.msra.mxu1 %v675_v34  ;;  %1204 = vmatprep.mubr.msk.bf16.mxu1 %vm1313_vm0, %v1312_v0 }
 0x21b   : > { %1214 = vmatprep.subr.bf16.mxu1 %v1312_v0 }
 0x221   : > { %1205 = vmatmul.mubr.msk.bf16.vlgmr.msra.gmra.mrb[8].mxu1 %vm388_vm1, %v668_v33 }
 0x222   : > { %1215 = vmatpush3.bf16.xpose.msra.mxu1 %v815_v36  ;;  %1216 = vmatprep.mubr.msk.bf16.mxu1 %vm1313_vm0, %v1312_v0 }
 0x229   : > { %1217 = vmatmul.mubr.msk.bf16.vlgmr.msra.gmra.mrb[12].mxu1 %vm388_vm1, %v808_v37 }
 0x2e4   : > { %v1448_v38 = vpop.f32.mrb[0].mxu1 }
 0x2e5   : > { %v1188_v39 = vpop.f32.mrb[1].mxu1 }
 0x2e6   : > { %v512_v40 = vpop.f32.mrb[2].mxu1 }
 0x2e7   : > { %v1189_v41 = vpop.f32.mrb[3].mxu1 }
 0x2ec   : > { %v568_v42 = vpop.f32.mrb[4].mxu1 }
 0x2ed   : > { %v574_v43 = vsel %vm387_vm3, -1e+09, %v568_v42  ;;  %v1194_v44 = vpop.f32.mrb[5].mxu1 }
 0x2ee   : > { %v571_v45 = vpop.f32.mrb[6].mxu1  ;;  %v577_v46 = vsel %vm388_vm1, %v574_v43, -inf }
 0x2ef   : > { %578 = vmax.xlane.f32.xlu1 %v577_v46  ;;  %v1195_v47 = vpop.f32.mrb[7].mxu1  ;;  %v452_v45 = vld [vmem:[#allocation3] sm:$0xff] }
 0x2f0   : > { %v453_v46 = vmul.f32 %v1466_v5, %v452_v45 }
 0x2f4   : > { %v711_v48 = vpop.f32.mrb[8].mxu1 }
 0x2f5   : > { %v717_v49 = vsel %vm387_vm3, -1e+09, %v711_v48  ;;  %v1206_v50 = vpop.f32.mrb[9].mxu1 }
 0x2f6   : > { %v714_v51 = vpop.f32.mrb[10].mxu1  ;;  %v720_v52 = vsel %vm388_vm1, %v717_v49, -inf }
 0x2f7   : > { %721 = vmax.xlane.f32.xlu0 %v720_v52  ;;  %v1207_v53 = vpop.f32.mrb[11].mxu1 }
 0x2f8   : > { %v736_v53 = vld [vmem:[#allocation3 + $0x10] sm:$0xff] }
 0x2fc   : > { %v851_v54 = vpop.f32.mrb[12].mxu1 }
 0x2fd   : > { %v1458_v55 = vsel %vm387_vm3, -1e+09, %v851_v54  ;;  %v1218_v56 = vpop.f32.mrb[13].mxu1 }
 0x2fe   : > { %v854_v57 = vpop.f32.mrb[14].mxu1  ;;  %v860_v58 = vsel %vm388_vm1, %v1458_v55, -inf }
 0x2ff   : > { %861 = vmax.xlane.f32.xlu1 %v860_v58  ;;  %v1219_v59 = vpop.f32.mrb[15].mxu1  ;;  %v876_v58 = vld [vmem:[#allocation3 + $0x18] sm:$0xff] }
 0x37c   : > { %v579_v62 = vpop.xlane.xlu1 %578 }
 0x37d   : > { %v580_v63 = vmax.f32 %v576_v60, %v579_v62 }
 0x37f   : > { %666 = vst.msk [vmem:[#allocation2 + $0x8] sm:$0xff] %vm369_vm2, %v580_v63  ;;  %586 = vperm.xlu1 %1261, %v580_v63   ;;  %v581_v10 = vsub.f32 %v576_v60, %v580_v63 }
 0x381   : > { %v582_v12 = vmul.f32 1.442695, %v581_v10 }
 0x383   : > { %611 = vrot.lane.b32.xlu1 %v1154_v1, %s1316_s28  ;;  %1268 = vpow2.f32 %v582_v12 }
 0x384   : > { %v722_v3 = vpop.xlane.xlu0 %721 }
 0x385   : > { %v723_v4 = vmax.f32 %v719_v2, %v722_v3 }
 0x387   : > { %806 = vst.msk [vmem:[#allocation2 + $0x10] sm:$0xff] %vm369_vm2, %v723_v4  ;;  %729 = vperm.xlu0 %1260, %v723_v4   ;;  %v724_v13 = vsub.f32 %v719_v2, %v723_v4 }
 0x389   : > { %v725_v14 = vmul.f32 1.442695, %v724_v13 }
 0x38b   : > { %463 = vperm.xlu0 %1260, %v1466_v5   ;;  %1270 = vpow2.f32 %v725_v14 }
 0x38c   : > { %v862_v7 = vpop.xlane.xlu1 %861 }
 0x38d   : > { %v1472_v8 = vmax.f32 %v1468_v6, %v862_v7  ;;  %v1269_v15 = vpop.eup %1268 }
 0x38f   : > { %v864_v9 = vsub.f32 %v1468_v6, %v1472_v8  ;;  %946 = vst.msk [vmem:[#allocation2 + $0x18] sm:$0xff] %vm369_vm2, %v1472_v8  ;;  %869 = vperm.xlu1 %1261, %v1472_v8  }
 0x391   : > { %v865_v50 = vmul.f32 1.442695, %v864_v9 }
 0x393   : > { %751 = vrot.lane.b32.xlu1 %v1154_v1, %s1317_s29 }
 0x395   : > { %v1271_v16 = vpop.eup %1270 }
 0x396   : > { %v737_v54 = vmul.f32 %v1271_v16, %v736_v53 }
 0x397   : > { %891 = vrot.lane.b32.xlu1 %v1154_v1, %s1318_s30 }
 0x3bb   : > { %455 = vadd.xlane.f32.xlu1 %v454_v11 }
 0x3cc   : > { %603 = vperm.xlu1 %1261, %v1269_v15  }
 0x3d0   : > { %746 = vperm.xlu1 %1261, %v1271_v16  }
 0x3fe   : > { %v587_v17 = vpop.permute.xlu1 %586 }
 0x3ff   : > { %v589_v18 = vsub.f32 %v574_v43, %v587_v17 }
 0x401   : > { %v590_v19 = vmul.f32 1.442695, %v589_v18 }
 0x402   : > { %v612_v20 = vpop.permute.xlu1 %611 }
 0x403   : > { %1272 = vpow2.f32 %v590_v19  ;;  %v617_v21 = vsel %vm471_vm4, %v612_v20, 0 }
 0x404   : > { %1197 = vmatpush3.bf16.msra.mxu0 %v617_v21 }
 0x405   : > { %1208 = vmatprep.subr.bf16.mxu0 %v1312_v0 }
 0x406   : > { %v730_v22 = vpop.permute.xlu0 %729 }
 0x407   : > { %v732_v23 = vsub.f32 %v717_v49, %v730_v22  ;;  %v593_v49 = vld [vmem:[#allocation3 + $0x8] sm:$0xff] }
 0x409   : > { %v733_v25 = vmul.f32 1.442695, %v732_v23 }
 0x40a   : > { %v464_v26 = vpop.permute.xlu0 %463 }
 0x40b   : > { %1274 = vpow2.f32 %v733_v25  ;;  %v466_v27 = vmul.f32 %v464_v26, %v460_v24 }
 0x40d   : > { %v1273_v28 = vpop.eup %1272  ;;  %v515_v29 = vadd.f32 %v1448_v38, %v466_v27 }
 0x40e   : > { %v870_v30 = vpop.permute.xlu1 %869  ;;  %v595_v31 = vsel %vm388_vm1, %v1273_v28, 0.0  ;;  %v607_v32 = vpack.c.bf16 %v1273_v28, %v1273_v28 }
 0x40f   : > { %516 = vst.msk [vmem:[#allocation4] sm:$0xff] %vm388_vm1, %v515_v29  ;;  %v872_v33 = vsub.f32 %v1458_v55, %v870_v30  ;;  %596 = vadd.xlane.f32.xlu0 %v595_v31 }
 0x410   : > { %1199 = vmatmul.mubr.msk.bf16.vlgmr.msra.gmra.mrb[4].mxu0 %vm388_vm1, %v607_v32 }
 0x411   : > { %v873_v34 = vmul.f32 1.442695, %v872_v33  ;;  %1210 = vmatprep.mubr.msk.bf16.mxu0 %vm1313_vm0, %v1312_v0 }
 0x412   : > { %v752_v35 = vpop.permute.xlu1 %751 }
 0x413   : > { %1276 = vpow2.f32 %v873_v34  ;;  %v757_v36 = vsel %vm471_vm4, %v752_v35, 0 }
 0x414   : > { %1209 = vmatpush3.bf16.msra.mxu0 %v757_v36  ;;  %1278 = vpow2.f32 %v865_v50 }
 0x415   : > { %v1275_v37 = vpop.eup %1274  ;;  %1220 = vmatprep.subr.bf16.mxu0 %v1312_v0 }
 0x416   : > { %v738_v38 = vsel %vm388_vm1, %v1275_v37, 0.0  ;;  %v750_v39 = vpack.c.bf16 %v1275_v37, %v1275_v37  ;;  %v892_v40 = vpop.permute.xlu1 %891  ;;  %v600_v20 = vld [vmem:[#allocation4] sm:$0xff] }
 0x417   : > { %739 = vadd.xlane.f32.xlu0 %v738_v38  ;;  %v897_v41 = vsel %vm471_vm4, %v892_v40, 0 }
 0x418   : > { %1211 = vmatmul.mubr.msk.bf16.vlgmr.msra.gmra.mrb[8].mxu0 %vm388_vm1, %v750_v39 }
 0x419   : > { %1221 = vmatpush3.bf16.msra.mxu0 %v897_v41  ;;  %1222 = vmatprep.mubr.msk.bf16.mxu0 %vm1313_vm0, %v1312_v0  ;;  %v594_v0 = vmul.f32 %v1269_v15, %v593_v49 }
 0x41d   : > { %v1277_v42 = vpop.eup %1276 }
 0x41e   : > { %v878_v43 = vsel %vm388_vm1, %v1277_v42, 0.0  ;;  %v890_v44 = vpack.c.bf16 %v1277_v42, %v1277_v42  ;;  %v1279_v57 = vpop.eup %1278 }
 0x41f   : > { %879 = vadd.xlane.f32.xlu0 %v878_v43  ;;  %v877_v59 = vmul.f32 %v1279_v57, %v876_v58 }
 0x420   : > { %1223 = vmatmul.mubr.msk.bf16.vlgmr.msra.gmra.mrb[12].mxu0 %vm388_vm1, %v890_v44 }
 0x448   : > { %v456_v47 = vpop.xlane.xlu1 %455 }
 0x449   : > { %v457_v48 = vadd.f32 %v456_v47, %v453_v46 }
 0x44b   : > { %459 = vst.msk [vmem:[#allocation3] sm:$0xff] %vm369_vm2, %v457_v48 }
 0x44c   : > { %v604_v19 = vpop.permute.xlu1 %603 }
 0x44d   : > { %v606_v21 = vmul.f32 %v604_v19, %v600_v20 }
 0x450   : > { %v747_v24 = vpop.permute.xlu1 %746 }
 0x452   : > { %v951_v62 = vld [vmem:[#allocation3] sm:$0xff] }
 0x453   : > { %1280 = vrcp.f32 %v951_v62 }
 0x45d   : > { %v1281_v5 = vpop.eup %1280 }
 0x49c   : > { %v597_v51 = vpop.xlane.xlu0 %596 }
 0x49d   : > { %v598_v52 = vadd.f32 %v597_v51, %v594_v0 }
 0x49f   : > { %599 = vst.msk [vmem:[#allocation3 + $0x8] sm:$0xff] %vm369_vm2, %v598_v52 }
 0x4a4   : > { %v740_v55 = vpop.xlane.xlu0 %739 }
 0x4a5   : > { %v741_v56 = vadd.f32 %v740_v55, %v737_v54 }
 0x4a6   : > { %v959_v6 = vld [vmem:[#allocation3 + $0x8] sm:$0xff] }
 0x4a7   : > { %742 = vst.msk [vmem:[#allocation3 + $0x10] sm:$0xff] %vm369_vm2, %v741_v56 }
 0x4ac   : > { %v880_v60 = vpop.xlane.xlu0 %879 }
 0x4ad   : > { %v881_v61 = vadd.f32 %v880_v60, %v877_v59 }
 0x4ae   : > { %v967_v63 = vld [vmem:[#allocation3 + $0x10] sm:$0xff] }
 0x4af   : > { %882 = vst.msk [vmem:[#allocation3 + $0x18] sm:$0xff] %vm369_vm2, %v881_v61  ;;  %1282 = vrcp.f32 %v967_v63 }
 0x4b0   : > { %1284 = vrcp.f32 %v959_v6 }
 0x4b6   : > { %v975_v12 = vld [vmem:[#allocation3 + $0x18] sm:$0xff] }
 0x4b7   : > { %1286 = vrcp.f32 %v975_v12 }
 0x4b9   : > { %v1283_v7 = vpop.eup %1282 }
 0x4ba   : > { %v1285_v17 = vpop.eup %1284 }
 0x4c1   : > { %v1287_v18 = vpop.eup %1286 }
 0x4e3   : > { %v653_v1 = vpop.f32.mrb[4].mxu0 }
 0x4e4   : > { %660 = vrot.lane.b32.xlu0 %v653_v1, %s1319_s8  ;;  %v1200_v2 = vpop.f32.mrb[5].mxu0 }
 0x4e5   : > { %v656_v3 = vpop.f32.mrb[6].mxu0 }
 0x4e6   : > { %v1201_v4 = vpop.f32.mrb[7].mxu0 }
 0x4e8   : > { %955 = vperm.xlu0 %1260, %v1281_v5  }
 0x4eb   : > { %v793_v8 = vpop.f32.mrb[8].mxu0 }
 0x4ec   : > { %971 = vperm.xlu0 %1260, %v1283_v7   ;;  %800 = vrot.lane.b32.xlu1 %v793_v8, %s1320_s9  ;;  %v1212_v9 = vpop.f32.mrb[9].mxu0 }
 0x4ed   : > { %v796_v10 = vpop.f32.mrb[10].mxu0 }
 0x4ee   : > { %v1213_v11 = vpop.f32.mrb[11].mxu0 }
 0x4f0   : > { %886 = vperm.xlu1 %1261, %v1279_v57  }
 0x4f3   : > { %v933_v13 = vpop.f32.mrb[12].mxu0 }
 0x4f4   : > { %940 = vrot.lane.b32.xlu1 %v933_v13, %s1321_s10  ;;  %v1224_v14 = vpop.f32.mrb[13].mxu0 }
 0x4f5   : > { %v936_v15 = vpop.f32.mrb[14].mxu0 }
 0x4f6   : > { %v1225_v16 = vpop.f32.mrb[15].mxu0 }
 0x4f8   : > { %963 = vperm.xlu1 %1261, %v1285_v17  }
 0x4fc   : > { %979 = vperm.xlu1 %1261, %v1287_v18  }
 0x556   : > { %v661_v22 = vpop.permute.xlu0 %660 }
 0x557   : > { %v663_v23 = vadd.f32 %v661_v22, %v606_v21 }
 0x559   : > { %665 = vst.msk [vmem:[#allocation4] sm:$0xff] %vm664_vm6, %v663_v23 }
 0x55e   : > { %v801_v27 = vpop.permute.xlu1 %800 }
 0x560   : > { %v743_v25 = vld [vmem:[#allocation4] sm:$0xff] }
 0x561   : > { %v749_v26 = vmul.f32 %v747_v24, %v743_v25 }
 0x563   : > { %v803_v28 = vadd.f32 %v801_v27, %v749_v26 }
 0x565   : > { %805 = vst.msk [vmem:[#allocation4] sm:$0xff] %vm804_vm7, %v803_v28 }
 0x567   : > { %v956_v34 = vpop.permute.xlu0 %955 }
 0x56b   : > { %v972_v36 = vpop.permute.xlu0 %971 }
 0x56c   : > { %v883_v30 = vld [vmem:[#allocation4] sm:$0xff] }
 0x56f   : > { %v887_v29 = vpop.permute.xlu1 %886 }
 0x570   : > { %v889_v31 = vmul.f32 %v887_v29, %v883_v30 }
 0x573   : > { %v941_v32 = vpop.permute.xlu1 %940 }
 0x574   : > { %v943_v33 = vadd.f32 %v941_v32, %v889_v31 }
 0x576   : > { %945 = vst.msk [vmem:[#allocation4] sm:$0xff] %vm944_vm8, %v943_v33 }
 0x577   : > { %v964_v35 = vpop.permute.xlu1 %963 }
 0x57b   : > { %v980_v41 = vpop.permute.xlu1 %979 }
 0x57d   : > { %v950_v37 = vld [vmem:[#allocation4] sm:$0xff] }
 0x57e   : > { %v958_v38 = vmul.f32 %v956_v34, %v950_v37  ;;  %v974_v39 = vmul.f32 %v972_v36, %v950_v37  ;;  %v966_v40 = vmul.f32 %v964_v35, %v950_v37  ;;  %v982_v43 = vmul.f32 %v980_v41, %v950_v37 }
 0x580   : > { %v983_v42 = vsel %vm388_vm1, %v958_v38, %v966_v40 }
 0x581   : > { %v985_v44 = vsel %vm984_vm9, %v983_v42, %v974_v39 }
 0x582   : > { %v987_v45 = vsel %vm986_vm10, %v985_v44, %v982_v43 }
 0x583   : > { %v988_v46 = vpack.c.bf16 %v987_v45, %v987_v45 }
 0x585   : > { %990 = vst.msk [vmem:[%s362_s13] sm:$0xf] %vm989_vm11, %v988_v46 }
 0x586 PF: > { %s14_s17 = sadd.s32 1, %s1310_s17   ;;  %s1528_s15 = smov %s1306_s16 }
 0x587   : > { %p11_p5 = scmp.ge.s32.totalorder %s14_s17, 4   ;;  %s1529_s16 = smov %s1531_s18 }
 0x589   :  { %13 = sbr.rel (!%p11_p5) target bundleno = 2 (0x2), region = 89 }

// kernel: decoder_layer.12
= control target key start
LH: loop header
LB: loop body
LE: loop exit
PB: predicated region body
PF: predicated region fallthrough
CT: control target
= control target key end

     0   :  { %v231_v0 = vmov 0.0   ;;  %vm232_vm0 = vmmov 0   ;;  %vm49_vm1 = vcmask 261120   ;;  %vm102_vm2 = vcmask 257024   ;;  %s308_s1 = inlined_call_operand.vmem [shape: bf16[32,32], index: 1, kind: input, shape index: {}]   ;;  %s309_s3 = inlined_call_operand.vmem [shape: bf16[32,32], index: 3, kind: input, shape index: {}]   ;;  %s310_s0 = inlined_call_operand.vmem [shape: f32[16,32], index: 0, kind: input, shape index: {}]   ;;  %s311_s2 = inlined_call_operand.vmem [shape: f32[1,32], index: 2, kind: input, shape index: {}]   ;;  %s312_s4 = inlined_call_operand.vmem [shape: f32[1,32], index: 4, kind: input, shape index: {}]   ;;  %s313_s5 = inlined_call_operand.vmem [shape: bf16[16,32], index: 5, kind: output, shape index: {0}]   ;;  %s314_s6 = inlined_call_operand.vmem [shape: bf16[16,32], index: 6, kind: output, shape index: {1}]  }
   0x1   :  { %209 = vmatprep.subr.bf16.mxu0 %v231_v0  ;;  %217 = vmatprep.subr.bf16.mxu1 %v231_v0  ;;  %v227_v1 = vld [vmem:[%s308_s1] sm:$0xff]   ;;  %v229_v3 = vld [vmem:[%s308_s1 + $0x8] sm:$0xff]  }
   0x2   :  { %v228_v2 = vld [vmem:[%s309_s3] sm:$0xff]   ;;  %213 = vmatprep.mubr.msk.bf16.mxu0 %vm232_vm0, %v231_v0  ;;  %221 = vmatprep.mubr.msk.bf16.mxu1 %vm232_vm0, %v231_v0  ;;  %v230_v4 = vld [vmem:[%s309_s3 + $0x8] sm:$0xff]  }
   0x3   :  { %210 = vmatpush3.bf16.msra.mxu0 %v227_v1  ;;  %218 = vmatpush3.bf16.msra.mxu1 %v228_v2  ;;  %v23_v5 = vld [vmem:[%s310_s0] sm:$0xff]  ;;  %v24_v6 = vld [vmem:[%s310_s0 + $0x8] sm:$0xff] }
   0x4   :  { %211 = vmatprep.subr.bf16.mxu0 %v231_v0  ;;  %219 = vmatprep.subr.bf16.mxu1 %v231_v0  ;;  %v25_v7 = vpack.c.bf16 %v24_v6, %v23_v5  ;;  %v187_v8 = vld [vmem:[%s311_s2] ss:$0 sm:$0xff] }
   0x5   :  { %v193_v9 = vld [vmem:[%s312_s4] ss:$0 sm:$0xff] }
   0x7   :  { %212 = vmatpush3.bf16.msra.mxu0 %v229_v3  ;;  %220 = vmatpush3.bf16.msra.mxu1 %v230_v4 }
   0xa   :  { %214 = vmatmul.mubr.msk.bf16.vlgmr.msra.gmra.mrb[0].mxu0 %vm49_vm1, %v25_v7  ;;  %222 = vmatmul.mubr.msk.bf16.vlgmr.msra.gmra.mrb[0].mxu1 %vm49_vm1, %v25_v7 }
  0xdd   :  { %v87_v10 = vpop.f32.mrb[0].mxu0  ;;  %v162_v12 = vpop.f32.mrb[0].mxu1 }
  0xde   :  { %v88_v11 = vadd.f32 %v187_v8, %v87_v10  ;;  %v215_v13 = vpop.f32.mrb[1].mxu0  ;;  %v163_v14 = vadd.f32 %v193_v9, %v162_v12  ;;  %v223_v15 = vpop.f32.mrb[1].mxu1 }
  0xdf   :  { %v90_v16 = vpop.f32.mrb[2].mxu0  ;;  %v165_v19 = vpop.f32.mrb[2].mxu1 }
  0xe0   :  { %v199_v17 = vpack.c.bf16 %v88_v11, %v88_v11  ;;  %v91_v18 = vadd.f32 %v187_v8, %v90_v16  ;;  %v216_v20 = vpop.f32.mrb[3].mxu0  ;;  %v201_v21 = vpack.c.bf16 %v163_v14, %v163_v14  ;;  %v166_v22 = vadd.f32 %v193_v9, %v165_v19  ;;  %v224_v23 = vpop.f32.mrb[3].mxu1 }
  0xe2   :  { %103 = vst.msk [vmem:[%s313_s5] sm:$0xf] %vm102_vm2, %v199_v17  ;;  %v200_v24 = vpack.c.bf16 %v91_v18, %v91_v18  ;;  %177 = vst.msk [vmem:[%s314_s6] sm:$0xf] %vm102_vm2, %v201_v21  ;;  %v202_v25 = vpack.c.bf16 %v166_v22, %v166_v22 }
  0xe4   :  { %104 = vst.msk [vmem:[%s313_s5 + $0x4] sm:$0xf] %vm102_vm2, %v200_v24  ;;  %178 = vst.msk [vmem:[%s314_s6 + $0x4] sm:$0xf] %vm102_vm2, %v202_v25 }

// kernel: decoder_layer.15
= control target key start
LH: loop header
LB: loop body
LE: loop exit
PB: predicated region body
PF: predicated region fallthrough
CT: control target
= control target key end

     0   :  { %vm35_vm0 = vcmask 261120   ;;  %v328_v17 = vmov 0.0   ;;  %vm329_vm1 = vmmov 0   ;;  %vm212_vm6 = vcmask 523264   ;;  %s424_s0 = inlined_call_operand.vmem [shape: f32[16,32], index: 0, kind: input, shape index: {}, may-alias: {0,7}]   ;;  %s425_s6 = inlined_call_operand.vmem [shape: f32[1,32], index: 6, kind: input, shape index: {}]   ;;  %s426_s3 = inlined_call_operand.vmem [shape: bf16[32,64], index: 3, kind: input, shape index: {}]   ;;  %s427_s5 = inlined_call_operand.vmem [shape: bf16[64,32], index: 5, kind: input, shape index: {}]   ;;  %s428_s1 = inlined_call_operand.vmem [shape: f32[1,32], index: 1, kind: input, shape index: {}]   ;;  %s429_s2 = inlined_call_operand.vmem [shape: f32[1,32], index: 2, kind: input, shape index: {}]   ;;  %s430_s4 = inlined_call_operand.vmem [shape: f32[1,64], index: 4, kind: input, shape index: {}]   ;;  %s431_s7 = inlined_call_operand.vmem [shape: f32[16,32], index: 7, kind: output, shape index: {}, may-alias: {0,7}]  }
   0x1   :  { %v31_v0 = vld [vmem:[%s424_s0] sm:$0xff]  ;;  %v32_v2 = vld [vmem:[%s424_s0 + $0x8] sm:$0xff]  ;;  %292 = vmatprep.subr.bf16.mxu0 %v328_v17  ;;  %296 = vmatprep.mubr.msk.bf16.mxu0 %vm329_vm1, %v328_v17  ;;  %v318_v50 = vld [vmem:[%s427_s5 + $0x10] sm:$0xff]  }
   0x2   :  { %v274_v1 = vld [vmem:[%s425_s6] ss:$0 sm:$0xff]  ;;  %v36_v3 = vsel %vm35_vm0, %v31_v0, 0.0  ;;  %v39_v6 = vsel %vm35_vm0, %v32_v2, 0.0  ;;  %300 = vmatprep.subr.bf16.mxu1 %v328_v17  ;;  %308 = vmatprep.mubr.msk.bf16.mxu1 %vm329_vm1, %v328_v17  ;;  %v315_v19 = vld [vmem:[%s426_s3 + $0x8] sm:$0xff]   ;;  %v319_v51 = vld [vmem:[%s427_s5 + $0x18] sm:$0xff]  }
   0x3   :  { %v102_v4 = vadd.f32 %v274_v1, %v31_v0  ;;  %v103_v5 = vadd.f32 %v274_v1, %v32_v2  ;;  %37 = vadd.xlane.f32.xlu0 %v36_v3  ;;  %v314_v18 = vld [vmem:[%s426_s3] sm:$0xff]   ;;  %v317_v21 = vld [vmem:[%s427_s5 + $0x8] sm:$0xff]  }
   0x4   :  { %293 = vmatpush3.bf16.msra.mxu0 %v314_v18  ;;  %v316_v20 = vld [vmem:[%s427_s5] sm:$0xff]  }
   0x5   :  { %104 = vst.msk [vmem:[#allocation2] sm:$0xff] %vm35_vm0, %v102_v4  ;;  %105 = vst.msk [vmem:[#allocation2 + $0x8] sm:$0xff] %vm35_vm0, %v103_v5  ;;  %294 = vmatprep.subr.bf16.mxu0 %v328_v17  ;;  %301 = vmatpush3.bf16.msra.mxu1 %v316_v20  ;;  %v272_v40 = vld [vmem:[%s428_s1] ss:$0 sm:$0xff] }
   0x6   :  { %302 = vmatprep.subr.bf16.mxu1 %v328_v17  ;;  %v273_v44 = vld [vmem:[%s429_s2] ss:$0 sm:$0xff] }
   0x7   :  { %40 = vadd.xlane.f32.xlu0 %v39_v6  ;;  %v275_v52 = vld [vmem:[%s430_s4] ss:$0 sm:$0xff] }
   0x8   :  { %295 = vmatpush3.bf16.msra.mxu0 %v315_v19 }
   0x9   :  { %303 = vmatpush3.bf16.msra.mxu1 %v317_v21 }
   0xa   :  { %304 = vmatprep.subr.bf16.mxu1 %v328_v17 }
   0xc   :  { %v177_v62 = vld [vmem:[#allocation2] sm:$0xff] }
   0xd   :  { %305 = vmatpush3.bf16.msra.mxu1 %v318_v50 }
   0xe   :  { %306 = vmatprep.subr.bf16.mxu1 %v328_v17 }
  0x11   :  { %307 = vmatpush3.bf16.msra.mxu1 %v319_v51 }
  0x90   :  { %v38_v7 = vpop.xlane.xlu0 %37 }
  0x91   :  { %v43_v8 = vmul.f32 0.03125, %v38_v7 }
  0x93   :  { %v45_v9 = vsub.f32 %v31_v0, %v43_v8  ;;  %v178_v0 = vld [vmem:[#allocation2 + $0x8] sm:$0xff] }
  0x94   :  { %v41_v10 = vpop.xlane.xlu0 %40 }
  0x95   :  { %v44_v11 = vmul.f32 0.03125, %v41_v10  ;;  %v47_v12 = vmul.f32 %v45_v9, %v45_v9 }
  0x97   :  { %v46_v13 = vsub.f32 %v32_v2, %v44_v11  ;;  %v49_v14 = vsel %vm35_vm0, %v47_v12, 0.0 }
  0x98   :  { %50 = vadd.xlane.f32.xlu1 %v49_v14 }
  0x99   :  { %v48_v15 = vmul.f32 %v46_v13, %v46_v13 }
  0x9b   :  { %v52_v16 = vsel %vm35_vm0, %v48_v15, 0.0 }
  0x9c   :  { %53 = vadd.xlane.f32.xlu1 %v52_v16 }
 0x125   :  { %v51_v22 = vpop.xlane.xlu1 %50 }
 0x126   :  { %v55_v23 = vmul.f32 0.032258064, %v51_v22 }
 0x128   :  { %320 = vrsqrt.f32 %v55_v23  ;;  %vm59_vm2 = vcmp.eq.f32.partialorder %v55_v23, inf  ;;  %v62_v28 = vand.u32 2147483648, %v55_v23  ;;  %vm61_vm3 = vcmp.eq.f32.partialorder %v55_v23, 0.0 }
 0x129   :  { %v54_v24 = vpop.xlane.xlu1 %53 }
 0x12a   :  { %v56_v25 = vmul.f32 0.032258064, %v54_v24 }
 0x12c   :  { %322 = vrsqrt.f32 %v56_v25  ;;  %vm66_vm4 = vcmp.eq.f32.partialorder %v56_v25, inf  ;;  %v69_v34 = vand.u32 2147483648, %v56_v25  ;;  %vm68_vm5 = vcmp.eq.f32.partialorder %v56_v25, 0.0 }
 0x132   :  { %v321_v26 = vpop.eup %320 }
 0x133   :  { %v58_v27 = vmul.f32 %v321_v26, %v55_v23 }
 0x135   :  { %v60_v29 = vsel %vm59_vm2, %v55_v23, %v58_v27 }
 0x136   :  { %v323_v30 = vpop.eup %322  ;;  %v63_v31 = vsel %vm61_vm3, %v62_v28, %v60_v29 }
 0x137   :  { %v71_v32 = vadd.f32 1e-06, %v63_v31  ;;  %v65_v33 = vmul.f32 %v323_v30, %v56_v25 }
 0x139   :  { %324 = vrcp.f32 %v71_v32  ;;  %v67_v35 = vsel %vm66_vm4, %v56_v25, %v65_v33 }
 0x13a   :  { %v70_v36 = vsel %vm68_vm5, %v69_v34, %v67_v35 }
 0x13b   :  { %v72_v37 = vadd.f32 1e-06, %v70_v36 }
 0x13d   :  { %326 = vrcp.f32 %v72_v37 }
 0x143   :  { %v325_v38 = vpop.eup %324 }
 0x144   :  { %v75_v39 = vmul.f32 %v325_v38, %v45_v9 }
 0x146   :  { %v83_v42 = vmul.f32 %v272_v40, %v75_v39 }
 0x147   :  { %v327_v41 = vpop.eup %326 }
 0x148   :  { %v76_v43 = vmul.f32 %v327_v41, %v46_v13  ;;  %v91_v46 = vadd.f32 %v273_v44, %v83_v42 }
 0x14a   :  { %v84_v45 = vmul.f32 %v272_v40, %v76_v43 }
 0x14c   :  { %v92_v47 = vadd.f32 %v273_v44, %v84_v45 }
 0x14e   :  { %v93_v48 = vpack.c.bf16 %v92_v47, %v91_v46 }
 0x150   :  { %94 = vst.msk [vmem:[#allocation3] sm:$0xff] %vm35_vm0, %v93_v48 }
 0x157   :  { %v106_v49 = vld [vmem:[#allocation3] sm:$0xff] }
 0x158   :  { %297 = vmatmul.mubr.msk.bf16.vlgmr.msra.gmra.mrb[0].mxu0 %vm35_vm0, %v106_v49 }
 0x22b   :  { %v168_v53 = vpop.f32.mrb[0].mxu0 }
 0x22c   :  { %v169_v54 = vadd.f32 %v275_v52, %v168_v53  ;;  %v298_v55 = vpop.f32.mrb[1].mxu0 }
 0x22d   :  { %v171_v56 = vpop.f32.mrb[2].mxu0 }
 0x22e   :  { %v172_v57 = vadd.f32 %v275_v52, %v171_v56  ;;  %v299_v58 = vpop.f32.mrb[3].mxu0  ;;  %v175_v59 = vmax.f32 %v169_v54, 0.0 }
 0x230   :  { %v176_v60 = vmax.f32 %v172_v57, 0.0 }
 0x232   :  { %v179_v61 = vpack.c.bf16 %v176_v60, %v175_v59 }
 0x234   :  { %309 = vmatmul.mubr.msk.bf16.vlgmr.msra.gmra.mrb[0].mxu1 %vm212_vm6, %v179_v61 }
 0x307   :  { %v250_v63 = vpop.f32.mrb[0].mxu1 }
 0x308   :  { %v257_v1 = vadd.f32 %v250_v63, %v177_v62  ;;  %v310_v2 = vpop.f32.mrb[1].mxu1 }
 0x309   :  { %v253_v3 = vpop.f32.mrb[2].mxu1 }
 0x30a   :  { %259 = vst.msk [vmem:[#allocation2] sm:$0xff] %vm35_vm0, %v257_v1  ;;  %v258_v4 = vadd.f32 %v253_v3, %v178_v0  ;;  %v311_v5 = vpop.f32.mrb[3].mxu1 }
 0x30c   :  { %260 = vst.msk [vmem:[#allocation2 + $0x8] sm:$0xff] %vm35_vm0, %v258_v4 }
 0x311   :  { %v264_v6 = vld [vmem:[#allocation2] sm:$0xff] }
 0x312   :  { %266 = vst.msk [vmem:[%s431_s7] sm:$0xff] %vm35_vm0, %v264_v6 }
 0x313   :  { %v265_v7 = vld [vmem:[#allocation2 + $0x8] sm:$0xff] }
 0x314   :  { %267 = vst.msk [vmem:[%s431_s7 + $0x8] sm:$0xff] %vm35_vm0, %v265_v7 }

// kernel: decoder_layer.13
= control target key start
LH: loop header
LB: loop body
LE: loop exit
PB: predicated region body
PF: predicated region fallthrough
CT: control target
= control target key end

     0   :  { %s1342_s15 = smov 0   ;;  %s1344_s16 = smov 0   ;;  %s1518_s0 = inlined_call_operand.vmem [shape: s8[2,1,8], index: 0, kind: input, shape index: {}]   ;;  %s1519_s1 = inlined_call_operand.vmem [shape: bf16[2,8,32], index: 1, kind: input, shape index: {}]   ;;  %s1520_s2 = inlined_call_operand.vmem [shape: bf16[2,8,32], index: 2, kind: input, shape index: {}]   ;;  %s1521_s3 = inlined_call_operand.vmem [shape: bf16[2,8,32], index: 3, kind: input, shape index: {}]   ;;  %s1522_s4 = inlined_call_operand.vmem [shape: bf16[2,8,32], index: 4, kind: output, shape index: {}]  }
   0x1   :  { %s1346_s17 = smov 0  }
   0x2 LB: > { %s40_s18 = sadd.s32 1, %s1301_s16  ;;  %p1139_p0 = scmp.ge.s32.totalorder %s1305_s17, 1  ;;  %s1305_s17 = sphi %s1346_s17, %s14_s17   ;;  %s1301_s16 = sphi %s1344_s16, %s1524_s16   ;;  %s1297_s15 = sphi %s1342_s15, %s1523_s15  }
   0x3   : > { %p42_p1 = scmp.ge.s32.totalorder %s40_s18, 2  ;;  %p252_p2 = scmp.lt.s32.totalorder %s1305_s17, 3 }
   0x5   : > { %s1526_s18 = smov (%p42_p1, %s40_s18), 0  ;;  %p253_p3 = pnand %p1139_p0, %p252_p2 }
   0x6   : > { %p314_p4 = scmp.lt.s32.totalorder (!%p253_p3), %s1297_s15, 1  ;;  %v1307_v0 = vmov (!%p253_p3), 0.0   ;;  %vm1308_vm0 = vmmov (!%p253_p3), 0   ;;  %vm385_vm1 = vcmask (!%p253_p3), 64512   ;;  %v1309_v8 = vmov (!%p253_p3), 0   ;;  %s1311_s29 = smov (!%p253_p3), 120  }
   0x7   : > { %256 = sbr.rel (%p253_p3) target bundleno = 1414 (0x586), region = 36  ;;  %1173 = vmatprep.subr.bf16.mxu0 (!%p253_p3), %v1307_v0  ;;  %1175 = vmatprep.mubr.msk.bf16.mxu0 (!%p253_p3), %vm1308_vm0, %v1307_v0  ;;  %vm366_vm3 = vcmask (!%p253_p3), 7168   ;;  %v1310_v10 = vmov (!%p253_p3), -inf   ;;  %v433_v11 = vlaneseq (!%p253_p3)  ;;  %s1312_s30 = smov (!%p253_p3), 112   ;;  %vm474_vm5 = vcmask (!%p253_p3), 1043456  }
   0x8   : > { %1179 = vmatprep.subr.bf16.mxu1 (!%p253_p3), %v1307_v0  ;;  %1181 = vmatprep.mubr.msk.bf16.mxu1 (!%p253_p3), %vm1308_vm0, %v1307_v0  ;;  %367 = vst.msk [vmem:[#allocation2] sm:$0xff] (!%p253_p3), %vm366_vm3, %v1310_v10  ;;  %368 = vst.msk [vmem:[#allocation2 + $0x8] sm:$0xff] (!%p253_p3), %vm366_vm3, %v1310_v10  ;;  %s1313_s5 = smov (!%p253_p3), 104   ;;  %vm375_vm6 = vcmask (!%p253_p3), 261120   ;;  %s1314_s9 = smov (!%p253_p3), 8   ;;  %vm667_vm7 = vcmask (!%p253_p3), 130112  }
   0x9   : > { %1255 = vset.pattern.permute.xlu0 (!%p253_p3), %v1309_v8  ;;  %1256 = vset.pattern.permute.xlu1 (!%p253_p3), %v1309_v8  ;;  %369 = vst.msk [vmem:[#allocation2 + $0x10] sm:$0xff] (!%p253_p3), %vm366_vm3, %v1310_v10  ;;  %370 = vst.msk [vmem:[#allocation2 + $0x18] sm:$0xff] (!%p253_p3), %vm366_vm3, %v1310_v10  ;;  %v434_v12 = vshrl.u32 (!%p253_p3), %v433_v11, 7  ;;  %s1315_s10 = smov (!%p253_p3), 16   ;;  %s1316_s11 = smov (!%p253_p3), 24   ;;  %vm807_vm8 = vcmask (!%p253_p3), 195712  }
   0xa   : > { %371 = vst.msk [vmem:[#allocation3] sm:$0xff] (!%p253_p3), %vm366_vm3, %v1307_v0  ;;  %372 = vst.msk [vmem:[#allocation3 + $0x8] sm:$0xff] (!%p253_p3), %vm366_vm3, %v1307_v0  ;;  %vm947_vm9 = vcmask (!%p253_p3), 261312   ;;  %vm987_vm10 = vcmask (!%p253_p3), 130048   ;;  %vm989_vm11 = vcmask (!%p253_p3), 195584   ;;  %vm992_vm12 = vcmask (!%p253_p3), 257024  }
   0xb   : > { %373 = vst.msk [vmem:[#allocation3 + $0x10] sm:$0xff] (!%p253_p3), %vm366_vm3, %v1307_v0  ;;  %374 = vst.msk [vmem:[#allocation3 + $0x18] sm:$0xff] (!%p253_p3), %vm366_vm3, %v1307_v0  ;;  %v435_v13 = vsub.s32 (!%p253_p3), 0, %v434_v12 }
   0xc   : > { %376 = vst.msk [vmem:[#allocation4] sm:$0xff] (!%p253_p3), %vm375_vm6, %v1307_v0 }
   0xe   : > { %s1528_s15 = smov (!%p314_p4, %s1297_s15), 1 }
   0xf   : > { %s1366_s19 = sshll.u32 %s1528_s15, 2  ;;  %s319_s28 = scalar_lea.vmem %s1518_s0, %s1528_s15  ;;  %v1408_v23 = vld [vmem:[#allocation2] sm:$0xff] }
  0x10   : > { %s339_s22 = scalar_lea.vmem %s1520_s2, %s1366_s19  ;;  %s329_s25 = scalar_lea.vmem %s1519_s1, %s1366_s19  ;;  %v381_v5 = vld [vmem:[%s319_s28] sm:$0x1]  ;;  %v1463_v11 = vld [vmem:[#allocation2 + $0x18] sm:$0xff] }
  0x11   : > { %v379_v1 = vld [vmem:[%s339_s22] sm:$0xf]  ;;  %v382_v6 = vunpack.c.0.s8 %v381_v5  ;;  %s349_s8 = scalar_lea.vmem %s1521_s3, %s1366_s19  ;;  %s359_s14 = scalar_lea.vmem %s1522_s4, %s1366_s19 }
  0x12   : > { %v390_v2 = vsel %vm385_vm1, %v379_v1, 0  ;;  %v377_v3 = vld [vmem:[%s329_s25] sm:$0xf]  ;;  %v1147_v21 = vcombine.low %v379_v1, %v379_v1 }
  0x13   : > { %1174 = vmatpush3.bf16.xpose.msra.mxu0 %v390_v2  ;;  %v378_v4 = vmul.bf16 1052065461, %v377_v3  ;;  %v383_v7 = vcvt.s32.f32 %v382_v6  ;;  %v380_v27 = vld [vmem:[%s349_s8] sm:$0xf]  ;;  %v579_v2 = vld [vmem:[#allocation2 + $0x8] sm:$0xff] }
  0x14   : > { %1191 = vmatprep.subr.bf16.mxu0 %v1307_v0  ;;  %529 = vrot.lane.b32.xlu1 %v1147_v21, %s1311_s29  ;;  %v476_v28 = vsel %vm474_vm5, %v380_v27, 0  ;;  %v1149_v6 = vcombine.low %v380_v27, %v380_v27 }
  0x15   : > { %vm384_vm2 = vcmp.le.f32.partialorder %v383_v7, 0.0  ;;  %v1146_v22 = vcombine.low %v378_v4, %v378_v4  ;;  %1180 = vmatpush3.bf16.msra.mxu1 %v476_v28  ;;  %v722_v7 = vld [vmem:[#allocation2 + $0x10] sm:$0xff] }
  0x16   : > { %v432_v9 = vsel %vm384_vm2, 1, %v1309_v8  ;;  %1185 = vmatprep.subr.bf16.mxu1 %v1307_v0 }
  0x17   : > { %v1396_v14 = vrot.slane %v432_v9, %v435_v13 }
  0x18   : > { %524 = vrot.lane.b32.xlu1 %v1146_v22, %s1311_s29 }
  0x19   : > { %vm437_vm4 = vcmp.eq.s32.totalorder %v1396_v14, 1 }
  0x1a   : > { %1176 = vmatmul.mubr.msk.bf16.vlgmr.msra.gmra.mrb[0].mxu0 %vm385_vm1, %v378_v4 }
  0x1b   : > { %1193 = vmatprep.mubr.msk.bf16.mxu0 %vm1308_vm0, %v1307_v0 }
  0x1c   : > { %672 = vrot.lane.b32.xlu1 %v1147_v21, %s1312_s30 }
  0x20   : > { %670 = vrot.lane.b32.xlu1 %v1146_v22, %s1312_s30 }
  0x24   : > { %812 = vrot.lane.b32.xlu1 %v1147_v21, %s1313_s5 }
  0x28   : > { %810 = vrot.lane.b32.xlu1 %v1146_v22, %s1313_s5 }
  0x86   : > { %v530_v32 = vpop.permute.xlu1 %529 }
  0x87   : > { %v535_v35 = vsel %vm385_vm1, %v530_v32, 0 }
  0x8a   : > { %v525_v33 = vpop.permute.xlu1 %524 }
  0x8e   : > { %v673_v37 = vpop.permute.xlu1 %672 }
  0x8f   : > { %v678_v39 = vsel %vm385_vm1, %v673_v37, 0 }
  0x92   : > { %v671_v38 = vpop.permute.xlu1 %670 }
  0x96   : > { %v813_v40 = vpop.permute.xlu1 %812 }
  0x97   : > { %v818_v41 = vsel %vm385_vm1, %v813_v40, 0 }
  0x9a   : > { %v811_v42 = vpop.permute.xlu1 %810 }
  0xed   : > { %v426_v15 = vpop.f32.mrb[0].mxu0 }
  0xee   : > { %v438_v16 = vsel %vm437_vm4, -1e+09, %v426_v15  ;;  %v1177_v17 = vpop.f32.mrb[1].mxu0 }
  0xef   : > { %v429_v18 = vpop.f32.mrb[2].mxu0  ;;  %v440_v19 = vsel %vm385_vm1, %v438_v16, -inf }
  0xf0   : > { %v1178_v20 = vpop.f32.mrb[3].mxu0  ;;  %441 = vmax.xlane.f32.xlu0 %v440_v19 }
 0x17d   : > { %v442_v24 = vpop.xlane.xlu0 %441 }
 0x17e   : > { %v1411_v25 = vmax.f32 %v1408_v23, %v442_v24 }
 0x180   : > { %v444_v26 = vsub.f32 %v1408_v23, %v1411_v25  ;;  %520 = vst.msk [vmem:[#allocation2] sm:$0xff] %vm366_vm3, %v1411_v25  ;;  %449 = vperm.xlu0 %1255, %v1411_v25  }
 0x182   : > { %v445_v3 = vmul.f32 1.442695, %v444_v26 }
 0x1ff   : > { %v450_v29 = vpop.permute.xlu0 %449 }
 0x200   : > { %v452_v30 = vsub.f32 %v438_v16, %v450_v29  ;;  %v463_v29 = vld [vmem:[#allocation4] sm:$0xff] }
 0x202   : > { %v453_v31 = vmul.f32 1.442695, %v452_v30 }
 0x204   : > { %1259 = vpow2.f32 %v453_v31 }
 0x205   : > { %1261 = vpow2.f32 %v445_v3 }
 0x20e   : > { %v1424_v34 = vpop.eup %1259 }
 0x20f   : > { %v470_v36 = vpack.c.bf16 %v1424_v34, %v1424_v34  ;;  %v1461_v10 = vpop.eup %1261  ;;  %v457_v16 = vsel %vm385_vm1, %v1424_v34, 0.0 }
 0x211   : > { %1182 = vmatmul.mubr.msk.bf16.vlgmr.msra.gmra.mrb[0].mxu1 %vm385_vm1, %v470_v36 }
 0x212   : > { %1186 = vmatpush3.bf16.xpose.msra.mxu1 %v535_v35  ;;  %1187 = vmatprep.mubr.msk.bf16.mxu1 %vm1308_vm0, %v1307_v0 }
 0x213   : > { %1197 = vmatprep.subr.bf16.mxu1 %v1307_v0 }
 0x219   : > { %1188 = vmatmul.mubr.msk.bf16.vlgmr.msra.gmra.mrb[4].mxu1 %vm385_vm1, %v525_v33 }
 0x21a   : > { %1198 = vmatpush3.bf16.xpose.msra.mxu1 %v678_v39  ;;  %1199 = vmatprep.mubr.msk.bf16.mxu1 %vm1308_vm0, %v1307_v0 }
 0x21b   : > { %1209 = vmatprep.subr.bf16.mxu1 %v1307_v0 }
 0x221   : > { %1200 = vmatmul.mubr.msk.bf16.vlgmr.msra.gmra.mrb[8].mxu1 %vm385_vm1, %v671_v38 }
 0x222   : > { %1210 = vmatpush3.bf16.xpose.msra.mxu1 %v818_v41  ;;  %1211 = vmatprep.mubr.msk.bf16.mxu1 %vm1308_vm0, %v1307_v0 }
 0x229   : > { %1212 = vmatmul.mubr.msk.bf16.vlgmr.msra.gmra.mrb[12].mxu1 %vm385_vm1, %v811_v42 }
 0x2e4   : > { %v1443_v43 = vpop.f32.mrb[0].mxu1 }
 0x2e5   : > { %v1183_v44 = vpop.f32.mrb[1].mxu1 }
 0x2e6   : > { %v515_v45 = vpop.f32.mrb[2].mxu1 }
 0x2e7   : > { %v1184_v46 = vpop.f32.mrb[3].mxu1 }
 0x2ec   : > { %v571_v47 = vpop.f32.mrb[4].mxu1 }
 0x2ed   : > { %v577_v48 = vsel %vm437_vm4, -1e+09, %v571_v47  ;;  %v1189_v49 = vpop.f32.mrb[5].mxu1 }
 0x2ee   : > { %v574_v50 = vpop.f32.mrb[6].mxu1  ;;  %v580_v51 = vsel %vm385_vm1, %v577_v48, -inf }
 0x2ef   : > { %581 = vmax.xlane.f32.xlu1 %v580_v51  ;;  %v1190_v52 = vpop.f32.mrb[7].mxu1  ;;  %v455_v50 = vld [vmem:[#allocation3] sm:$0xff] }
 0x2f0   : > { %v456_v51 = vmul.f32 %v1461_v10, %v455_v50 }
 0x2f4   : > { %v714_v53 = vpop.f32.mrb[8].mxu1 }
 0x2f5   : > { %v720_v54 = vsel %vm437_vm4, -1e+09, %v714_v53  ;;  %v1201_v55 = vpop.f32.mrb[9].mxu1 }
 0x2f6   : > { %v717_v56 = vpop.f32.mrb[10].mxu1  ;;  %v723_v57 = vsel %vm385_vm1, %v720_v54, -inf }
 0x2f7   : > { %724 = vmax.xlane.f32.xlu0 %v723_v57  ;;  %v1202_v58 = vpop.f32.mrb[11].mxu1 }
 0x2f8   : > { %v739_v58 = vld [vmem:[#allocation3 + $0x10] sm:$0xff] }
 0x2fc   : > { %v854_v59 = vpop.f32.mrb[12].mxu1 }
 0x2fd   : > { %v1453_v60 = vsel %vm437_vm4, -1e+09, %v854_v59  ;;  %v1213_v61 = vpop.f32.mrb[13].mxu1 }
 0x2fe   : > { %v857_v62 = vpop.f32.mrb[14].mxu1  ;;  %v863_v63 = vsel %vm385_vm1, %v1453_v60, -inf }
 0x2ff   : > { %864 = vmax.xlane.f32.xlu1 %v863_v63  ;;  %v1214_v1 = vpop.f32.mrb[15].mxu1  ;;  %v879_v63 = vld [vmem:[#allocation3 + $0x18] sm:$0xff] }
 0x37c   : > { %v582_v4 = vpop.xlane.xlu1 %581 }
 0x37d   : > { %v583_v5 = vmax.f32 %v579_v2, %v582_v4 }
 0x37f   : > { %669 = vst.msk [vmem:[#allocation2 + $0x8] sm:$0xff] %vm366_vm3, %v583_v5  ;;  %589 = vperm.xlu1 %1256, %v583_v5   ;;  %v584_v15 = vsub.f32 %v579_v2, %v583_v5 }
 0x381   : > { %v585_v17 = vmul.f32 1.442695, %v584_v15 }
 0x383   : > { %614 = vrot.lane.b32.xlu1 %v1149_v6, %s1311_s29  ;;  %1263 = vpow2.f32 %v585_v17 }
 0x384   : > { %v725_v8 = vpop.xlane.xlu0 %724 }
 0x385   : > { %v726_v9 = vmax.f32 %v722_v7, %v725_v8 }
 0x387   : > { %809 = vst.msk [vmem:[#allocation2 + $0x10] sm:$0xff] %vm366_vm3, %v726_v9  ;;  %732 = vperm.xlu0 %1255, %v726_v9   ;;  %v727_v18 = vsub.f32 %v722_v7, %v726_v9 }
 0x389   : > { %v728_v19 = vmul.f32 1.442695, %v727_v18 }
 0x38b   : > { %466 = vperm.xlu0 %1255, %v1461_v10   ;;  %1265 = vpow2.f32 %v728_v19 }
 0x38c   : > { %v865_v12 = vpop.xlane.xlu1 %864 }
 0x38d   : > { %v1467_v13 = vmax.f32 %v1463_v11, %v865_v12  ;;  %v1264_v20 = vpop.eup %1263 }
 0x38f   : > { %v867_v14 = vsub.f32 %v1463_v11, %v1467_v13  ;;  %949 = vst.msk [vmem:[#allocation2 + $0x18] sm:$0xff] %vm366_vm3, %v1467_v13  ;;  %872 = vperm.xlu1 %1256, %v1467_v13  }
 0x391   : > { %v868_v55 = vmul.f32 1.442695, %v867_v14 }
 0x393   : > { %754 = vrot.lane.b32.xlu1 %v1149_v6, %s1312_s30 }
 0x395   : > { %v1266_v21 = vpop.eup %1265 }
 0x396   : > { %v740_v59 = vmul.f32 %v1266_v21, %v739_v58 }
 0x397   : > { %894 = vrot.lane.b32.xlu1 %v1149_v6, %s1313_s5 }
 0x3bb   : > { %458 = vadd.xlane.f32.xlu1 %v457_v16 }
 0x3cc   : > { %606 = vperm.xlu1 %1256, %v1264_v20  }
 0x3d0   : > { %749 = vperm.xlu1 %1256, %v1266_v21  }
 0x3fe   : > { %v590_v22 = vpop.permute.xlu1 %589 }
 0x3ff   : > { %v592_v23 = vsub.f32 %v577_v48, %v590_v22 }
 0x401   : > { %v593_v24 = vmul.f32 1.442695, %v592_v23 }
 0x402   : > { %v615_v25 = vpop.permute.xlu1 %614 }
 0x403   : > { %1267 = vpow2.f32 %v593_v24  ;;  %v620_v26 = vsel %vm474_vm5, %v615_v25, 0 }
 0x404   : > { %1192 = vmatpush3.bf16.msra.mxu0 %v620_v26 }
 0x405   : > { %1203 = vmatprep.subr.bf16.mxu0 %v1307_v0 }
 0x406   : > { %v733_v27 = vpop.permute.xlu0 %732 }
 0x407   : > { %v735_v28 = vsub.f32 %v720_v54, %v733_v27  ;;  %v596_v54 = vld [vmem:[#allocation3 + $0x8] sm:$0xff] }
 0x409   : > { %v736_v30 = vmul.f32 1.442695, %v735_v28 }
 0x40a   : > { %v467_v31 = vpop.permute.xlu0 %466 }
 0x40b   : > { %1269 = vpow2.f32 %v736_v30  ;;  %v469_v32 = vmul.f32 %v467_v31, %v463_v29 }
 0x40d   : > { %v1268_v33 = vpop.eup %1267  ;;  %v518_v34 = vadd.f32 %v1443_v43, %v469_v32 }
 0x40e   : > { %v873_v35 = vpop.permute.xlu1 %872  ;;  %v598_v36 = vsel %vm385_vm1, %v1268_v33, 0.0  ;;  %v610_v37 = vpack.c.bf16 %v1268_v33, %v1268_v33 }
 0x40f   : > { %519 = vst.msk [vmem:[#allocation4] sm:$0xff] %vm385_vm1, %v518_v34  ;;  %v875_v38 = vsub.f32 %v1453_v60, %v873_v35  ;;  %599 = vadd.xlane.f32.xlu0 %v598_v36 }
 0x410   : > { %1194 = vmatmul.mubr.msk.bf16.vlgmr.msra.gmra.mrb[4].mxu0 %vm385_vm1, %v610_v37 }
 0x411   : > { %v876_v39 = vmul.f32 1.442695, %v875_v38  ;;  %1205 = vmatprep.mubr.msk.bf16.mxu0 %vm1308_vm0, %v1307_v0 }
 0x412   : > { %v755_v40 = vpop.permute.xlu1 %754 }
 0x413   : > { %1271 = vpow2.f32 %v876_v39  ;;  %v760_v41 = vsel %vm474_vm5, %v755_v40, 0 }
 0x414   : > { %1204 = vmatpush3.bf16.msra.mxu0 %v760_v41  ;;  %1273 = vpow2.f32 %v868_v55 }
 0x415   : > { %v1270_v42 = vpop.eup %1269  ;;  %1215 = vmatprep.subr.bf16.mxu0 %v1307_v0 }
 0x416   : > { %v741_v43 = vsel %vm385_vm1, %v1270_v42, 0.0  ;;  %v753_v44 = vpack.c.bf16 %v1270_v42, %v1270_v42  ;;  %v895_v45 = vpop.permute.xlu1 %894  ;;  %v603_v25 = vld [vmem:[#allocation4] sm:$0xff] }
 0x417   : > { %742 = vadd.xlane.f32.xlu0 %v741_v43  ;;  %v900_v46 = vsel %vm474_vm5, %v895_v45, 0 }
 0x418   : > { %1206 = vmatmul.mubr.msk.bf16.vlgmr.msra.gmra.mrb[8].mxu0 %vm385_vm1, %v753_v44 }
 0x419   : > { %1216 = vmatpush3.bf16.msra.mxu0 %v900_v46  ;;  %1217 = vmatprep.mubr.msk.bf16.mxu0 %vm1308_vm0, %v1307_v0  ;;  %v597_v0 = vmul.f32 %v1264_v20, %v596_v54 }
 0x41d   : > { %v1272_v47 = vpop.eup %1271 }
 0x41e   : > { %v881_v48 = vsel %vm385_vm1, %v1272_v47, 0.0  ;;  %v893_v49 = vpack.c.bf16 %v1272_v47, %v1272_v47  ;;  %v1274_v62 = vpop.eup %1273 }
 0x41f   : > { %882 = vadd.xlane.f32.xlu0 %v881_v48  ;;  %v880_v1 = vmul.f32 %v1274_v62, %v879_v63 }
 0x420   : > { %1218 = vmatmul.mubr.msk.bf16.vlgmr.msra.gmra.mrb[12].mxu0 %vm385_vm1, %v893_v49 }
 0x448   : > { %v459_v52 = vpop.xlane.xlu1 %458 }
 0x449   : > { %v460_v53 = vadd.f32 %v459_v52, %v456_v51 }
 0x44b   : > { %462 = vst.msk [vmem:[#allocation3] sm:$0xff] %vm366_vm3, %v460_v53 }
 0x44c   : > { %v607_v24 = vpop.permute.xlu1 %606 }
 0x44d   : > { %v609_v26 = vmul.f32 %v607_v24, %v603_v25 }
 0x450   : > { %v750_v29 = vpop.permute.xlu1 %749 }
 0x452   : > { %v954_v4 = vld [vmem:[#allocation3] sm:$0xff] }
 0x453   : > { %1275 = vrcp.f32 %v954_v4 }
 0x45d   : > { %v1276_v10 = vpop.eup %1275 }
 0x49c   : > { %v600_v56 = vpop.xlane.xlu0 %599 }
 0x49d   : > { %v601_v57 = vadd.f32 %v600_v56, %v597_v0 }
 0x49f   : > { %602 = vst.msk [vmem:[#allocation3 + $0x8] sm:$0xff] %vm366_vm3, %v601_v57 }
 0x4a4   : > { %v743_v60 = vpop.xlane.xlu0 %742 }
 0x4a5   : > { %v744_v61 = vadd.f32 %v743_v60, %v740_v59 }
 0x4a6   : > { %v962_v11 = vld [vmem:[#allocation3 + $0x8] sm:$0xff] }
 0x4a7   : > { %745 = vst.msk [vmem:[#allocation3 + $0x10] sm:$0xff] %vm366_vm3, %v744_v61 }
 0x4ac   : > { %v883_v2 = vpop.xlane.xlu0 %882 }
 0x4ad   : > { %v884_v3 = vadd.f32 %v883_v2, %v880_v1 }
 0x4ae   : > { %v970_v5 = vld [vmem:[#allocation3 + $0x10] sm:$0xff] }
 0x4af   : > { %885 = vst.msk [vmem:[#allocation3 + $0x18] sm:$0xff] %vm366_vm3, %v884_v3  ;;  %1277 = vrcp.f32 %v970_v5 }
 0x4b0   : > { %1279 = vrcp.f32 %v962_v11 }
 0x4b6   : > { %v978_v17 = vld [vmem:[#allocation3 + $0x18] sm:$0xff] }
 0x4b7   : > { %1281 = vrcp.f32 %v978_v17 }
 0x4b9   : > { %v1278_v12 = vpop.eup %1277 }
 0x4ba   : > { %v1280_v22 = vpop.eup %1279 }
 0x4c1   : > { %v1282_v23 = vpop.eup %1281 }
 0x4e3   : > { %v656_v6 = vpop.f32.mrb[4].mxu0 }
 0x4e4   : > { %v1195_v7 = vpop.f32.mrb[5].mxu0  ;;  %663 = vrot.lane.b32.xlu0 %v656_v6, %s1314_s9 }
 0x4e5   : > { %v659_v8 = vpop.f32.mrb[6].mxu0 }
 0x4e6   : > { %v1196_v9 = vpop.f32.mrb[7].mxu0 }
 0x4e8   : > { %958 = vperm.xlu0 %1255, %v1276_v10  }
 0x4eb   : > { %v796_v13 = vpop.f32.mrb[8].mxu0 }
 0x4ec   : > { %v1207_v14 = vpop.f32.mrb[9].mxu0  ;;  %803 = vrot.lane.b32.xlu1 %v796_v13, %s1315_s10  ;;  %974 = vperm.xlu0 %1255, %v1278_v12  }
 0x4ed   : > { %v799_v15 = vpop.f32.mrb[10].mxu0 }
 0x4ee   : > { %v1208_v16 = vpop.f32.mrb[11].mxu0 }
 0x4f0   : > { %889 = vperm.xlu1 %1256, %v1274_v62  }
 0x4f3   : > { %v936_v18 = vpop.f32.mrb[12].mxu0 }
 0x4f4   : > { %v1219_v19 = vpop.f32.mrb[13].mxu0  ;;  %943 = vrot.lane.b32.xlu1 %v936_v18, %s1316_s11 }
 0x4f5   : > { %v939_v20 = vpop.f32.mrb[14].mxu0 }
 0x4f6   : > { %v1220_v21 = vpop.f32.mrb[15].mxu0 }
 0x4f8   : > { %966 = vperm.xlu1 %1256, %v1280_v22  }
 0x4fc   : > { %982 = vperm.xlu1 %1256, %v1282_v23  }
 0x556   : > { %v664_v27 = vpop.permute.xlu0 %663 }
 0x557   : > { %v666_v28 = vadd.f32 %v664_v27, %v609_v26 }
 0x559   : > { %668 = vst.msk [vmem:[#allocation4] sm:$0xff] %vm667_vm7, %v666_v28 }
 0x55e   : > { %v804_v32 = vpop.permute.xlu1 %803 }
 0x560   : > { %v746_v30 = vld [vmem:[#allocation4] sm:$0xff] }
 0x561   : > { %v752_v31 = vmul.f32 %v750_v29, %v746_v30 }
 0x563   : > { %v806_v33 = vadd.f32 %v804_v32, %v752_v31 }
 0x565   : > { %808 = vst.msk [vmem:[#allocation4] sm:$0xff] %vm807_vm8, %v806_v33 }
 0x567   : > { %v959_v39 = vpop.permute.xlu0 %958 }
 0x56b   : > { %v975_v41 = vpop.permute.xlu0 %974 }
 0x56c   : > { %v886_v35 = vld [vmem:[#allocation4] sm:$0xff] }
 0x56f   : > { %v890_v34 = vpop.permute.xlu1 %889 }
 0x570   : > { %v892_v36 = vmul.f32 %v890_v34, %v886_v35 }
 0x573   : > { %v944_v37 = vpop.permute.xlu1 %943 }
 0x574   : > { %v946_v38 = vadd.f32 %v944_v37, %v892_v36 }
 0x576   : > { %948 = vst.msk [vmem:[#allocation4] sm:$0xff] %vm947_vm9, %v946_v38 }
 0x577   : > { %v967_v40 = vpop.permute.xlu1 %966 }
 0x57b   : > { %v983_v46 = vpop.permute.xlu1 %982 }
 0x57d   : > { %v953_v42 = vld [vmem:[#allocation4] sm:$0xff] }
 0x57e   : > { %v961_v43 = vmul.f32 %v959_v39, %v953_v42  ;;  %v969_v44 = vmul.f32 %v967_v40, %v953_v42  ;;  %v977_v45 = vmul.f32 %v975_v41, %v953_v42  ;;  %v985_v48 = vmul.f32 %v983_v46, %v953_v42 }
 0x580   : > { %v986_v47 = vsel %vm385_vm1, %v961_v43, %v969_v44 }
 0x581   : > { %v988_v49 = vsel %vm987_vm10, %v986_v47, %v977_v45 }
 0x582   : > { %v990_v50 = vsel %vm989_vm11, %v988_v49, %v985_v48 }
 0x583   : > { %v991_v51 = vpack.c.bf16 %v990_v50, %v990_v50 }
 0x585   : > { %993 = vst.msk [vmem:[%s359_s14] sm:$0xf] %vm992_vm12, %v991_v51 }
 0x586 PF: > { %s14_s17 = sadd.s32 1, %s1305_s17   ;;  %s1523_s15 = smov %s1301_s16 }
 0x587   : > { %p11_p5 = scmp.ge.s32.totalorder %s14_s17, 4   ;;  %s1524_s16 = smov %s1526_s18 }
 0x589   :  { %13 = sbr.rel (!%p11_p5) target bundleno = 2 (0x2), region = 89 }

</bundles_post_ra>
